<compile_context>
chip_gen: v7x
topology: tpu7x:2x2x1
jax: 0.10.0
libtpu: 0.0.40
codegen_flags: <defaults>
</compile_context>

<pallas_src>
import functools

import jax
import jax.numpy as jnp
from jax.experimental import pallas as pl
from jax.experimental.pallas import tpu as pltpu

EMBED_SIZE = 50
D_IN = 1200
D_H1 = 600
D_H2 = 300

# lane-padded sizes
D_IN_P = 1280
D_H1_P = 640
D_H2_P = 384
LAT_P = 128            # padded latent width
HEAD_P = 2 * LAT_P     # fused mu|logvar head (mu: lanes 0..127, logvar: 128..255)

# offsets into the single fused bias slab (all multiples of 128 -> lane aligned)
B12_OFF = 0
B23_OFF = B12_OFF + D_H1_P      # 640
BH_OFF = B23_OFF + D_H2_P       # 1024
BR3_OFF = BH_OFF + HEAD_P       # 1280
B32_OFF = BR3_OFF + D_H2_P      # 1664
B21_OFF = B32_OFF + D_H1_P      # 2304
BIAS_TOTAL = B21_OFF + D_IN_P   # 3584


def _round_up(x, m):
    return (x + m - 1) // m * m


def _cdiv(a, b):
    return -(-a // b)


def _vae_kernel(
    x_ref, eps_ref,
    w12_ref, w23_ref, wh_ref, wr3_ref, w32_ref, w21_ref, bias_ref,
    recon_ref, mu_ref, logvar_ref,
):
    bf = jnp.bfloat16

    def dot(a_bf16, w_ref):
        # bf16 x bf16 -> f32 accumulate on the MXU
        return jnp.dot(a_bf16, w_ref[...], preferred_element_type=jnp.float32)

    def bias(off, width):
        return bias_ref[:, off:off + width]     # (1, width) f32, broadcasts over rows

    x = x_ref[...]                              # bf16 [tb, 1280] (streamed)

    # ---- encode ----  (f32 accumulate + f32 bias, tanh in bf16 -> feeds next dot)
    h1 = jnp.tanh((dot(x, w12_ref) + bias(B12_OFF, D_H1_P)).astype(bf))
    h2 = jnp.tanh((dot(h1, w23_ref) + bias(B23_OFF, D_H2_P)).astype(bf))
    head = dot(h2, wh_ref) + bias(BH_OFF, HEAD_P)      # f32 [tb, 256]
    mu = head[:, :LAT_P]                               # lanes 0..127
    logvar = head[:, LAT_P:]                           # lanes 128..255

    # ---- reparameterize: z = mu + eps * exp(0.5 * logvar)  (f32) ----
    z = mu + eps_ref[...].astype(jnp.float32) * jnp.exp(0.5 * logvar)

    # ---- decode ----
    d1 = jnp.tanh((dot(z.astype(bf), wr3_ref) + bias(BR3_OFF, D_H2_P)).astype(bf))
    d2 = jnp.tanh((dot(d1, w32_ref) + bias(B32_OFF, D_H1_P)).astype(bf))
    recon = dot(d2, w21_ref) + bias(B21_OFF, D_IN_P)   # f32 [tb, 1280]

    recon_ref[...] = recon.astype(bf)                  # bf16 store halves writeback
    mu_ref[...] = mu                                   # f32
    logvar_ref[...] = logvar                           # f32


@functools.partial(jax.jit, static_argnames=("block_b",))
def vae_forward(x, eps, packed_params, *, block_b=256):
    """x: [B, 1200] f32, eps: [B, 50] f32.

    Returns (recon [B,1200] f32, mu [B,50] f32, logvar [B,50] f32).
    """
    B = x.shape[0]
    b8 = _round_up(B, 8)

    # Grid shaping: >=2 steps when there is enough work (megacore + pipeline
    # overlap on v7x), and tb chosen from the step count so batch padding is
    # bounded (<8 rows/step) instead of up to block_b-8 dead rows.
    min_steps = 2 if b8 >= 16 else 1
    n_steps = max(min_steps, _cdiv(b8, block_b))
    tb = _round_up(_cdiv(b8, n_steps), 8)
    bp = tb * n_steps

    bf = jnp.bfloat16
    # Fuse pad + bf16 cast: halves the streamed input and the pad-copy traffic.
    x_p = jnp.pad(x.astype(bf), ((0, bp - B), (0, D_IN_P - D_IN)))
    eps_p = jnp.pad(eps.astype(bf), ((0, bp - B), (0, LAT_P - EMBED_SIZE)))

    def resident(p):
        # Constant index_map -> block never changes across grid steps; single
        # buffer (Buffered(1)) drops the useless second pipeline buffer.
        return pl.BlockSpec(p.shape, lambda i: (0, 0),
                            pipeline_mode=pl.Buffered(1))

    in_specs = [
        pl.BlockSpec((tb, D_IN_P), lambda i: (i, 0)),   # x (bf16, streamed)
        pl.BlockSpec((tb, LAT_P), lambda i: (i, 0)),    # eps (bf16, streamed)
    ] + [resident(p) for p in packed_params]

    out_specs = (
        pl.BlockSpec((tb, D_IN_P), lambda i: (i, 0)),   # recon (bf16, padded)
        pl.BlockSpec((tb, LAT_P), lambda i: (i, 0)),    # mu (f32, padded)
        pl.BlockSpec((tb, LAT_P), lambda i: (i, 0)),    # logvar (f32, padded)
    )
    out_shapes = (
        jax.ShapeDtypeStruct((bp, D_IN_P), bf),
        jax.ShapeDtypeStruct((bp, LAT_P), jnp.float32),
        jax.ShapeDtypeStruct((bp, LAT_P), jnp.float32),
    )

    recon_p, mu_p, logvar_p = pl.pallas_call(
        _vae_kernel,
        out_shape=out_shapes,
        grid_spec=pltpu.PrefetchScalarGridSpec(
            num_scalar_prefetch=0,
            grid=(n_steps,),
            in_specs=in_specs,
            out_specs=out_specs,
        ),
        compiler_params=pltpu.CompilerParams(
            dimension_semantics=("parallel",),
            vmem_limit_bytes=48 << 20,   # < v7x 64 MiB physical VMEM
        ),
    )(x_p, eps_p, *packed_params)

    return (recon_p[:B, :D_IN].astype(jnp.float32),
            mu_p[:B, :EMBED_SIZE],
            logvar_p[:B, :EMBED_SIZE])


# ----------------------------------------------------------------------------
# Parameter construction
# ----------------------------------------------------------------------------

def init_raw_params(key):
    """f32 params in [in, out] layout (transpose of PyTorch nn.Linear)."""
    dims = {
        "w12": (D_IN, D_H1), "w23": (D_H1, D_H2),
        "wm": (D_H2, EMBED_SIZE), "wlv": (D_H2, EMBED_SIZE),
        "wr3": (EMBED_SIZE, D_H2), "w32": (D_H2, D_H1), "w21": (D_H1, D_IN),
    }
    raw = {}
    for name, (din, dout) in dims.items():
        key, wk, bk = jax.random.split(key, 3)
        bound = 1.0 / jnp.sqrt(din)
        raw[name] = jax.random.uniform(wk, (din, dout), jnp.float32, -bound, bound)
        raw["b" + name[1:]] = jax.random.uniform(bk, (dout,), jnp.float32, -bound, bound)
    return raw


def _pad_w(w, rows, cols):
    return jnp.pad(w, ((0, rows - w.shape[0]), (0, cols - w.shape[1])))


def pack_params(raw):
    """Zero-pad to lane multiples, fuse mu/logvar head, fuse all biases into
    one lane-aligned f32 slab, cast weights to bf16."""
    bf = jnp.bfloat16

    w_head = jnp.zeros((D_H2_P, HEAD_P), jnp.float32)
    w_head = w_head.at[:D_H2, :EMBED_SIZE].set(raw["wm"])
    w_head = w_head.at[:D_H2, LAT_P:LAT_P + EMBED_SIZE].set(raw["wlv"])

    bias = jnp.zeros((1, BIAS_TOTAL), jnp.float32)
    bias = bias.at[0, B12_OFF:B12_OFF + D_H1].set(raw["b12"])
    bias = bias.at[0, B23_OFF:B23_OFF + D_H2].set(raw["b23"])
    bias = bias.at[0, BH_OFF:BH_OFF + EMBED_SIZE].set(raw["bm"])
    bias = bias.at[0, BH_OFF + LAT_P:BH_OFF + LAT_P + EMBED_SIZE].set(raw["blv"])
    bias = bias.at[0, BR3_OFF:BR3_OFF + D_H2].set(raw["br3"])
    bias = bias.at[0, B32_OFF:B32_OFF + D_H1].set(raw["b32"])
    bias = bias.at[0, B21_OFF:B21_OFF + D_IN].set(raw["b21"])

    return [
        _pad_w(raw["w12"], D_IN_P, D_H1_P).astype(bf),
        _pad_w(raw["w23"], D_H1_P, D_H2_P).astype(bf),
        w_head.astype(bf),
        _pad_w(raw["wr3"], LAT_P, D_H2_P).astype(bf),
        _pad_w(raw["w32"], D_H2_P, D_H1_P).astype(bf),
        _pad_w(raw["w21"], D_H1_P, D_IN_P).astype(bf),
        bias,
    ]


# ----------------------------------------------------------------------------
# References
# ----------------------------------------------------------------------------

def ref_forward_f32(x, eps, raw):
    """Exact PyTorch-module math in f32 (semantics check)."""
    h1 = jnp.tanh(x @ raw["w12"] + raw["b12"])
    h2 = jnp.tanh(h1 @ raw["w23"] + raw["b23"])
    mu = h2 @ raw["wm"] + raw["bm"]
    logvar = h2 @ raw["wlv"] + raw["blv"]
    z = mu + eps * jnp.exp(0.5 * logvar)
    d1 = jnp.tanh(z @ raw["wr3"] + raw["br3"])
    d2 = jnp.tanh(d1 @ raw["w32"] + raw["b32"])
    return d2 @ raw["w21"] + raw["b21"], mu, logvar


def ref_forward_packed(x, eps, packed):
    """Same padded/bf16 arithmetic as the kernel, in plain JAX."""
    w12, w23, wh, wr3, w32, w21, bias = packed
    bf = jnp.bfloat16
    B = x.shape[0]
    x_p = jnp.pad(x.astype(bf), ((0, 0), (0, D_IN_P - D_IN)))
    eps_p = jnp.pad(eps.astype(bf), ((0, 0), (0, LAT_P - EMBED_SIZE)))

    def dot(a, w):
        return jnp.dot(a, w, preferred_element_type=jnp.float32)

    def b(off, width):
        return bias[:, off:off + width]

    h1 = jnp.tanh((dot(x_p, w12) + b(B12_OFF, D_H1_P)).astype(bf))
    h2 = jnp.tanh((dot(h1, w23) + b(B23_OFF, D_H2_P)).astype(bf))
    head = dot(h2, wh) + b(BH_OFF, HEAD_P)
    mu, logvar = head[:, :LAT_P], head[:, LAT_P:]
    z = mu + eps_p.astype(jnp.float32) * jnp.exp(0.5 * logvar)
    d1 = jnp.tanh((dot(z.astype(bf), wr3) + b(BR3_OFF, D_H2_P)).astype(bf))
    d2 = jnp.tanh((dot(d1, w32) + b(B32_OFF, D_H1_P)).astype(bf))
    recon = (dot(d2, w21) + b(B21_OFF, D_IN_P)).astype(bf)
    return (recon[:B, :D_IN].astype(jnp.float32),
            mu[:B, :EMBED_SIZE], logvar[:B, :EMBED_SIZE])


if __name__ == "__main__":
    key = jax.random.PRNGKey(0)
    pkey, xkey, ekey = jax.random.split(key, 3)

    raw = init_raw_params(pkey)
    packed = pack_params(raw)

    B = 8
    x = jax.random.normal(xkey, (B, D_IN), jnp.float32)
    eps = jax.random.normal(ekey, (B, EMBED_SIZE), jnp.float32)

    recon, mu, logvar = vae_forward(x, eps, packed)
    jax.block_until_ready((recon, mu, logvar))

    assert recon.shape == (B, D_IN)
    assert mu.shape == (B, EMBED_SIZE) and logvar.shape == (B, EMBED_SIZE)

    # Check 1: match the bf16/padded arithmetic (same dtypes/rounding as kernel).
    r_b, mu_b, lv_b = ref_forward_packed(x, eps, packed)
    assert jnp.allclose(recon, r_b, atol=2e-2, rtol=2e-2)
    assert jnp.allclose(mu, mu_b, atol=2e-2, rtol=2e-2)
    assert jnp.allclose(logvar, lv_b, atol=2e-2, rtol=2e-2)

    # Check 2: semantics vs. the exact f32 PyTorch-equivalent math (loose tol
    # because kernel streams/activations/weights are bf16).
    r_f, mu_f, lv_f = ref_forward_f32(x, eps, raw)
    assert jnp.allclose(recon, r_f, atol=1e-1, rtol=1e-1)
    assert jnp.allclose(mu, mu_f, atol=6e-2, rtol=6e-2)
    assert jnp.allclose(logvar, lv_f, atol=6e-2, rtol=6e-2)

    print("KERNEL_OK")
</pallas_src>

<mosaic_0001>
module attributes {stable_mosaic.version = 11 : i64} {
  func.func @_vae_kernel(%arg0: i32, %arg1: memref<8x1280xbf16, #tpu.memory_space<vmem>>, %arg2: memref<8x128xbf16, #tpu.memory_space<vmem>>, %arg3: memref<1280x640xbf16, #tpu.memory_space<vmem>>, %arg4: memref<640x384xbf16, #tpu.memory_space<vmem>>, %arg5: memref<384x256xbf16, #tpu.memory_space<vmem>>, %arg6: memref<128x384xbf16, #tpu.memory_space<vmem>>, %arg7: memref<384x640xbf16, #tpu.memory_space<vmem>>, %arg8: memref<640x1280xbf16, #tpu.memory_space<vmem>>, %arg9: memref<1x3584xf32, #tpu.memory_space<vmem>>, %arg10: memref<8x1280xbf16, #tpu.memory_space<vmem>>, %arg11: memref<8x128xf32, #tpu.memory_space<vmem>>, %arg12: memref<8x128xf32, #tpu.memory_space<vmem>>) attributes {dimension_semantics = [#tpu.dimension_semantics<parallel>], iteration_bounds = array<i64: 1>, scalar_prefetch = 0 : i64, scratch_operands = 0 : i64, tpu.core_type = #tpu.core_type<tc>, window_params = [{transform_indices = @transform_0, window_bounds = array<i64: 8, 1280>}, {transform_indices = @transform_1, window_bounds = array<i64: 8, 128>}, {pipeline_mode = #tpu.pipeline_mode<synchronous>, transform_indices = @transform_2, window_bounds = array<i64: 1280, 640>}, {pipeline_mode = #tpu.pipeline_mode<synchronous>, transform_indices = @transform_3, window_bounds = array<i64: 640, 384>}, {pipeline_mode = #tpu.pipeline_mode<synchronous>, transform_indices = @transform_4, window_bounds = array<i64: 384, 256>}, {pipeline_mode = #tpu.pipeline_mode<synchronous>, transform_indices = @transform_5, window_bounds = array<i64: 128, 384>}, {pipeline_mode = #tpu.pipeline_mode<synchronous>, transform_indices = @transform_6, window_bounds = array<i64: 384, 640>}, {pipeline_mode = #tpu.pipeline_mode<synchronous>, transform_indices = @transform_7, window_bounds = array<i64: 640, 1280>}, {pipeline_mode = #tpu.pipeline_mode<synchronous>, transform_indices = @transform_8, window_bounds = array<i64: 1, 3584>}, {transform_indices = @transform_9, window_bounds = array<i64: 8, 1280>}, {transform_indices = @transform_10, window_bounds = array<i64: 8, 128>}, {transform_indices = @transform_11, window_bounds = array<i64: 8, 128>}]} {
    %c0 = arith.constant 0 : index
    %c0_0 = arith.constant 0 : index
    %0 = vector.load %arg1[%c0, %c0_0] : memref<8x1280xbf16, #tpu.memory_space<vmem>>, vector<8x1280xbf16>
    %c0_1 = arith.constant 0 : index
    %c0_2 = arith.constant 0 : index
    %1 = vector.load %arg3[%c0_1, %c0_2] : memref<1280x640xbf16, #tpu.memory_space<vmem>>, vector<1280x640xbf16>
    %cst = arith.constant dense<0.000000e+00> : vector<8x640xf32>
    %2 = tpu.matmul %0, %1, %cst {dimension_numbers = #tpu.dot_dimension_numbers<[1], [0], [0], [1], [0, 0, 1, 1], [], []>} : vector<8x1280xbf16>, vector<1280x640xbf16>, vector<8x640xf32> -> vector<8x640xf32>
    %c0_3 = arith.constant 0 : index
    %c0_4 = arith.constant 0 : index
    %3 = vector.load %arg9[%c0_3, %c0_4] : memref<1x3584xf32, #tpu.memory_space<vmem>>, vector<1x640xf32>
    %4 = vector.broadcast %3 : vector<1x640xf32> to vector<8x640xf32>
    %5 = arith.addf %2, %4 : vector<8x640xf32>
    %6 = arith.truncf %5 : vector<8x640xf32> to vector<8x640xbf16>
    %7 = math.tanh %6 : vector<8x640xbf16>
    %c0_5 = arith.constant 0 : index
    %c0_6 = arith.constant 0 : index
    %8 = vector.load %arg4[%c0_5, %c0_6] : memref<640x384xbf16, #tpu.memory_space<vmem>>, vector<640x384xbf16>
    %cst_7 = arith.constant dense<0.000000e+00> : vector<8x384xf32>
    %9 = tpu.matmul %7, %8, %cst_7 {dimension_numbers = #tpu.dot_dimension_numbers<[1], [0], [0], [1], [0, 0, 1, 1], [], []>} : vector<8x640xbf16>, vector<640x384xbf16>, vector<8x384xf32> -> vector<8x384xf32>
    %c0_8 = arith.constant 0 : index
    %c640 = arith.constant 640 : index
    %10 = vector.load %arg9[%c0_8, %c640] : memref<1x3584xf32, #tpu.memory_space<vmem>>, vector<1x384xf32>
    %11 = vector.broadcast %10 : vector<1x384xf32> to vector<8x384xf32>
    %12 = arith.addf %9, %11 : vector<8x384xf32>
    %13 = arith.truncf %12 : vector<8x384xf32> to vector<8x384xbf16>
    %14 = math.tanh %13 : vector<8x384xbf16>
    %c0_9 = arith.constant 0 : index
    %c0_10 = arith.constant 0 : index
    %15 = vector.load %arg5[%c0_9, %c0_10] : memref<384x256xbf16, #tpu.memory_space<vmem>>, vector<384x256xbf16>
    %cst_11 = arith.constant dense<0.000000e+00> : vector<8x256xf32>
    %16 = tpu.matmul %14, %15, %cst_11 {dimension_numbers = #tpu.dot_dimension_numbers<[1], [0], [0], [1], [0, 0, 1, 1], [], []>} : vector<8x384xbf16>, vector<384x256xbf16>, vector<8x256xf32> -> vector<8x256xf32>
    %c0_12 = arith.constant 0 : index
    %c1024 = arith.constant 1024 : index
    %17 = vector.load %arg9[%c0_12, %c1024] : memref<1x3584xf32, #tpu.memory_space<vmem>>, vector<1x256xf32>
    %18 = vector.broadcast %17 : vector<1x256xf32> to vector<8x256xf32>
    %19 = arith.addf %16, %18 : vector<8x256xf32>
    %20 = vector.extract_strided_slice %19 {offsets = [0, 0], sizes = [8, 128], strides = [1, 1]} : vector<8x256xf32> to vector<8x128xf32>
    %21 = vector.extract_strided_slice %19 {offsets = [0, 128], sizes = [8, 128], strides = [1, 1]} : vector<8x256xf32> to vector<8x128xf32>
    %c0_13 = arith.constant 0 : index
    %c0_14 = arith.constant 0 : index
    %22 = vector.load %arg2[%c0_13, %c0_14] : memref<8x128xbf16, #tpu.memory_space<vmem>>, vector<8x128xbf16>
    %23 = arith.extf %22 : vector<8x128xbf16> to vector<8x128xf32>
    %cst_15 = arith.constant 5.000000e-01 : f32
    %24 = vector.broadcast %cst_15 : f32 to vector<8x128xf32>
    %25 = arith.mulf %24, %21 : vector<8x128xf32>
    %26 = math.exp %25 : vector<8x128xf32>
    %27 = arith.mulf %23, %26 : vector<8x128xf32>
    %28 = arith.addf %20, %27 : vector<8x128xf32>
    %29 = arith.truncf %28 : vector<8x128xf32> to vector<8x128xbf16>
    %c0_16 = arith.constant 0 : index
    %c0_17 = arith.constant 0 : index
    %30 = vector.load %arg6[%c0_16, %c0_17] : memref<128x384xbf16, #tpu.memory_space<vmem>>, vector<128x384xbf16>
    %cst_18 = arith.constant dense<0.000000e+00> : vector<8x384xf32>
    %31 = tpu.matmul %29, %30, %cst_18 {dimension_numbers = #tpu.dot_dimension_numbers<[1], [0], [0], [1], [0, 0, 1, 1], [], []>} : vector<8x128xbf16>, vector<128x384xbf16>, vector<8x384xf32> -> vector<8x384xf32>
    %c0_19 = arith.constant 0 : index
    %c1280 = arith.constant 1280 : index
    %32 = vector.load %arg9[%c0_19, %c1280] : memref<1x3584xf32, #tpu.memory_space<vmem>>, vector<1x384xf32>
    %33 = vector.broadcast %32 : vector<1x384xf32> to vector<8x384xf32>
    %34 = arith.addf %31, %33 : vector<8x384xf32>
    %35 = arith.truncf %34 : vector<8x384xf32> to vector<8x384xbf16>
    %36 = math.tanh %35 : vector<8x384xbf16>
    %c0_20 = arith.constant 0 : index
    %c0_21 = arith.constant 0 : index
    %37 = vector.load %arg7[%c0_20, %c0_21] : memref<384x640xbf16, #tpu.memory_space<vmem>>, vector<384x640xbf16>
    %cst_22 = arith.constant dense<0.000000e+00> : vector<8x640xf32>
    %38 = tpu.matmul %36, %37, %cst_22 {dimension_numbers = #tpu.dot_dimension_numbers<[1], [0], [0], [1], [0, 0, 1, 1], [], []>} : vector<8x384xbf16>, vector<384x640xbf16>, vector<8x640xf32> -> vector<8x640xf32>
    %c0_23 = arith.constant 0 : index
    %c1664 = arith.constant 1664 : index
    %39 = vector.load %arg9[%c0_23, %c1664] : memref<1x3584xf32, #tpu.memory_space<vmem>>, vector<1x640xf32>
    %40 = vector.broadcast %39 : vector<1x640xf32> to vector<8x640xf32>
    %41 = arith.addf %38, %40 : vector<8x640xf32>
    %42 = arith.truncf %41 : vector<8x640xf32> to vector<8x640xbf16>
    %43 = math.tanh %42 : vector<8x640xbf16>
    %c0_24 = arith.constant 0 : index
    %c0_25 = arith.constant 0 : index
    %44 = vector.load %arg8[%c0_24, %c0_25] : memref<640x1280xbf16, #tpu.memory_space<vmem>>, vector<640x1280xbf16>
    %cst_26 = arith.constant dense<0.000000e+00> : vector<8x1280xf32>
    %45 = tpu.matmul %43, %44, %cst_26 {dimension_numbers = #tpu.dot_dimension_numbers<[1], [0], [0], [1], [0, 0, 1, 1], [], []>} : vector<8x640xbf16>, vector<640x1280xbf16>, vector<8x1280xf32> -> vector<8x1280xf32>
    %c0_27 = arith.constant 0 : index
    %c2304 = arith.constant 2304 : index
    %46 = vector.load %arg9[%c0_27, %c2304] : memref<1x3584xf32, #tpu.memory_space<vmem>>, vector<1x1280xf32>
    %47 = vector.broadcast %46 : vector<1x1280xf32> to vector<8x1280xf32>
    %48 = arith.addf %45, %47 : vector<8x1280xf32>
    %49 = arith.truncf %48 : vector<8x1280xf32> to vector<8x1280xbf16>
    %c0_28 = arith.constant 0 : index
    %c0_29 = arith.constant 0 : index
    %50 = vector.load %arg10[%c0_28, %c0_29] : memref<8x1280xbf16, #tpu.memory_space<vmem>>, vector<8x1280xbf16>
    tpu.vector_store %arg10[%c0_28, %c0_29], %49 {strides = array<i32>} : memref<8x1280xbf16, #tpu.memory_space<vmem>>, vector<8x1280xbf16>,
    %c0_30 = arith.constant 0 : index
    %c0_31 = arith.constant 0 : index
    %51 = vector.load %arg11[%c0_30, %c0_31] : memref<8x128xf32, #tpu.memory_space<vmem>>, vector<8x128xf32>
    tpu.vector_store %arg11[%c0_30, %c0_31], %20 {strides = array<i32>} : memref<8x128xf32, #tpu.memory_space<vmem>>, vector<8x128xf32>,
    %c0_32 = arith.constant 0 : index
    %c0_33 = arith.constant 0 : index
    %52 = vector.load %arg12[%c0_32, %c0_33] : memref<8x128xf32, #tpu.memory_space<vmem>>, vector<8x128xf32>
    tpu.vector_store %arg12[%c0_32, %c0_33], %21 {strides = array<i32>} : memref<8x128xf32, #tpu.memory_space<vmem>>, vector<8x128xf32>,
    return
  }
  func.func @transform_0(%arg0: i32) -> (i32, i32) {
    %c0_i32 = arith.constant 0 : i32
    %c0_i32_0 = arith.constant 0 : i32
    return %arg0, %c0_i32 : i32, i32
  }
  func.func @transform_1(%arg0: i32) -> (i32, i32) {
    %c0_i32 = arith.constant 0 : i32
    %c0_i32_0 = arith.constant 0 : i32
    return %arg0, %c0_i32 : i32, i32
  }
  func.func @transform_2(%arg0: i32) -> (i32, i32) {
    %c0_i32 = arith.constant 0 : i32
    %c0_i32_0 = arith.constant 0 : i32
    %c0_i32_1 = arith.constant 0 : i32
    return %c0_i32, %c0_i32_0 : i32, i32
  }
  func.func @transform_3(%arg0: i32) -> (i32, i32) {
    %c0_i32 = arith.constant 0 : i32
    %c0_i32_0 = arith.constant 0 : i32
    %c0_i32_1 = arith.constant 0 : i32
    return %c0_i32, %c0_i32_0 : i32, i32
  }
  func.func @transform_4(%arg0: i32) -> (i32, i32) {
    %c0_i32 = arith.constant 0 : i32
    %c0_i32_0 = arith.constant 0 : i32
    %c0_i32_1 = arith.constant 0 : i32
    return %c0_i32, %c0_i32_0 : i32, i32
  }
  func.func @transform_5(%arg0: i32) -> (i32, i32) {
    %c0_i32 = arith.constant 0 : i32
    %c0_i32_0 = arith.constant 0 : i32
    %c0_i32_1 = arith.constant 0 : i32
    return %c0_i32, %c0_i32_0 : i32, i32
  }
  func.func @transform_6(%arg0: i32) -> (i32, i32) {
    %c0_i32 = arith.constant 0 : i32
    %c0_i32_0 = arith.constant 0 : i32
    %c0_i32_1 = arith.constant 0 : i32
    return %c0_i32, %c0_i32_0 : i32, i32
  }
  func.func @transform_7(%arg0: i32) -> (i32, i32) {
    %c0_i32 = arith.constant 0 : i32
    %c0_i32_0 = arith.constant 0 : i32
    %c0_i32_1 = arith.constant 0 : i32
    return %c0_i32, %c0_i32_0 : i32, i32
  }
  func.func @transform_8(%arg0: i32) -> (i32, i32) {
    %c0_i32 = arith.constant 0 : i32
    %c0_i32_0 = arith.constant 0 : i32
    %c0_i32_1 = arith.constant 0 : i32
    return %c0_i32, %c0_i32_0 : i32, i32
  }
  func.func @transform_9(%arg0: i32) -> (i32, i32) {
    %c0_i32 = arith.constant 0 : i32
    %c0_i32_0 = arith.constant 0 : i32
    return %arg0, %c0_i32 : i32, i32
  }
  func.func @transform_10(%arg0: i32) -> (i32, i32) {
    %c0_i32 = arith.constant 0 : i32
    %c0_i32_0 = arith.constant 0 : i32
    return %arg0, %c0_i32 : i32, i32
  }
  func.func @transform_11(%arg0: i32) -> (i32, i32) {
    %c0_i32 = arith.constant 0 : i32
    %c0_i32_0 = arith.constant 0 : i32
    return %arg0, %c0_i32 : i32, i32
  }
}

</mosaic_0001>

<bundles_post_ra>
// kernel: vae_forward.1
= control target key start
LH: loop header
LB: loop body
LE: loop exit
PB: predicated region body
PF: predicated region fallthrough
CT: control target
= control target key end

     0   :  { %17 = vsyncpa [#allocation3], 0  ;;  %s13145_s0 = inlined_call_operand.vmem [shape: bf16[8,1280], index: 0, kind: input, shape index: {}]   ;;  %s13146_s1 = inlined_call_operand.vmem [shape: bf16[8,128], index: 1, kind: input, shape index: {}]   ;;  %s13147_s2 = inlined_call_operand.hbm [shape: bf16[1280,640], index: 2, kind: input, shape index: {}]   ;;  %s13148_s3 = inlined_call_operand.hbm [shape: bf16[640,384], index: 3, kind: input, shape index: {}]   ;;  %s13149_s4 = inlined_call_operand.hbm [shape: bf16[384,256], index: 4, kind: input, shape index: {}]   ;;  %s13150_s5 = inlined_call_operand.hbm [shape: bf16[128,384], index: 5, kind: input, shape index: {}]   ;;  %s13151_s6 = inlined_call_operand.hbm [shape: bf16[384,640], index: 6, kind: input, shape index: {}]   ;;  %s13152_s7 = inlined_call_operand.hbm [shape: bf16[640,1280], index: 7, kind: input, shape index: {}]   ;;  %s13153_s8 = inlined_call_operand.hbm [shape: f32[1,3584], index: 8, kind: input, shape index: {}]   ;;  %s13154_s9 = inlined_call_operand.vmem [shape: bf16[8,1280], index: 9, kind: output, shape index: {0}]   ;;  %s13155_s10 = inlined_call_operand.hbm [shape: f32[8,128], index: 10, kind: output, shape index: {1}]   ;;  %s13156_s11 = inlined_call_operand.hbm [shape: f32[8,128], index: 11, kind: output, shape index: {2}]  }
   0x1   :  { %18 = vsyncpa [#allocation6], 0 }
   0x2   :  { %19 = vsyncpa [#allocation9], 0 }
   0x3   :  { %20 = vsyncpa [#allocation12], 0 }
   0x4   :  { %21 = vsyncpa [#allocation4], 0 }
   0x5   :  { %22 = vsyncpa [#allocation16], 0  ;;  %s12673_s17 = smov [#allocation5]   ;;  %s12463_s21 = scalar_lea.hbm %s13148_s3, 15360 }
   0x6   :  { %s44_s18 = sshll.u32 %s12673_s17, 4  ;;  %p12464_p0 = scmp.ne.s32.totalorder %s13148_s3, %s12463_s21  ;;  %s45_s18 = int_to_ptr.vmem [resolvable:$true] %s44_s18 }
   0x7   :  { %p12467_p1 = scmp.lt.u32.totalorder %s12463_s21, %s13148_s3 }
   0x9   :  { %p12469_p2 = pnand %p12467_p1, %p12464_p0 }
   0xb   :  { %12472 = shalt.err (!%p12469_p2)
}
   0xc   :  { %s12473_s26 = scalar_lea.vmem %s45_s18, 15360  ;;  %p12478_p4 = scmp.lt.s32.totalorder %s45_s18, %s45_s18 }
   0xd   :  { %p12474_p3 = scmp.ne.s32.totalorder %s45_s18, %s12473_s26  ;;  %p12479_p5 = scmp.lt.s32.totalorder %s12473_s26, %s12473_s26 }
   0xf   :  { %p12480_p6 = por %p12479_p5, %p12478_p4 }
  0x11   :  { %p12481_p7 = pnand %p12480_p6, %p12474_p3 }
  0x13   :  { %12484 = shalt.err (!%p12481_p7)
}
  0x14   :  { %s12674_s27 = smov 192   ;;  %s12675_s28 = smov 12  }
  0x15   :  { %50 = dma.hbm_to_vmem [thread:$0]  %s13148_s3, 15360, %s45_s18, [#allocation6], %s12674_s27, %s12674_s27, %s12675_s28  }
  0x16   :  { %s12676_s12 = smov [#allocation8]   ;;  %s12677_s14 = smov [#allocation11]  }
  0x17   :  { %s68_s13 = sshll.u32 %s12676_s12, 4  ;;  %s92_s15 = sshll.u32 %s12677_s14, 4  ;;  %s69_s13 = int_to_ptr.vmem [resolvable:$true] %s68_s13  ;;  %s93_s15 = int_to_ptr.vmem [resolvable:$true] %s92_s15 }
  0x18   :  { %s12485_s19 = scalar_lea.hbm %s13150_s5, 3072 }
  0x19   :  { %p12486_p8 = scmp.ne.s32.totalorder %s13150_s5, %s12485_s19  ;;  %p12489_p9 = scmp.lt.u32.totalorder %s12485_s19, %s13150_s5 }
  0x1b   :  { %p12491_p10 = pnand %p12489_p9, %p12486_p8 }
  0x1d   :  { %12494 = shalt.err (!%p12491_p10)
}
  0x1e   :  { %s12495_s3 = scalar_lea.vmem %s69_s13, 3072  ;;  %p12500_p12 = scmp.lt.s32.totalorder %s69_s13, %s69_s13 }
  0x1f   :  { %p12496_p11 = scmp.ne.s32.totalorder %s69_s13, %s12495_s3  ;;  %p12501_p13 = scmp.lt.s32.totalorder %s12495_s3, %s12495_s3 }
  0x21   :  { %p12502_p0 = por %p12501_p13, %p12500_p12 }
  0x23   :  { %p12503_p1 = pnand %p12502_p0, %p12496_p11 }
  0x25   :  { %12506 = shalt.err (!%p12503_p1)
}
  0x26   :  { %74 = dma.hbm_to_vmem [thread:$0]  %s13150_s5, 3072, %s69_s13, [#allocation9], %s12674_s27, %s12674_s27, %s12675_s28  }
  0x27   :  { %s12507_s29 = scalar_lea.hbm %s13152_s7, 51200 }
  0x28   :  { %p12508_p2 = scmp.ne.s32.totalorder %s13152_s7, %s12507_s29  ;;  %p12511_p3 = scmp.lt.u32.totalorder %s12507_s29, %s13152_s7 }
  0x2a   :  { %p12513_p4 = pnand %p12511_p3, %p12508_p2 }
  0x2c   :  { %12516 = shalt.err (!%p12513_p4)
}
  0x2d   :  { %s12517_s17 = scalar_lea.vmem %s93_s15, 51200  ;;  %p12522_p6 = scmp.lt.s32.totalorder %s93_s15, %s93_s15 }
  0x2e   :  { %p12518_p5 = scmp.ne.s32.totalorder %s93_s15, %s12517_s17  ;;  %p12523_p7 = scmp.lt.s32.totalorder %s12517_s17, %s12517_s17 }
  0x30   :  { %p12524_p8 = por %p12523_p7, %p12522_p6 }
  0x32   :  { %p12525_p9 = pnand %p12524_p8, %p12518_p5 }
  0x34   :  { %12528 = shalt.err (!%p12525_p9)
}
  0x35   :  { %s12678_s5 = smov 640   ;;  %s12679_s27 = smov 40  }
  0x36   :  { %98 = dma.hbm_to_vmem [thread:$0]  %s13152_s7, 51200, %s93_s15, [#allocation12], %s12678_s5, %s12678_s5, %s12679_s27  }
  0x37   :  { %s12680_s19 = smov [#allocation2]   ;;  %s12529_s23 = scalar_lea.hbm %s13147_s2, 51200 }
  0x38   :  { %s32_s20 = sshll.u32 %s12680_s19, 4  ;;  %p12530_p10 = scmp.ne.s32.totalorder %s13147_s2, %s12529_s23  ;;  %s33_s20 = int_to_ptr.vmem [resolvable:$true] %s32_s20 }
  0x39   :  { %p12533_p11 = scmp.lt.u32.totalorder %s12529_s23, %s13147_s2 }
  0x3b   :  { %p12535_p12 = pnand %p12533_p11, %p12530_p10 }
  0x3d   :  { %12538 = shalt.err (!%p12535_p12)
}
  0x3e   :  { %s12539_s26 = scalar_lea.vmem %s33_s20, 51200  ;;  %p12544_p0 = scmp.lt.s32.totalorder %s33_s20, %s33_s20 }
  0x3f   :  { %p12540_p13 = scmp.ne.s32.totalorder %s33_s20, %s12539_s26  ;;  %p12545_p1 = scmp.lt.s32.totalorder %s12539_s26, %s12539_s26 }
  0x41   :  { %p12546_p2 = por %p12545_p1, %p12544_p0 }
  0x43   :  { %p12547_p3 = pnand %p12546_p2, %p12540_p13 }
  0x45   :  { %12550 = shalt.err (!%p12547_p3)
}
  0x46   :  { %s12681_s7 = smov 320   ;;  %s12682_s15 = smov 20  }
  0x47   :  { %38 = dma.hbm_to_vmem [thread:$0]  %s13147_s2, 51200, %s33_s20, [#allocation3], %s12681_s7, %s12681_s7, %s12682_s15  }
  0x48   :  { %s12683_s12 = smov [#allocation7]   ;;  %s12551_s5 = scalar_lea.hbm %s13149_s4, 6144 }
  0x49   :  { %s56_s14 = sshll.u32 %s12683_s12, 4  ;;  %p12552_p4 = scmp.ne.s32.totalorder %s13149_s4, %s12551_s5  ;;  %s57_s14 = int_to_ptr.vmem [resolvable:$true] %s56_s14 }
  0x4a   :  { %p12555_p5 = scmp.lt.u32.totalorder %s12551_s5, %s13149_s4 }
  0x4c   :  { %p12557_p6 = pnand %p12555_p5, %p12552_p4 }
  0x4e   :  { %12560 = shalt.err (!%p12557_p6)
}
  0x4f   :  { %s12561_s21 = scalar_lea.vmem %s57_s14, 6144  ;;  %p12566_p8 = scmp.lt.s32.totalorder %s57_s14, %s57_s14 }
  0x50   :  { %p12562_p7 = scmp.ne.s32.totalorder %s57_s14, %s12561_s21  ;;  %p12567_p9 = scmp.lt.s32.totalorder %s12561_s21, %s12561_s21 }
  0x52   :  { %p12568_p10 = por %p12567_p9, %p12566_p8 }
  0x54   :  { %p12569_p11 = pnand %p12568_p10, %p12562_p7 }
  0x56   :  { %12572 = shalt.err (!%p12569_p11)
}
  0x57   :  { %s12684_s2 = smov 128   ;;  %s12685_s20 = smov 8  }
  0x58   :  { %62 = dma.hbm_to_vmem [thread:$0]  %s13149_s4, 6144, %s57_s14, [#allocation6], %s12684_s2, %s12684_s2, %s12685_s20  }
  0x59   :  { %s12686_s3 = smov [#allocation10]   ;;  %s12687_s24 = smov [#allocation13]  }
  0x5a   :  { %s80_s18 = sshll.u32 %s12686_s3, 4  ;;  %s105_s25 = sshll.u32 %s12687_s24, 4  ;;  %s81_s18 = int_to_ptr.vmem [resolvable:$true] %s80_s18  ;;  %s106_s25 = int_to_ptr.vmem [resolvable:$true] %s105_s25 }
  0x5b   :  { %s12573_s30 = scalar_lea.hbm %s13151_s6, 15360 }
  0x5c   :  { %p12574_p12 = scmp.ne.s32.totalorder %s13151_s6, %s12573_s30  ;;  %p12577_p13 = scmp.lt.u32.totalorder %s12573_s30, %s13151_s6 }
  0x5e   :  { %p12579_p0 = pnand %p12577_p13, %p12574_p12 }
  0x60   :  { %12582 = shalt.err (!%p12579_p0)
}
  0x61   :  { %s12583_s4 = scalar_lea.vmem %s81_s18, 15360  ;;  %p12588_p2 = scmp.lt.s32.totalorder %s81_s18, %s81_s18 }
  0x62   :  { %p12584_p1 = scmp.ne.s32.totalorder %s81_s18, %s12583_s4  ;;  %p12589_p3 = scmp.lt.s32.totalorder %s12583_s4, %s12583_s4 }
  0x64   :  { %p12590_p4 = por %p12589_p3, %p12588_p2 }
  0x66   :  { %p12591_p5 = pnand %p12590_p4, %p12584_p1 }
  0x68   :  { %12594 = shalt.err (!%p12591_p5)
}
  0x69   :  { %86 = dma.hbm_to_vmem [thread:$0]  %s13151_s6, 15360, %s81_s18, [#allocation9], %s12681_s7, %s12681_s7, %s12682_s15  }
  0x6a   :  { %s12595_s19 = scalar_lea.hbm %s13153_s8, 448 }
  0x6b   :  { %p12596_p6 = scmp.ne.s32.totalorder %s13153_s8, %s12595_s19  ;;  %p12599_p7 = scmp.lt.u32.totalorder %s12595_s19, %s13153_s8 }
  0x6d   :  { %p12601_p8 = pnand %p12599_p7, %p12596_p6 }
  0x6f   :  { %12604 = shalt.err (!%p12601_p8)
}
  0x70   :  { %s12605_s23 = scalar_lea.vmem %s106_s25, 448  ;;  %p12610_p10 = scmp.lt.s32.totalorder %s106_s25, %s106_s25 }
  0x71   :  { %p12606_p9 = scmp.ne.s32.totalorder %s106_s25, %s12605_s23  ;;  %p12611_p11 = scmp.lt.s32.totalorder %s12605_s23, %s12605_s23 }
  0x73   :  { %p12612_p12 = por %p12611_p11, %p12610_p10 }
  0x75   :  { %p12613_p13 = pnand %p12612_p12, %p12606_p9 }
  0x77   :  { %12616 = shalt.err (!%p12613_p13)
}
  0x78   :  { %108 = dma.hbm_to_vmem [thread:$0]  %s13153_s8, 448, %s106_s25, [#allocation12]  }
  0x79   :  { %12661 = dma.done.wait [#allocation3], 51200  }
  0x7a   :  { %12662 = vsyncadd [#allocation3], 4294916096 }
  0x7b   :  { %12663 = dma.done.wait [#allocation6], 21504  }
  0x7c   :  { %12664 = vsyncadd [#allocation6], 4294945792 }
  0x7d   :  { %12665 = dma.done.wait [#allocation9], 18432  }
  0x7e   :  { %12666 = vsyncadd [#allocation9], 4294948864 }
  0x7f   :  { %12667 = dma.done.wait [#allocation12], 51648  }
  0x80   :  { %12668 = vsyncadd [#allocation12], 4294915648  ;;  %v10826_v0 = vld [vmem:[#allocation2 + $0x4] ss:$20 sps:$4 sm:$0xff]   ;;  %v10830_v2 = vld [vmem:[#allocation2] ss:$20 sps:$4 sm:$0xff]  }
  0x81   :  { %v10828_v1 = vld [vmem:[#allocation2 + $0x284] ss:$20 sps:$4 sm:$0xff]   ;;  %2758 = vmatprep.subr.bf16.mxu1 %v10826_v0  ;;  %v10831_v3 = vld [vmem:[#allocation2 + $0x280] ss:$20 sps:$4 sm:$0xff]   ;;  %v10836_v6 = vld [vmem:[#allocation2 + $0x28] ss:$20 sps:$4 sm:$0xff]  }
  0x82   :  { %2799 = vmatprep.subr.bf16.mxu0 %v10828_v1  ;;  %v10832_v4 = vld [vmem:[#allocation2 + $0x2c] ss:$20 sps:$4 sm:$0xff]   ;;  %2759 = vmatpush1.bf16.msra.mxu1 %v10830_v2  ;;  %v10837_v7 = vld [vmem:[#allocation2 + $0x2a8] ss:$20 sps:$4 sm:$0xff]   ;;  %v10842_v10 = vld [vmem:[#allocation2 + $0x50] ss:$20 sps:$4 sm:$0xff]  }
  0x83   :  { %2800 = vmatpush1.bf16.msra.mxu0 %v10831_v3  ;;  %v10834_v5 = vld [vmem:[#allocation2 + $0x2ac] ss:$20 sps:$4 sm:$0xff]   ;;  %2760 = vmatprep.subr.bf16.mxu1 %v10832_v4  ;;  %v10838_v8 = vld [vmem:[#allocation2 + $0x54] ss:$20 sps:$4 sm:$0xff]   ;;  %v10843_v11 = vld [vmem:[#allocation2 + $0x2d0] ss:$20 sps:$4 sm:$0xff]  }
  0x84   :  { %2801 = vmatprep.subr.bf16.mxu0 %v10834_v5  ;;  %v10840_v9 = vld [vmem:[#allocation2 + $0x2d4] ss:$20 sps:$4 sm:$0xff]   ;;  %v10844_v12 = vld [vmem:[#allocation2 + $0x7c] ss:$20 sps:$4 sm:$0xff]   ;;  %v10848_v14 = vld [vmem:[#allocation2 + $0x78] ss:$20 sps:$4 sm:$0xff]  }
  0x85   :  { %v10846_v13 = vld [vmem:[#allocation2 + $0x2fc] ss:$20 sps:$4 sm:$0xff]   ;;  %v10849_v15 = vld [vmem:[#allocation2 + $0x2f8] ss:$20 sps:$4 sm:$0xff]   ;;  %v10854_v18 = vld [vmem:[#allocation2 + $0xa0] ss:$20 sps:$4 sm:$0xff]  }
  0x86   :  { %2761 = vmatpush1.bf16.msra.mxu1 %v10836_v6  ;;  %v10850_v16 = vld [vmem:[#allocation2 + $0xa4] ss:$20 sps:$4 sm:$0xff]   ;;  %v10855_v19 = vld [vmem:[#allocation2 + $0x320] ss:$20 sps:$4 sm:$0xff]   ;;  %v10860_v22 = vld [vmem:[#allocation2 + $0xc8] ss:$20 sps:$4 sm:$0xff]  }
  0x87   :  { %2802 = vmatpush1.bf16.msra.mxu0 %v10837_v7  ;;  %2762 = vmatprep.subr.bf16.mxu1 %v10838_v8  ;;  %v10852_v17 = vld [vmem:[#allocation2 + $0x324] ss:$20 sps:$4 sm:$0xff]   ;;  %v10856_v20 = vld [vmem:[#allocation2 + $0xcc] ss:$20 sps:$4 sm:$0xff]   ;;  %v10861_v23 = vld [vmem:[#allocation2 + $0x348] ss:$20 sps:$4 sm:$0xff]  }
  0x88   :  { %2803 = vmatprep.subr.bf16.mxu0 %v10840_v9  ;;  %v10858_v21 = vld [vmem:[#allocation2 + $0x34c] ss:$20 sps:$4 sm:$0xff]   ;;  %v10862_v24 = vld [vmem:[#allocation2 + $0xf4] ss:$20 sps:$4 sm:$0xff]   ;;  %v10866_v26 = vld [vmem:[#allocation2 + $0xf0] ss:$20 sps:$4 sm:$0xff]  }
  0x89   :  { %v10864_v25 = vld [vmem:[#allocation2 + $0x374] ss:$20 sps:$4 sm:$0xff]   ;;  %v10867_v27 = vld [vmem:[#allocation2 + $0x370] ss:$20 sps:$4 sm:$0xff]   ;;  %v10872_v30 = vld [vmem:[#allocation2 + $0x118] ss:$20 sps:$4 sm:$0xff]  }
  0x8a   :  { %2763 = vmatpush1.bf16.msra.mxu1 %v10842_v10  ;;  %v10868_v28 = vld [vmem:[#allocation2 + $0x11c] ss:$20 sps:$4 sm:$0xff]   ;;  %v10873_v31 = vld [vmem:[#allocation2 + $0x398] ss:$20 sps:$4 sm:$0xff]   ;;  %v10878_v34 = vld [vmem:[#allocation2 + $0x140] ss:$20 sps:$4 sm:$0xff]  }
  0x8b   :  { %2804 = vmatpush1.bf16.msra.mxu0 %v10843_v11  ;;  %2764 = vmatprep.subr.bf16.mxu1 %v10844_v12  ;;  %v10870_v29 = vld [vmem:[#allocation2 + $0x39c] ss:$20 sps:$4 sm:$0xff]   ;;  %v10874_v32 = vld [vmem:[#allocation2 + $0x144] ss:$20 sps:$4 sm:$0xff]   ;;  %v10879_v35 = vld [vmem:[#allocation2 + $0x3c0] ss:$20 sps:$4 sm:$0xff]  }
  0x8c   :  { %2805 = vmatprep.subr.bf16.mxu0 %v10846_v13  ;;  %v10876_v33 = vld [vmem:[#allocation2 + $0x3c4] ss:$20 sps:$4 sm:$0xff]   ;;  %v10880_v36 = vld [vmem:[#allocation2 + $0x16c] ss:$20 sps:$4 sm:$0xff]   ;;  %v10884_v38 = vld [vmem:[#allocation2 + $0x168] ss:$20 sps:$4 sm:$0xff]  }
  0x8d   :  { %v10882_v37 = vld [vmem:[#allocation2 + $0x3ec] ss:$20 sps:$4 sm:$0xff]   ;;  %v10885_v39 = vld [vmem:[#allocation2 + $0x3e8] ss:$20 sps:$4 sm:$0xff]   ;;  %v10890_v42 = vld [vmem:[#allocation2 + $0x190] ss:$20 sps:$4 sm:$0xff]  }
  0x8e   :  { %2765 = vmatpush1.bf16.msra.mxu1 %v10848_v14  ;;  %v10886_v40 = vld [vmem:[#allocation2 + $0x194] ss:$20 sps:$4 sm:$0xff]   ;;  %v10891_v43 = vld [vmem:[#allocation2 + $0x410] ss:$20 sps:$4 sm:$0xff]   ;;  %v10896_v49 = vld [vmem:[#allocation2 + $0x1b8] ss:$20 sps:$4 sm:$0xff]  }
  0x8f   :  { %2806 = vmatpush1.bf16.msra.mxu0 %v10849_v15  ;;  %2766 = vmatprep.subr.bf16.mxu1 %v10850_v16  ;;  %v10888_v41 = vld [vmem:[#allocation2 + $0x414] ss:$20 sps:$4 sm:$0xff]   ;;  %v10892_v44 = vld [vmem:[#allocation2 + $0x1bc] ss:$20 sps:$4 sm:$0xff]   ;;  %v131_v46 = vld [vmem:[%s13145_s0] sm:$0xff]  ;;  %vm12690_vm0 = vmmov 0  }
  0x90   :  { %2807 = vmatprep.subr.bf16.mxu0 %v10852_v17  ;;  %v10894_v45 = vld [vmem:[#allocation2 + $0x43c] ss:$20 sps:$4 sm:$0xff]   ;;  %v12846_v47 = vcombine.high %v131_v46, %v131_v46  ;;  %v132_v48 = vld [vmem:[%s13145_s0 + $0x8] sm:$0xff]  ;;  %v10898_v52 = vld [vmem:[#allocation2 + $0x1e4] ss:$20 sps:$4 sm:$0xff]   ;;  %v12855_v6 = vcombine.low %v131_v46, %v131_v46  ;;  %s12691_s19 = smov [#allocation14]  }
  0x91   :  { %v10897_v50 = vld [vmem:[#allocation2 + $0x438] ss:$20 sps:$4 sm:$0xff]   ;;  %v12851_v51 = vcombine.high %v132_v48, %v132_v48  ;;  %v10902_v54 = vld [vmem:[#allocation2 + $0x1e0] ss:$20 sps:$4 sm:$0xff]   ;;  %v10908_v58 = vld [vmem:[#allocation2 + $0x208] ss:$20 sps:$4 sm:$0xff]   ;;  %v12857_v7 = vcombine.low %v132_v48, %v132_v48 }
  0x92   :  { %2767 = vmatpush1.bf16.msra.mxu1 %v10854_v18  ;;  %v10900_v53 = vld [vmem:[#allocation2 + $0x464] ss:$20 sps:$4 sm:$0xff]   ;;  %2790 = vmatprep.mubr.bf16.mxu1 %v12846_v47  ;;  %v10903_v55 = vld [vmem:[#allocation2 + $0x460] ss:$20 sps:$4 sm:$0xff]   ;;  %v10909_v59 = vld [vmem:[#allocation2 + $0x488] ss:$20 sps:$4 sm:$0xff]  }
  0x93   :  { %2808 = vmatpush1.bf16.msra.mxu0 %v10855_v19  ;;  %2768 = vmatprep.subr.bf16.mxu1 %v10856_v20  ;;  %v10904_v56 = vld [vmem:[#allocation2 + $0x20c] ss:$20 sps:$4 sm:$0xff]   ;;  %v10910_v60 = vld [vmem:[#allocation2 + $0x234] ss:$20 sps:$4 sm:$0xff]   ;;  %v10914_v62 = vld [vmem:[#allocation2 + $0x230] ss:$20 sps:$4 sm:$0xff]  }
  0x94   :  { %2809 = vmatprep.subr.bf16.mxu0 %v10858_v21  ;;  %2831 = vmatprep.mubr.bf16.mxu0 %v12851_v51  ;;  %v10906_v57 = vld [vmem:[#allocation2 + $0x48c] ss:$20 sps:$4 sm:$0xff]   ;;  %v10912_v61 = vld [vmem:[#allocation2 + $0x4b4] ss:$20 sps:$4 sm:$0xff]   ;;  %v10915_v63 = vld [vmem:[#allocation2 + $0x4b0] ss:$20 sps:$4 sm:$0xff]  }
  0x95   :  { %v10916_v0 = vld [vmem:[#allocation2 + $0x25c] ss:$20 sps:$4 sm:$0xff]   ;;  %v10920_v2 = vld [vmem:[#allocation2 + $0x258] ss:$20 sps:$4 sm:$0xff]   ;;  %v10925_v8 = vld [vmem:[#allocation2 + $0x500] ss:$20 sps:$4 sm:$0xff]  }
  0x96   :  { %2769 = vmatpush1.bf16.msra.mxu1 %v10860_v22  ;;  %v10918_v1 = vld [vmem:[#allocation2 + $0x4dc] ss:$20 sps:$4 sm:$0xff]   ;;  %v10921_v3 = vld [vmem:[#allocation2 + $0x4d8] ss:$20 sps:$4 sm:$0xff]   ;;  %v10937_v11 = vld [vmem:[#allocation2 + $0x34] ss:$20 sps:$4 sm:$0xff]  }
  0x97   :  { %2810 = vmatpush1.bf16.msra.mxu0 %v10861_v23  ;;  %2770 = vmatprep.subr.bf16.mxu1 %v10862_v24  ;;  %v10927_v4 = vld [vmem:[#allocation2 + $0x504] ss:$20 sps:$4 sm:$0xff]   ;;  %v10930_v5 = vld [vmem:[#allocation2 + $0xc] ss:$20 sps:$4 sm:$0xff]   ;;  %v10928_v9 = vld [vmem:[#allocation2 + $0x8] ss:$20 sps:$4 sm:$0xff]  }
  0x98   :  { %2811 = vmatprep.subr.bf16.mxu0 %v10864_v25  ;;  %v10934_v10 = vld [vmem:[#allocation2 + $0x52c] ss:$20 sps:$4 sm:$0xff]   ;;  %v10932_v12 = vld [vmem:[#allocation2 + $0x528] ss:$20 sps:$4 sm:$0xff]   ;;  %v10935_v13 = vld [vmem:[#allocation2 + $0x30] ss:$20 sps:$4 sm:$0xff]  }
  0x99   :  { %v10940_v14 = vld [vmem:[#allocation2 + $0x554] ss:$20 sps:$4 sm:$0xff]   ;;  %v10943_v15 = vld [vmem:[#allocation2 + $0x5c] ss:$20 sps:$4 sm:$0xff]   ;;  %v10941_v17 = vld [vmem:[#allocation2 + $0x58] ss:$20 sps:$4 sm:$0xff]  }
  0x9a   :  { %2771 = vmatpush1.bf16.msra.mxu1 %v10866_v26  ;;  %v10938_v16 = vld [vmem:[#allocation2 + $0x550] ss:$20 sps:$4 sm:$0xff]   ;;  %v10944_v20 = vld [vmem:[#allocation2 + $0x578] ss:$20 sps:$4 sm:$0xff]   ;;  %v10947_v21 = vld [vmem:[#allocation2 + $0x80] ss:$20 sps:$4 sm:$0xff]  }
  0x9b   :  { %2812 = vmatpush1.bf16.msra.mxu0 %v10867_v27  ;;  %2772 = vmatprep.subr.bf16.mxu1 %v10868_v28  ;;  %v10946_v18 = vld [vmem:[#allocation2 + $0x57c] ss:$20 sps:$4 sm:$0xff]   ;;  %v10949_v19 = vld [vmem:[#allocation2 + $0x84] ss:$20 sps:$4 sm:$0xff]   ;;  %v10955_v23 = vld [vmem:[#allocation2 + $0xac] ss:$20 sps:$4 sm:$0xff]  }
  0x9c   :  { %2813 = vmatprep.subr.bf16.mxu0 %v10870_v29  ;;  %v10952_v22 = vld [vmem:[#allocation2 + $0x5a4] ss:$20 sps:$4 sm:$0xff]   ;;  %v10950_v24 = vld [vmem:[#allocation2 + $0x5a0] ss:$20 sps:$4 sm:$0xff]   ;;  %v10953_v25 = vld [vmem:[#allocation2 + $0xa8] ss:$20 sps:$4 sm:$0xff]  }
  0x9d   :  { %v10958_v26 = vld [vmem:[#allocation2 + $0x5cc] ss:$20 sps:$4 sm:$0xff]   ;;  %v10961_v27 = vld [vmem:[#allocation2 + $0xd4] ss:$20 sps:$4 sm:$0xff]   ;;  %v10959_v29 = vld [vmem:[#allocation2 + $0xd0] ss:$20 sps:$4 sm:$0xff]  }
  0x9e   :  { %2773 = vmatpush1.bf16.msra.mxu1 %v10872_v30  ;;  %v10956_v28 = vld [vmem:[#allocation2 + $0x5c8] ss:$20 sps:$4 sm:$0xff]   ;;  %v10983_v48 = vld [vmem:[#allocation2 + $0x170] ss:$20 sps:$4 sm:$0xff]   ;;  %s9271_s21 = sshll.u32 %s12691_s19, 4  ;;  %s12692_s2 = smov [#allocation15]   ;;  %s9272_s21 = int_to_ptr.vmem [resolvable:$true] %s9271_s21 }
  0x9f   :  { %2814 = vmatpush1.bf16.msra.mxu0 %v10873_v31  ;;  %2774 = vmatprep.subr.bf16.mxu1 %v10874_v32  ;;  %v10964_v30 = vld [vmem:[#allocation2 + $0x5f4] ss:$20 sps:$4 sm:$0xff]   ;;  %v10967_v31 = vld [vmem:[#allocation2 + $0xfc] ss:$20 sps:$4 sm:$0xff]   ;;  %s9281_s20 = sshll.u32 %s12692_s2, 4  ;;  %s12617_s22 = scalar_lea.vmem %s9272_s21, 128  ;;  %s9282_s20 = int_to_ptr.vmem [resolvable:$true] %s9281_s20 }
  0xa0   :  { %2815 = vmatprep.subr.bf16.mxu0 %v10876_v33  ;;  %v12865_v32 = vld [vmem:[%s13145_s0 + $0x10] sm:$0xff]  ;;  %v10980_v46 = vld [vmem:[#allocation2 + $0x668] ss:$20 sps:$4 sm:$0xff]   ;;  %p12618_p0 = scmp.ne.s32.totalorder %s9272_s21, %s12617_s22  ;;  %p12622_p1 = scmp.lt.s32.totalorder %s9272_s21, %s9272_s21 }
  0xa1   :  { %v10962_v33 = vld [vmem:[#allocation2 + $0x5f0] ss:$20 sps:$4 sm:$0xff]   ;;  %p12623_p2 = scmp.lt.s32.totalorder %s12617_s22, %s12617_s22 }
  0xa2   :  { %2775 = vmatpush1.bf16.msra.mxu1 %v10878_v34  ;;  %v12869_v34 = vcombine.high %v12865_v32, %v12865_v32 }
  0xa3   :  { %2816 = vmatpush1.bf16.msra.mxu0 %v10879_v35  ;;  %2776 = vmatprep.subr.bf16.mxu1 %v10880_v36  ;;  %v10965_v35 = vld [vmem:[#allocation2 + $0xf8] ss:$20 sps:$4 sm:$0xff]   ;;  %v10970_v36 = vld [vmem:[#allocation2 + $0x61c] ss:$20 sps:$4 sm:$0xff]   ;;  %p12624_p3 = por %p12623_p2, %p12622_p1 }
  0xa4   :  { %2817 = vmatprep.subr.bf16.mxu0 %v10882_v37  ;;  %v10973_v37 = vld [vmem:[#allocation2 + $0x124] ss:$20 sps:$4 sm:$0xff]  }
  0xa5   :  { %p12625_p4 = pnand %p12624_p3, %p12618_p0 }
  0xa6   :  { %2777 = vmatpush1.bf16.msra.mxu1 %v10884_v38  ;;  %v10968_v38 = vld [vmem:[#allocation2 + $0x618] ss:$20 sps:$4 sm:$0xff]  }
  0xa7   :  { %2818 = vmatpush1.bf16.msra.mxu0 %v10885_v39  ;;  %2778 = vmatprep.subr.bf16.mxu1 %v10886_v40  ;;  %v10971_v39 = vld [vmem:[#allocation2 + $0x120] ss:$20 sps:$4 sm:$0xff]   ;;  %v10976_v40 = vld [vmem:[#allocation2 + $0x644] ss:$20 sps:$4 sm:$0xff]  }
  0xa8   :  { %2819 = vmatprep.subr.bf16.mxu0 %v10888_v41  ;;  %v10979_v41 = vld [vmem:[#allocation2 + $0x14c] ss:$20 sps:$4 sm:$0xff]  }
  0xaa   :  { %2779 = vmatpush1.bf16.msra.mxu1 %v10890_v42  ;;  %v10974_v42 = vld [vmem:[#allocation2 + $0x640] ss:$20 sps:$4 sm:$0xff]  }
  0xab   :  { %2820 = vmatpush1.bf16.msra.mxu0 %v10891_v43  ;;  %2780 = vmatprep.subr.bf16.mxu1 %v10892_v44  ;;  %v10977_v43 = vld [vmem:[#allocation2 + $0x148] ss:$20 sps:$4 sm:$0xff]   ;;  %v10982_v44 = vld [vmem:[#allocation2 + $0x66c] ss:$20 sps:$4 sm:$0xff]  }
  0xac   :  { %2821 = vmatprep.subr.bf16.mxu0 %v10894_v45  ;;  %v10985_v45 = vld [vmem:[#allocation2 + $0x174] ss:$20 sps:$4 sm:$0xff]  }
  0xae   :  { %2781 = vmatpush1.bf16.msra.mxu1 %v10896_v49  ;;  %v10988_v49 = vld [vmem:[#allocation2 + $0x694] ss:$20 sps:$4 sm:$0xff]  }
  0xaf   :  { %2822 = vmatpush1.bf16.msra.mxu0 %v10897_v50  ;;  %2782 = vmatprep.subr.bf16.mxu1 %v10898_v52  ;;  %v10991_v50 = vld [vmem:[#allocation2 + $0x19c] ss:$20 sps:$4 sm:$0xff]  }
  0xb0   :  { %2823 = vmatprep.subr.bf16.mxu0 %v10900_v53  ;;  %v10986_v52 = vld [vmem:[#allocation2 + $0x690] ss:$20 sps:$4 sm:$0xff]   ;;  %v10989_v53 = vld [vmem:[#allocation2 + $0x198] ss:$20 sps:$4 sm:$0xff]  }
  0xb2   :  { %2783 = vmatpush1.bf16.msra.mxu1 %v10902_v54  ;;  %v10994_v54 = vld [vmem:[#allocation2 + $0x6bc] ss:$20 sps:$4 sm:$0xff]  }
  0xb3   :  { %2824 = vmatpush1.bf16.msra.mxu0 %v10903_v55  ;;  %2784 = vmatprep.subr.bf16.mxu1 %v10904_v56  ;;  %v10997_v55 = vld [vmem:[#allocation2 + $0x1c4] ss:$20 sps:$4 sm:$0xff]  }
  0xb4   :  { %2825 = vmatprep.subr.bf16.mxu0 %v10906_v57  ;;  %v10992_v56 = vld [vmem:[#allocation2 + $0x6b8] ss:$20 sps:$4 sm:$0xff]   ;;  %v10995_v57 = vld [vmem:[#allocation2 + $0x1c0] ss:$20 sps:$4 sm:$0xff]  }
  0xb6   :  { %2785 = vmatpush1.bf16.msra.mxu1 %v10908_v58  ;;  %v11000_v58 = vld [vmem:[#allocation2 + $0x6e4] ss:$20 sps:$4 sm:$0xff]  }
  0xb7   :  { %2826 = vmatpush1.bf16.msra.mxu0 %v10909_v59  ;;  %2786 = vmatprep.subr.bf16.mxu1 %v10910_v60  ;;  %v11003_v59 = vld [vmem:[#allocation2 + $0x1ec] ss:$20 sps:$4 sm:$0xff]  }
  0xb8   :  { %2827 = vmatprep.subr.bf16.mxu0 %v10912_v61  ;;  %v10998_v60 = vld [vmem:[#allocation2 + $0x6e0] ss:$20 sps:$4 sm:$0xff]   ;;  %v11001_v61 = vld [vmem:[#allocation2 + $0x1e8] ss:$20 sps:$4 sm:$0xff]  }
  0xba   :  { %2787 = vmatpush1.bf16.msra.mxu1 %v10914_v62  ;;  %v11006_v62 = vld [vmem:[#allocation2 + $0x70c] ss:$20 sps:$4 sm:$0xff]  }
  0xbb   :  { %2828 = vmatpush1.bf16.msra.mxu0 %v10915_v63  ;;  %2788 = vmatprep.subr.bf16.mxu1 %v10916_v0  ;;  %v11009_v63 = vld [vmem:[#allocation2 + $0x214] ss:$20 sps:$4 sm:$0xff]  }
  0xbc   :  { %2829 = vmatprep.subr.bf16.mxu0 %v10918_v1  ;;  %v11004_v0 = vld [vmem:[#allocation2 + $0x708] ss:$20 sps:$4 sm:$0xff]   ;;  %v11007_v1 = vld [vmem:[#allocation2 + $0x210] ss:$20 sps:$4 sm:$0xff]  }
  0xbe   :  { %2789 = vmatpush1.bf16.msra.mxu1 %v10920_v2  ;;  %v11012_v2 = vld [vmem:[#allocation2 + $0x734] ss:$20 sps:$4 sm:$0xff]  }
  0xbf   :  { %2830 = vmatpush1.bf16.msra.mxu0 %v10921_v3  ;;  %2963 = vmatprep.subr.bf16.mxu1 %v10930_v5  ;;  %v11015_v3 = vld [vmem:[#allocation2 + $0x23c] ss:$20 sps:$4 sm:$0xff]   ;;  %v11013_v5 = vld [vmem:[#allocation2 + $0x238] ss:$20 sps:$4 sm:$0xff]  }
  0xc0   :  { %2840 = vmatprep.subr.bf16.mxu0 %v10927_v4  ;;  %v11010_v4 = vld [vmem:[#allocation2 + $0x730] ss:$20 sps:$4 sm:$0xff]  }
  0xc1   :  { %2791 = vmatmul.mubr.bf16.vlgmr.msra.gmra.mrb[0].mxu1 %v12855_v6 }
  0xc2   :  { %2832 = vmatmul.mubr.bf16.vlgmr.msra.gmra.mrb[0].mxu0 %v12857_v7  ;;  %2964 = vmatpush1.bf16.msra.mxu1 %v10928_v9  ;;  %v11021_v9 = vld [vmem:[#allocation2 + $0x264] ss:$20 sps:$4 sm:$0xff]  }
  0xc3   :  { %2841 = vmatpush1.bf16.msra.mxu0 %v10925_v8  ;;  %2965 = vmatprep.subr.bf16.mxu1 %v10937_v11  ;;  %v11018_v8 = vld [vmem:[#allocation2 + $0x75c] ss:$20 sps:$4 sm:$0xff]   ;;  %v11019_v11 = vld [vmem:[#allocation2 + $0x260] ss:$20 sps:$4 sm:$0xff]  }
  0xc4   :  { %2842 = vmatprep.subr.bf16.mxu0 %v10934_v10  ;;  %2995 = vmatprep.mubr.bf16.mxu1 %v12846_v47  ;;  %v11016_v10 = vld [vmem:[#allocation2 + $0x758] ss:$20 sps:$4 sm:$0xff]  }
  0xc5   :  { %2872 = vmatprep.mubr.bf16.mxu0 %v12869_v34 }
  0xc6   :  { %2966 = vmatpush1.bf16.msra.mxu1 %v10935_v13  ;;  %v11029_v13 = vld [vmem:[#allocation2 + $0x28c] ss:$20 sps:$4 sm:$0xff]  }
  0xc7   :  { %2843 = vmatpush1.bf16.msra.mxu0 %v10932_v12  ;;  %2967 = vmatprep.subr.bf16.mxu1 %v10943_v15  ;;  %v11026_v12 = vld [vmem:[#allocation2 + $0x784] ss:$20 sps:$4 sm:$0xff]   ;;  %v11024_v15 = vld [vmem:[#allocation2 + $0x780] ss:$20 sps:$4 sm:$0xff]  }
  0xc8   :  { %2844 = vmatprep.subr.bf16.mxu0 %v10940_v14  ;;  %v12874_v14 = vcombine.low %v12865_v32, %v12865_v32  ;;  %v11053_v32 = vld [vmem:[#allocation2 + $0x32c] ss:$20 sps:$4 sm:$0xff]  }
  0xca   :  { %2968 = vmatpush1.bf16.msra.mxu1 %v10941_v17  ;;  %v11032_v17 = vld [vmem:[#allocation2 + $0x7ac] ss:$20 sps:$4 sm:$0xff]  }
  0xcb   :  { %2845 = vmatpush1.bf16.msra.mxu0 %v10938_v16  ;;  %2969 = vmatprep.subr.bf16.mxu1 %v10949_v19  ;;  %v11027_v16 = vld [vmem:[#allocation2 + $0x288] ss:$20 sps:$4 sm:$0xff]  }
  0xcc   :  { %2846 = vmatprep.subr.bf16.mxu0 %v10946_v18  ;;  %v11035_v18 = vld [vmem:[#allocation2 + $0x2b4] ss:$20 sps:$4 sm:$0xff]   ;;  %v12879_v19 = vld [vmem:[%s13145_s0 + $0x18] sm:$0xff] }
  0xce   :  { %2970 = vmatpush1.bf16.msra.mxu1 %v10947_v21  ;;  %v11030_v21 = vld [vmem:[#allocation2 + $0x7a8] ss:$20 sps:$4 sm:$0xff]  }
  0xcf   :  { %2847 = vmatpush1.bf16.msra.mxu0 %v10944_v20  ;;  %2971 = vmatprep.subr.bf16.mxu1 %v10955_v23  ;;  %v12883_v20 = vcombine.high %v12879_v19, %v12879_v19  ;;  %v11038_v23 = vld [vmem:[#allocation2 + $0x7d4] ss:$20 sps:$4 sm:$0xff]  }
  0xd0   :  { %2848 = vmatprep.subr.bf16.mxu0 %v10952_v22  ;;  %v11033_v22 = vld [vmem:[#allocation2 + $0x2b0] ss:$20 sps:$4 sm:$0xff]  }
  0xd2   :  { %2972 = vmatpush1.bf16.msra.mxu1 %v10953_v25  ;;  %v11036_v25 = vld [vmem:[#allocation2 + $0x7d0] ss:$20 sps:$4 sm:$0xff]  }
  0xd3   :  { %2849 = vmatpush1.bf16.msra.mxu0 %v10950_v24  ;;  %2973 = vmatprep.subr.bf16.mxu1 %v10961_v27  ;;  %v11041_v24 = vld [vmem:[#allocation2 + $0x2dc] ss:$20 sps:$4 sm:$0xff]  }
  0xd4   :  { %2850 = vmatprep.subr.bf16.mxu0 %v10958_v26  ;;  %v11039_v26 = vld [vmem:[#allocation2 + $0x2d8] ss:$20 sps:$4 sm:$0xff]   ;;  %v11044_v27 = vld [vmem:[#allocation2 + $0x7fc] ss:$20 sps:$4 sm:$0xff]  }
  0xd6   :  { %2974 = vmatpush1.bf16.msra.mxu1 %v10959_v29  ;;  %v11042_v29 = vld [vmem:[#allocation2 + $0x7f8] ss:$20 sps:$4 sm:$0xff]  }
  0xd7   :  { %2851 = vmatpush1.bf16.msra.mxu0 %v10956_v28  ;;  %2975 = vmatprep.subr.bf16.mxu1 %v10967_v31  ;;  %v11047_v28 = vld [vmem:[#allocation2 + $0x304] ss:$20 sps:$4 sm:$0xff]  }
  0xd8   :  { %2852 = vmatprep.subr.bf16.mxu0 %v10964_v30  ;;  %v11045_v30 = vld [vmem:[#allocation2 + $0x300] ss:$20 sps:$4 sm:$0xff]   ;;  %v11050_v31 = vld [vmem:[#allocation2 + $0x824] ss:$20 sps:$4 sm:$0xff]  }
  0xda   :  { %2976 = vmatpush1.bf16.msra.mxu1 %v10965_v35  ;;  %v11051_v35 = vld [vmem:[#allocation2 + $0x328] ss:$20 sps:$4 sm:$0xff]  }
  0xdb   :  { %2853 = vmatpush1.bf16.msra.mxu0 %v10962_v33  ;;  %2977 = vmatprep.subr.bf16.mxu1 %v10973_v37  ;;  %v11048_v33 = vld [vmem:[#allocation2 + $0x820] ss:$20 sps:$4 sm:$0xff]  }
  0xdc   :  { %2854 = vmatprep.subr.bf16.mxu0 %v10970_v36  ;;  %v11056_v36 = vld [vmem:[#allocation2 + $0x84c] ss:$20 sps:$4 sm:$0xff]   ;;  %v11059_v37 = vld [vmem:[#allocation2 + $0x354] ss:$20 sps:$4 sm:$0xff]  }
  0xde   :  { %2978 = vmatpush1.bf16.msra.mxu1 %v10971_v39  ;;  %v11057_v39 = vld [vmem:[#allocation2 + $0x350] ss:$20 sps:$4 sm:$0xff]  }
  0xdf   :  { %2855 = vmatpush1.bf16.msra.mxu0 %v10968_v38  ;;  %2979 = vmatprep.subr.bf16.mxu1 %v10979_v41  ;;  %v11054_v38 = vld [vmem:[#allocation2 + $0x848] ss:$20 sps:$4 sm:$0xff]  }
  0xe0   :  { %2856 = vmatprep.subr.bf16.mxu0 %v10976_v40  ;;  %v11062_v40 = vld [vmem:[#allocation2 + $0x874] ss:$20 sps:$4 sm:$0xff]   ;;  %v11065_v41 = vld [vmem:[#allocation2 + $0x37c] ss:$20 sps:$4 sm:$0xff]  }
  0xe2   :  { %2980 = vmatpush1.bf16.msra.mxu1 %v10977_v43  ;;  %v11063_v43 = vld [vmem:[#allocation2 + $0x378] ss:$20 sps:$4 sm:$0xff]  }
  0xe3   :  { %2857 = vmatpush1.bf16.msra.mxu0 %v10974_v42  ;;  %2981 = vmatprep.subr.bf16.mxu1 %v10985_v45  ;;  %v11060_v42 = vld [vmem:[#allocation2 + $0x870] ss:$20 sps:$4 sm:$0xff]  }
  0xe4   :  { %2858 = vmatprep.subr.bf16.mxu0 %v10982_v44  ;;  %v11068_v44 = vld [vmem:[#allocation2 + $0x89c] ss:$20 sps:$4 sm:$0xff]   ;;  %v11071_v45 = vld [vmem:[#allocation2 + $0x3a4] ss:$20 sps:$4 sm:$0xff]  }
  0xe6   :  { %2982 = vmatpush1.bf16.msra.mxu1 %v10983_v48  ;;  %v11069_v48 = vld [vmem:[#allocation2 + $0x3a0] ss:$20 sps:$4 sm:$0xff]  }
  0xe7   :  { %2859 = vmatpush1.bf16.msra.mxu0 %v10980_v46  ;;  %2983 = vmatprep.subr.bf16.mxu1 %v10991_v50  ;;  %v11066_v46 = vld [vmem:[#allocation2 + $0x898] ss:$20 sps:$4 sm:$0xff]  }
  0xe8   :  { %2860 = vmatprep.subr.bf16.mxu0 %v10988_v49  ;;  %v11074_v49 = vld [vmem:[#allocation2 + $0x8c4] ss:$20 sps:$4 sm:$0xff]   ;;  %v11077_v50 = vld [vmem:[#allocation2 + $0x3cc] ss:$20 sps:$4 sm:$0xff]  }
  0xea   :  { %2984 = vmatpush1.bf16.msra.mxu1 %v10989_v53  ;;  %v11075_v53 = vld [vmem:[#allocation2 + $0x3c8] ss:$20 sps:$4 sm:$0xff]  }
  0xeb   :  { %2861 = vmatpush1.bf16.msra.mxu0 %v10986_v52  ;;  %2985 = vmatprep.subr.bf16.mxu1 %v10997_v55  ;;  %v11072_v52 = vld [vmem:[#allocation2 + $0x8c0] ss:$20 sps:$4 sm:$0xff]  }
  0xec   :  { %2862 = vmatprep.subr.bf16.mxu0 %v10994_v54  ;;  %v11080_v54 = vld [vmem:[#allocation2 + $0x8ec] ss:$20 sps:$4 sm:$0xff]   ;;  %v11083_v55 = vld [vmem:[#allocation2 + $0x3f4] ss:$20 sps:$4 sm:$0xff]  }
  0xee   :  { %2986 = vmatpush1.bf16.msra.mxu1 %v10995_v57  ;;  %v11081_v57 = vld [vmem:[#allocation2 + $0x3f0] ss:$20 sps:$4 sm:$0xff]  }
  0xef   :  { %2863 = vmatpush1.bf16.msra.mxu0 %v10992_v56  ;;  %2987 = vmatprep.subr.bf16.mxu1 %v11003_v59  ;;  %v11078_v56 = vld [vmem:[#allocation2 + $0x8e8] ss:$20 sps:$4 sm:$0xff]  }
  0xf0   :  { %2864 = vmatprep.subr.bf16.mxu0 %v11000_v58  ;;  %v11086_v58 = vld [vmem:[#allocation2 + $0x914] ss:$20 sps:$4 sm:$0xff]   ;;  %v11089_v59 = vld [vmem:[#allocation2 + $0x41c] ss:$20 sps:$4 sm:$0xff]  }
  0xf2   :  { %2988 = vmatpush1.bf16.msra.mxu1 %v11001_v61  ;;  %v11087_v61 = vld [vmem:[#allocation2 + $0x418] ss:$20 sps:$4 sm:$0xff]  }
  0xf3   :  { %2865 = vmatpush1.bf16.msra.mxu0 %v10998_v60  ;;  %2989 = vmatprep.subr.bf16.mxu1 %v11009_v63  ;;  %v11084_v60 = vld [vmem:[#allocation2 + $0x910] ss:$20 sps:$4 sm:$0xff]  }
  0xf4   :  { %2866 = vmatprep.subr.bf16.mxu0 %v11006_v62  ;;  %v11092_v62 = vld [vmem:[#allocation2 + $0x93c] ss:$20 sps:$4 sm:$0xff]   ;;  %v11095_v63 = vld [vmem:[#allocation2 + $0x444] ss:$20 sps:$4 sm:$0xff]  }
  0xf6   :  { %2990 = vmatpush1.bf16.msra.mxu1 %v11007_v1  ;;  %v11093_v1 = vld [vmem:[#allocation2 + $0x440] ss:$20 sps:$4 sm:$0xff]  }
  0xf7   :  { %2867 = vmatpush1.bf16.msra.mxu0 %v11004_v0  ;;  %2991 = vmatprep.subr.bf16.mxu1 %v11015_v3  ;;  %v11090_v0 = vld [vmem:[#allocation2 + $0x938] ss:$20 sps:$4 sm:$0xff]  }
  0xf8   :  { %2868 = vmatprep.subr.bf16.mxu0 %v11012_v2  ;;  %v11098_v2 = vld [vmem:[#allocation2 + $0x964] ss:$20 sps:$4 sm:$0xff]   ;;  %v11101_v3 = vld [vmem:[#allocation2 + $0x46c] ss:$20 sps:$4 sm:$0xff]  }
  0xfa   :  { %2992 = vmatpush1.bf16.msra.mxu1 %v11013_v5  ;;  %v11099_v5 = vld [vmem:[#allocation2 + $0x468] ss:$20 sps:$4 sm:$0xff]  }
  0xfb   :  { %2869 = vmatpush1.bf16.msra.mxu0 %v11010_v4  ;;  %2993 = vmatprep.subr.bf16.mxu1 %v11021_v9  ;;  %v11096_v4 = vld [vmem:[#allocation2 + $0x960] ss:$20 sps:$4 sm:$0xff]  }
  0xfc   :  { %2870 = vmatprep.subr.bf16.mxu0 %v11018_v8  ;;  %v11104_v8 = vld [vmem:[#allocation2 + $0x98c] ss:$20 sps:$4 sm:$0xff]   ;;  %v11107_v9 = vld [vmem:[#allocation2 + $0x494] ss:$20 sps:$4 sm:$0xff]  }
  0xfe   :  { %2994 = vmatpush1.bf16.msra.mxu1 %v11019_v11  ;;  %v11105_v11 = vld [vmem:[#allocation2 + $0x490] ss:$20 sps:$4 sm:$0xff]  }
  0xff   :  { %2871 = vmatpush1.bf16.msra.mxu0 %v11016_v10  ;;  %3004 = vmatprep.subr.bf16.mxu1 %v11029_v13  ;;  %v11102_v10 = vld [vmem:[#allocation2 + $0x988] ss:$20 sps:$4 sm:$0xff]  }
 0x100   :  { %2881 = vmatprep.subr.bf16.mxu0 %v11026_v12  ;;  %v11110_v12 = vld [vmem:[#allocation2 + $0x9b4] ss:$20 sps:$4 sm:$0xff]   ;;  %v11113_v13 = vld [vmem:[#allocation2 + $0x4bc] ss:$20 sps:$4 sm:$0xff]  }
 0x101   :  { %2996 = vmatmul.mubr.bf16.vlgmr.msra.gmra.mrb[4].mxu1 %v12855_v6 }
 0x102   :  { %2873 = vmatmul.mubr.bf16.vlgmr.msra.gmra.mrb[0].mxu0 %v12874_v14  ;;  %3005 = vmatpush1.bf16.msra.mxu1 %v11027_v16  ;;  %v11111_v16 = vld [vmem:[#allocation2 + $0x4b8] ss:$20 sps:$4 sm:$0xff]  }
 0x103   :  { %2882 = vmatpush1.bf16.msra.mxu0 %v11024_v15  ;;  %3006 = vmatprep.subr.bf16.mxu1 %v11035_v18  ;;  %v11108_v15 = vld [vmem:[#allocation2 + $0x9b0] ss:$20 sps:$4 sm:$0xff]  }
 0x104   :  { %2883 = vmatprep.subr.bf16.mxu0 %v11032_v17  ;;  %2913 = vmatprep.mubr.bf16.mxu0 %v12883_v20  ;;  %v11116_v17 = vld [vmem:[#allocation2 + $0x9dc] ss:$20 sps:$4 sm:$0xff]   ;;  %v11119_v18 = vld [vmem:[#allocation2 + $0x4e4] ss:$20 sps:$4 sm:$0xff]  }
 0x105   :  { %3036 = vmatprep.mubr.bf16.mxu1 %v12851_v51 }
 0x106   :  { %3007 = vmatpush1.bf16.msra.mxu1 %v11033_v22  ;;  %v11117_v22 = vld [vmem:[#allocation2 + $0x4e0] ss:$20 sps:$4 sm:$0xff]  }
 0x107   :  { %2884 = vmatpush1.bf16.msra.mxu0 %v11030_v21  ;;  %3008 = vmatprep.subr.bf16.mxu1 %v11041_v24  ;;  %v11114_v21 = vld [vmem:[#allocation2 + $0x9d8] ss:$20 sps:$4 sm:$0xff]  }
 0x108   :  { %2885 = vmatprep.subr.bf16.mxu0 %v11038_v23  ;;  %v11124_v23 = vld [vmem:[#allocation2 + $0xa04] ss:$20 sps:$4 sm:$0xff]   ;;  %v11127_v24 = vld [vmem:[#allocation2 + $0x50c] ss:$20 sps:$4 sm:$0xff]  }
 0x10a   :  { %3009 = vmatpush1.bf16.msra.mxu1 %v11039_v26  ;;  %v12896_v26 = vld [vmem:[%s13145_s0 + $0x20] sm:$0xff] }
 0x10b   :  { %2886 = vmatpush1.bf16.msra.mxu0 %v11036_v25  ;;  %3010 = vmatprep.subr.bf16.mxu1 %v11047_v28  ;;  %v12891_v25 = vcombine.low %v12879_v19, %v12879_v19  ;;  %v11125_v28 = vld [vmem:[#allocation2 + $0x508] ss:$20 sps:$4 sm:$0xff]   ;;  %v11131_v19 = vld [vmem:[#allocation2 + $0x530] ss:$20 sps:$4 sm:$0xff]  }
 0x10c   :  { %2887 = vmatprep.subr.bf16.mxu0 %v11044_v27  ;;  %v11122_v27 = vld [vmem:[#allocation2 + $0xa00] ss:$20 sps:$4 sm:$0xff]  }
 0x10e   :  { %3011 = vmatpush1.bf16.msra.mxu1 %v11045_v30  ;;  %v11133_v30 = vld [vmem:[#allocation2 + $0x534] ss:$20 sps:$4 sm:$0xff]  }
 0x10f   :  { %2888 = vmatpush1.bf16.msra.mxu0 %v11042_v29  ;;  %3012 = vmatprep.subr.bf16.mxu1 %v11053_v32  ;;  %v11130_v29 = vld [vmem:[#allocation2 + $0xa2c] ss:$20 sps:$4 sm:$0xff]   ;;  %v12900_v32 = vcombine.high %v12896_v26, %v12896_v26 }
 0x110   :  { %2889 = vmatprep.subr.bf16.mxu0 %v11050_v31  ;;  %v11128_v31 = vld [vmem:[#allocation2 + $0xa28] ss:$20 sps:$4 sm:$0xff]  }
 0x112   :  { %3013 = vmatpush1.bf16.msra.mxu1 %v11051_v35  ;;  %v11139_v35 = vld [vmem:[#allocation2 + $0x55c] ss:$20 sps:$4 sm:$0xff]  }
 0x113   :  { %2890 = vmatpush1.bf16.msra.mxu0 %v11048_v33  ;;  %3014 = vmatprep.subr.bf16.mxu1 %v11059_v37  ;;  %v11136_v33 = vld [vmem:[#allocation2 + $0xa54] ss:$20 sps:$4 sm:$0xff]   ;;  %v11137_v37 = vld [vmem:[#allocation2 + $0x558] ss:$20 sps:$4 sm:$0xff]  }
 0x114   :  { %2891 = vmatprep.subr.bf16.mxu0 %v11056_v36  ;;  %v11134_v36 = vld [vmem:[#allocation2 + $0xa50] ss:$20 sps:$4 sm:$0xff]  }
 0x116   :  { %3015 = vmatpush1.bf16.msra.mxu1 %v11057_v39  ;;  %v11145_v39 = vld [vmem:[#allocation2 + $0x584] ss:$20 sps:$4 sm:$0xff]  }
 0x117   :  { %2892 = vmatpush1.bf16.msra.mxu0 %v11054_v38  ;;  %3016 = vmatprep.subr.bf16.mxu1 %v11065_v41  ;;  %v11142_v38 = vld [vmem:[#allocation2 + $0xa7c] ss:$20 sps:$4 sm:$0xff]   ;;  %v11143_v41 = vld [vmem:[#allocation2 + $0x580] ss:$20 sps:$4 sm:$0xff]  }
 0x118   :  { %2893 = vmatprep.subr.bf16.mxu0 %v11062_v40  ;;  %v11140_v40 = vld [vmem:[#allocation2 + $0xa78] ss:$20 sps:$4 sm:$0xff]  }
 0x11a   :  { %3017 = vmatpush1.bf16.msra.mxu1 %v11063_v43  ;;  %v11151_v43 = vld [vmem:[#allocation2 + $0x5ac] ss:$20 sps:$4 sm:$0xff]  }
 0x11b   :  { %2894 = vmatpush1.bf16.msra.mxu0 %v11060_v42  ;;  %3018 = vmatprep.subr.bf16.mxu1 %v11071_v45  ;;  %v11148_v42 = vld [vmem:[#allocation2 + $0xaa4] ss:$20 sps:$4 sm:$0xff]   ;;  %v11149_v45 = vld [vmem:[#allocation2 + $0x5a8] ss:$20 sps:$4 sm:$0xff]  }
 0x11c   :  { %2895 = vmatprep.subr.bf16.mxu0 %v11068_v44  ;;  %v11146_v44 = vld [vmem:[#allocation2 + $0xaa0] ss:$20 sps:$4 sm:$0xff]  }
 0x11e   :  { %3019 = vmatpush1.bf16.msra.mxu1 %v11069_v48  ;;  %v11157_v48 = vld [vmem:[#allocation2 + $0x5d4] ss:$20 sps:$4 sm:$0xff]  }
 0x11f   :  { %2896 = vmatpush1.bf16.msra.mxu0 %v11066_v46  ;;  %3020 = vmatprep.subr.bf16.mxu1 %v11077_v50  ;;  %v11154_v46 = vld [vmem:[#allocation2 + $0xacc] ss:$20 sps:$4 sm:$0xff]   ;;  %v11155_v50 = vld [vmem:[#allocation2 + $0x5d0] ss:$20 sps:$4 sm:$0xff]  }
 0x120   :  { %2897 = vmatprep.subr.bf16.mxu0 %v11074_v49  ;;  %v11152_v49 = vld [vmem:[#allocation2 + $0xac8] ss:$20 sps:$4 sm:$0xff]  }
 0x122   :  { %3021 = vmatpush1.bf16.msra.mxu1 %v11075_v53  ;;  %v11163_v53 = vld [vmem:[#allocation2 + $0x5fc] ss:$20 sps:$4 sm:$0xff]  }
 0x123   :  { %2898 = vmatpush1.bf16.msra.mxu0 %v11072_v52  ;;  %3022 = vmatprep.subr.bf16.mxu1 %v11083_v55  ;;  %v11160_v52 = vld [vmem:[#allocation2 + $0xaf4] ss:$20 sps:$4 sm:$0xff]   ;;  %v11161_v55 = vld [vmem:[#allocation2 + $0x5f8] ss:$20 sps:$4 sm:$0xff]  }
 0x124   :  { %2899 = vmatprep.subr.bf16.mxu0 %v11080_v54  ;;  %v11158_v54 = vld [vmem:[#allocation2 + $0xaf0] ss:$20 sps:$4 sm:$0xff]  }
 0x126   :  { %3023 = vmatpush1.bf16.msra.mxu1 %v11081_v57  ;;  %v11169_v57 = vld [vmem:[#allocation2 + $0x624] ss:$20 sps:$4 sm:$0xff]  }
 0x127   :  { %2900 = vmatpush1.bf16.msra.mxu0 %v11078_v56  ;;  %3024 = vmatprep.subr.bf16.mxu1 %v11089_v59  ;;  %v11166_v56 = vld [vmem:[#allocation2 + $0xb1c] ss:$20 sps:$4 sm:$0xff]   ;;  %v11167_v59 = vld [vmem:[#allocation2 + $0x620] ss:$20 sps:$4 sm:$0xff]  }
 0x128   :  { %2901 = vmatprep.subr.bf16.mxu0 %v11086_v58  ;;  %v11164_v58 = vld [vmem:[#allocation2 + $0xb18] ss:$20 sps:$4 sm:$0xff]  }
 0x12a   :  { %3025 = vmatpush1.bf16.msra.mxu1 %v11087_v61  ;;  %v11175_v61 = vld [vmem:[#allocation2 + $0x64c] ss:$20 sps:$4 sm:$0xff]  }
 0x12b   :  { %2902 = vmatpush1.bf16.msra.mxu0 %v11084_v60  ;;  %3026 = vmatprep.subr.bf16.mxu1 %v11095_v63  ;;  %v11172_v60 = vld [vmem:[#allocation2 + $0xb44] ss:$20 sps:$4 sm:$0xff]   ;;  %v11173_v63 = vld [vmem:[#allocation2 + $0x648] ss:$20 sps:$4 sm:$0xff]  }
 0x12c   :  { %2903 = vmatprep.subr.bf16.mxu0 %v11092_v62  ;;  %v11170_v62 = vld [vmem:[#allocation2 + $0xb40] ss:$20 sps:$4 sm:$0xff]  }
 0x12e   :  { %3027 = vmatpush1.bf16.msra.mxu1 %v11093_v1  ;;  %v11181_v1 = vld [vmem:[#allocation2 + $0x674] ss:$20 sps:$4 sm:$0xff]  }
 0x12f   :  { %2904 = vmatpush1.bf16.msra.mxu0 %v11090_v0  ;;  %3028 = vmatprep.subr.bf16.mxu1 %v11101_v3  ;;  %v11178_v0 = vld [vmem:[#allocation2 + $0xb6c] ss:$20 sps:$4 sm:$0xff]   ;;  %v11179_v3 = vld [vmem:[#allocation2 + $0x670] ss:$20 sps:$4 sm:$0xff]  }
 0x130   :  { %2905 = vmatprep.subr.bf16.mxu0 %v11098_v2  ;;  %v11176_v2 = vld [vmem:[#allocation2 + $0xb68] ss:$20 sps:$4 sm:$0xff]  }
 0x132   :  { %3029 = vmatpush1.bf16.msra.mxu1 %v11099_v5  ;;  %v11187_v5 = vld [vmem:[#allocation2 + $0x69c] ss:$20 sps:$4 sm:$0xff]  }
 0x133   :  { %2906 = vmatpush1.bf16.msra.mxu0 %v11096_v4  ;;  %3030 = vmatprep.subr.bf16.mxu1 %v11107_v9  ;;  %v11184_v4 = vld [vmem:[#allocation2 + $0xb94] ss:$20 sps:$4 sm:$0xff]   ;;  %v11185_v9 = vld [vmem:[#allocation2 + $0x698] ss:$20 sps:$4 sm:$0xff]  }
 0x134   :  { %2907 = vmatprep.subr.bf16.mxu0 %v11104_v8  ;;  %v11182_v8 = vld [vmem:[#allocation2 + $0xb90] ss:$20 sps:$4 sm:$0xff]  }
 0x136   :  { %3031 = vmatpush1.bf16.msra.mxu1 %v11105_v11  ;;  %v11193_v11 = vld [vmem:[#allocation2 + $0x6c4] ss:$20 sps:$4 sm:$0xff]  }
 0x137   :  { %2908 = vmatpush1.bf16.msra.mxu0 %v11102_v10  ;;  %3032 = vmatprep.subr.bf16.mxu1 %v11113_v13  ;;  %v11190_v10 = vld [vmem:[#allocation2 + $0xbbc] ss:$20 sps:$4 sm:$0xff]   ;;  %v11191_v13 = vld [vmem:[#allocation2 + $0x6c0] ss:$20 sps:$4 sm:$0xff]  }
 0x138   :  { %2909 = vmatprep.subr.bf16.mxu0 %v11110_v12  ;;  %v11188_v12 = vld [vmem:[#allocation2 + $0xbb8] ss:$20 sps:$4 sm:$0xff]  }
 0x13a   :  { %3033 = vmatpush1.bf16.msra.mxu1 %v11111_v16  ;;  %v11199_v16 = vld [vmem:[#allocation2 + $0x6ec] ss:$20 sps:$4 sm:$0xff]  }
 0x13b   :  { %2910 = vmatpush1.bf16.msra.mxu0 %v11108_v15  ;;  %3034 = vmatprep.subr.bf16.mxu1 %v11119_v18  ;;  %v11196_v15 = vld [vmem:[#allocation2 + $0xbe4] ss:$20 sps:$4 sm:$0xff]   ;;  %v11197_v18 = vld [vmem:[#allocation2 + $0x6e8] ss:$20 sps:$4 sm:$0xff]  }
 0x13c   :  { %2911 = vmatprep.subr.bf16.mxu0 %v11116_v17  ;;  %v11194_v17 = vld [vmem:[#allocation2 + $0xbe0] ss:$20 sps:$4 sm:$0xff]  }
 0x13e   :  { %3035 = vmatpush1.bf16.msra.mxu1 %v11117_v22  ;;  %v11205_v22 = vld [vmem:[#allocation2 + $0x714] ss:$20 sps:$4 sm:$0xff]  }
 0x13f   :  { %2912 = vmatpush1.bf16.msra.mxu0 %v11114_v21  ;;  %3045 = vmatprep.subr.bf16.mxu1 %v11127_v24  ;;  %v11202_v21 = vld [vmem:[#allocation2 + $0xc0c] ss:$20 sps:$4 sm:$0xff]   ;;  %v11203_v24 = vld [vmem:[#allocation2 + $0x710] ss:$20 sps:$4 sm:$0xff]  }
 0x140   :  { %2922 = vmatprep.subr.bf16.mxu0 %v11124_v23  ;;  %v11200_v23 = vld [vmem:[#allocation2 + $0xc08] ss:$20 sps:$4 sm:$0xff]  }
 0x141   :  { %3037 = vmatmul.mubr.bf16.vlgmr.msra.gmra.mrb[4].mxu1 %v12857_v7 }
 0x142   :  { %2914 = vmatmul.mubr.bf16.vlgmr.msra.gmra.mrb[0].mxu0 %v12891_v25  ;;  %3046 = vmatpush1.bf16.msra.mxu1 %v11125_v28  ;;  %v11211_v28 = vld [vmem:[#allocation2 + $0x73c] ss:$20 sps:$4 sm:$0xff]  }
 0x143   :  { %2923 = vmatpush1.bf16.msra.mxu0 %v11122_v27  ;;  %3047 = vmatprep.subr.bf16.mxu1 %v11133_v30  ;;  %v11208_v27 = vld [vmem:[#allocation2 + $0xc34] ss:$20 sps:$4 sm:$0xff]   ;;  %v11209_v30 = vld [vmem:[#allocation2 + $0x738] ss:$20 sps:$4 sm:$0xff]  }
 0x144   :  { %2924 = vmatprep.subr.bf16.mxu0 %v11130_v29  ;;  %2954 = vmatprep.mubr.bf16.mxu0 %v12900_v32  ;;  %v11206_v29 = vld [vmem:[#allocation2 + $0xc30] ss:$20 sps:$4 sm:$0xff]  }
 0x145   :  { %3077 = vmatprep.mubr.bf16.mxu1 %v12869_v34 }
 0x146   :  { %3048 = vmatpush1.bf16.msra.mxu1 %v11131_v19  ;;  %v11217_v19 = vld [vmem:[#allocation2 + $0x764] ss:$20 sps:$4 sm:$0xff]  }
 0x147   :  { %2925 = vmatpush1.bf16.msra.mxu0 %v11128_v31  ;;  %3049 = vmatprep.subr.bf16.mxu1 %v11139_v35  ;;  %v11214_v31 = vld [vmem:[#allocation2 + $0xc5c] ss:$20 sps:$4 sm:$0xff]   ;;  %v11215_v35 = vld [vmem:[#allocation2 + $0x760] ss:$20 sps:$4 sm:$0xff]  }
 0x148   :  { %2926 = vmatprep.subr.bf16.mxu0 %v11136_v33  ;;  %v11212_v33 = vld [vmem:[#allocation2 + $0xc58] ss:$20 sps:$4 sm:$0xff]  }
 0x14a   :  { %3050 = vmatpush1.bf16.msra.mxu1 %v11137_v37  ;;  %v11292_v37 = vld [vmem:[#allocation2 + $0x150] ss:$20 sps:$4 sm:$0xff]  }
 0x14b   :  { %2927 = vmatpush1.bf16.msra.mxu0 %v11134_v36  ;;  %3051 = vmatprep.subr.bf16.mxu1 %v11145_v39  ;;  %v11222_v36 = vld [vmem:[#allocation2 + $0x78c] ss:$20 sps:$4 sm:$0xff]   ;;  %v11220_v39 = vld [vmem:[#allocation2 + $0x788] ss:$20 sps:$4 sm:$0xff]  }
 0x14c   :  { %2928 = vmatprep.subr.bf16.mxu0 %v11142_v38  ;;  %v12908_v38 = vcombine.low %v12896_v26, %v12896_v26  ;;  %v11301_v26 = vld [vmem:[#allocation2 + $0x38] ss:$20 sps:$4 sm:$0xff]  }
 0x14e   :  { %3052 = vmatpush1.bf16.msra.mxu1 %v11143_v41  ;;  %v11296_v41 = vld [vmem:[#allocation2 + $0x10] ss:$20 sps:$4 sm:$0xff]  }
 0x14f   :  { %2929 = vmatpush1.bf16.msra.mxu0 %v11140_v40  ;;  %3053 = vmatprep.subr.bf16.mxu1 %v11151_v43  ;;  %v11225_v40 = vld [vmem:[#allocation2 + $0x7b4] ss:$20 sps:$4 sm:$0xff]   ;;  %v11223_v43 = vld [vmem:[#allocation2 + $0x7b0] ss:$20 sps:$4 sm:$0xff]  }
 0x150   :  { %2930 = vmatprep.subr.bf16.mxu0 %v11148_v42  ;;  %v11297_v42 = vld [vmem:[#allocation2 + $0x178] ss:$20 sps:$4 sm:$0xff]  }
 0x152   :  { %3054 = vmatpush1.bf16.msra.mxu1 %v11149_v45  ;;  %v11302_v45 = vld [vmem:[#allocation2 + $0x1a0] ss:$20 sps:$4 sm:$0xff]  }
 0x153   :  { %2931 = vmatpush1.bf16.msra.mxu0 %v11146_v44  ;;  %3055 = vmatprep.subr.bf16.mxu1 %v11157_v48  ;;  %v11228_v44 = vld [vmem:[#allocation2 + $0x7dc] ss:$20 sps:$4 sm:$0xff]   ;;  %v11231_v48 = vld [vmem:[#allocation2 + $0x804] ss:$20 sps:$4 sm:$0xff]  }
 0x154   :  { %2932 = vmatprep.subr.bf16.mxu0 %v11154_v46  ;;  %v11226_v46 = vld [vmem:[#allocation2 + $0x7d8] ss:$20 sps:$4 sm:$0xff]  }
 0x156   :  { %3056 = vmatpush1.bf16.msra.mxu1 %v11155_v50  ;;  %v11307_v50 = vld [vmem:[#allocation2 + $0x1c8] ss:$20 sps:$4 sm:$0xff]  }
 0x157   :  { %2933 = vmatpush1.bf16.msra.mxu0 %v11152_v49  ;;  %3057 = vmatprep.subr.bf16.mxu1 %v11163_v53  ;;  %v11306_v49 = vld [vmem:[#allocation2 + $0x60] ss:$20 sps:$4 sm:$0xff]  }
 0x158   :  { %2934 = vmatprep.subr.bf16.mxu0 %v11160_v52  ;;  %v11229_v52 = vld [vmem:[#allocation2 + $0x800] ss:$20 sps:$4 sm:$0xff]  }
 0x159   :  { %v11234_v53 = vld [vmem:[#allocation2 + $0x82c] ss:$20 sps:$4 sm:$0xff]  }
 0x15a   :  { %3058 = vmatpush1.bf16.msra.mxu1 %v11161_v55  ;;  %v11312_v55 = vld [vmem:[#allocation2 + $0x1f0] ss:$20 sps:$4 sm:$0xff]  }
 0x15b   :  { %2935 = vmatpush1.bf16.msra.mxu0 %v11158_v54  ;;  %3059 = vmatprep.subr.bf16.mxu1 %v11169_v57  ;;  %v11311_v54 = vld [vmem:[#allocation2 + $0x88] ss:$20 sps:$4 sm:$0xff]  }
 0x15c   :  { %2936 = vmatprep.subr.bf16.mxu0 %v11166_v56  ;;  %v11232_v56 = vld [vmem:[#allocation2 + $0x828] ss:$20 sps:$4 sm:$0xff]  }
 0x15d   :  { %v11237_v57 = vld [vmem:[#allocation2 + $0x854] ss:$20 sps:$4 sm:$0xff]  }
 0x15e   :  { %3060 = vmatpush1.bf16.msra.mxu1 %v11167_v59  ;;  %v11235_v59 = vld [vmem:[#allocation2 + $0x850] ss:$20 sps:$4 sm:$0xff]  }
 0x15f   :  { %2937 = vmatpush1.bf16.msra.mxu0 %v11164_v58  ;;  %3061 = vmatprep.subr.bf16.mxu1 %v11175_v61  ;;  %v11317_v58 = vld [vmem:[#allocation2 + $0x218] ss:$20 sps:$4 sm:$0xff]  }
 0x160   :  { %2938 = vmatprep.subr.bf16.mxu0 %v11172_v60  ;;  %v11240_v60 = vld [vmem:[#allocation2 + $0x87c] ss:$20 sps:$4 sm:$0xff]   ;;  %v11321_v61 = vld [vmem:[#allocation2 + $0xd8] ss:$20 sps:$4 sm:$0xff]  }
 0x162   :  { %3062 = vmatpush1.bf16.msra.mxu1 %v11173_v63 }
 0x163   :  { %2939 = vmatpush1.bf16.msra.mxu0 %v11170_v62  ;;  %3063 = vmatprep.subr.bf16.mxu1 %v11181_v1  ;;  %v11322_v62 = vld [vmem:[#allocation2 + $0x240] ss:$20 sps:$4 sm:$0xff]  }
 0x164   :  { %2940 = vmatprep.subr.bf16.mxu0 %v11178_v0 }
 0x166   :  { %3064 = vmatpush1.bf16.msra.mxu1 %v11179_v3  ;;  %v11243_v3 = vld [vmem:[#allocation2 + $0x8a4] ss:$20 sps:$4 sm:$0xff]  }
 0x167   :  { %2941 = vmatpush1.bf16.msra.mxu0 %v11176_v2  ;;  %3065 = vmatprep.subr.bf16.mxu1 %v11187_v5  ;;  %v11238_v2 = vld [vmem:[#allocation2 + $0x878] ss:$20 sps:$4 sm:$0xff]   ;;  %v11326_v5 = vld [vmem:[#allocation2 + $0x100] ss:$20 sps:$4 sm:$0xff]  }
 0x168   :  { %2942 = vmatprep.subr.bf16.mxu0 %v11184_v4 }
 0x16a   :  { %3066 = vmatpush1.bf16.msra.mxu1 %v11185_v9  ;;  %v11241_v9 = vld [vmem:[#allocation2 + $0x8a0] ss:$20 sps:$4 sm:$0xff]  }
 0x16b   :  { %2943 = vmatpush1.bf16.msra.mxu0 %v11182_v8  ;;  %3067 = vmatprep.subr.bf16.mxu1 %v11193_v11  ;;  %v11327_v8 = vld [vmem:[#allocation2 + $0x268] ss:$20 sps:$4 sm:$0xff]  }
 0x16c   :  { %2944 = vmatprep.subr.bf16.mxu0 %v11190_v10  ;;  %v11246_v10 = vld [vmem:[#allocation2 + $0x8cc] ss:$20 sps:$4 sm:$0xff]   ;;  %v11331_v11 = vld [vmem:[#allocation2 + $0x128] ss:$20 sps:$4 sm:$0xff]  }
 0x16e   :  { %3068 = vmatpush1.bf16.msra.mxu1 %v11191_v13  ;;  %v11244_v13 = vld [vmem:[#allocation2 + $0x8c8] ss:$20 sps:$4 sm:$0xff]  }
 0x16f   :  { %2945 = vmatpush1.bf16.msra.mxu0 %v11188_v12  ;;  %3069 = vmatprep.subr.bf16.mxu1 %v11199_v16  ;;  %v11332_v12 = vld [vmem:[#allocation2 + $0x650] ss:$20 sps:$4 sm:$0xff]  }
 0x170   :  { %2946 = vmatprep.subr.bf16.mxu0 %v11196_v15  ;;  %v11249_v15 = vld [vmem:[#allocation2 + $0x8f4] ss:$20 sps:$4 sm:$0xff]   ;;  %v11334_v16 = vld [vmem:[#allocation2 + $0x510] ss:$20 sps:$4 sm:$0xff]  }
 0x172   :  { %3070 = vmatpush1.bf16.msra.mxu1 %v11197_v18  ;;  %v11247_v18 = vld [vmem:[#allocation2 + $0x8f0] ss:$20 sps:$4 sm:$0xff]  }
 0x173   :  { %2947 = vmatpush1.bf16.msra.mxu0 %v11194_v17  ;;  %3071 = vmatprep.subr.bf16.mxu1 %v11205_v22  ;;  %v11336_v17 = vld [vmem:[#allocation2 + $0x678] ss:$20 sps:$4 sm:$0xff]  }
 0x174   :  { %2948 = vmatprep.subr.bf16.mxu0 %v11202_v21  ;;  %v11252_v21 = vld [vmem:[#allocation2 + $0x91c] ss:$20 sps:$4 sm:$0xff]   ;;  %v11338_v22 = vld [vmem:[#allocation2 + $0x538] ss:$20 sps:$4 sm:$0xff]  }
 0x176   :  { %3072 = vmatpush1.bf16.msra.mxu1 %v11203_v24  ;;  %v11250_v24 = vld [vmem:[#allocation2 + $0x918] ss:$20 sps:$4 sm:$0xff]  }
 0x177   :  { %2949 = vmatpush1.bf16.msra.mxu0 %v11200_v23  ;;  %3073 = vmatprep.subr.bf16.mxu1 %v11211_v28  ;;  %v11340_v23 = vld [vmem:[#allocation2 + $0x6a0] ss:$20 sps:$4 sm:$0xff]  }
 0x178   :  { %2950 = vmatprep.subr.bf16.mxu0 %v11208_v27  ;;  %v11255_v27 = vld [vmem:[#allocation2 + $0x944] ss:$20 sps:$4 sm:$0xff]   ;;  %v11342_v28 = vld [vmem:[#allocation2 + $0x560] ss:$20 sps:$4 sm:$0xff]  }
 0x17a   :  { %3074 = vmatpush1.bf16.msra.mxu1 %v11209_v30  ;;  %v11253_v30 = vld [vmem:[#allocation2 + $0x940] ss:$20 sps:$4 sm:$0xff]  }
 0x17b   :  { %2951 = vmatpush1.bf16.msra.mxu0 %v11206_v29  ;;  %3075 = vmatprep.subr.bf16.mxu1 %v11217_v19  ;;  %v11344_v29 = vld [vmem:[#allocation2 + $0x6c8] ss:$20 sps:$4 sm:$0xff]   ;;  %v11348_v19 = vld [vmem:[#allocation2 + $0x6f0] ss:$20 sps:$4 sm:$0xff]  }
 0x17c   :  { %2952 = vmatprep.subr.bf16.mxu0 %v11214_v31  ;;  %v11258_v31 = vld [vmem:[#allocation2 + $0x96c] ss:$20 sps:$4 sm:$0xff]  }
 0x17e   :  { %3076 = vmatpush1.bf16.msra.mxu1 %v11215_v35  ;;  %v11261_v35 = vld [vmem:[#allocation2 + $0x994] ss:$20 sps:$4 sm:$0xff]  }
 0x17f   :  { %2953 = vmatpush1.bf16.msra.mxu0 %v11212_v33  ;;  %3086 = vmatprep.subr.bf16.mxu1 %v11222_v36  ;;  %v11256_v33 = vld [vmem:[#allocation2 + $0x968] ss:$20 sps:$4 sm:$0xff]   ;;  %v11352_v36 = vld [vmem:[#allocation2 + $0x718] ss:$20 sps:$4 sm:$0xff]  }
 0x180   :  { %10431 = vmatprep.subr.bf16.mxu0 %v11292_v37  ;;  %v11259_v37 = vld [vmem:[#allocation2 + $0x990] ss:$20 sps:$4 sm:$0xff]  }
 0x181   :  { %3078 = vmatmul.mubr.bf16.vlgmr.msra.gmra.mrb[4].mxu1 %v12874_v14 }
 0x182   :  { %2955 = vmatmul.mubr.bf16.vlgmr.msra.gmra.mrb[0].mxu0 %v12908_v38  ;;  %3087 = vmatpush1.bf16.msra.mxu1 %v11220_v39  ;;  %v11264_v39 = vld [vmem:[#allocation2 + $0x9bc] ss:$20 sps:$4 sm:$0xff]  }
 0x183   :  { %3118 = vmatprep.mubr.bf16.mxu1 %v12883_v20  ;;  %3088 = vmatprep.subr.bf16.mxu1 %v11225_v40  ;;  %v11354_v40 = vld [vmem:[#allocation2 + $0x5d8] ss:$20 sps:$4 sm:$0xff]  }
 0x184   :  { %10432 = vmatpush3.bf16.msra.mxu0 %v11296_v41  ;;  %3200 = vmatprep.mubr.bf16.mxu0 %v12846_v47  ;;  %v11316_v47 = vld [vmem:[#allocation2 + $0xb0] ss:$20 sps:$4 sm:$0xff]   ;;  %v11356_v41 = vld [vmem:[#allocation2 + $0x740] ss:$20 sps:$4 sm:$0xff]  }
 0x185   :  { %10433 = vmatprep.subr.bf16.mxu0 %v11297_v42  ;;  %v11262_v42 = vld [vmem:[#allocation2 + $0x9b8] ss:$20 sps:$4 sm:$0xff]  }
 0x186   :  { %3089 = vmatpush1.bf16.msra.mxu1 %v11223_v43  ;;  %v11267_v43 = vld [vmem:[#allocation2 + $0x9e4] ss:$20 sps:$4 sm:$0xff]  }
 0x187   :  { %3090 = vmatprep.subr.bf16.mxu1 %v11228_v44  ;;  %v11358_v44 = vld [vmem:[#allocation2 + $0x600] ss:$20 sps:$4 sm:$0xff]  }
 0x188   :  { %10434 = vmatpush3.bf16.msra.mxu0 %v11301_v26  ;;  %v11360_v26 = vld [vmem:[#allocation2 + $0x768] ss:$20 sps:$4 sm:$0xff]  }
 0x189   :  { %10435 = vmatprep.subr.bf16.mxu0 %v11302_v45  ;;  %v11265_v45 = vld [vmem:[#allocation2 + $0x9e0] ss:$20 sps:$4 sm:$0xff]  }
 0x18a   :  { %3091 = vmatpush1.bf16.msra.mxu1 %v11226_v46  ;;  %v11270_v46 = vld [vmem:[#allocation2 + $0xa0c] ss:$20 sps:$4 sm:$0xff]  }
 0x18b   :  { %3092 = vmatprep.subr.bf16.mxu1 %v11231_v48  ;;  %v11362_v48 = vld [vmem:[#allocation2 + $0x628] ss:$20 sps:$4 sm:$0xff]  }
 0x18c   :  { %10436 = vmatpush3.bf16.msra.mxu0 %v11306_v49  ;;  %v11364_v49 = vld [vmem:[#allocation2 + $0xb50] ss:$20 sps:$4 sm:$0xff]  }
 0x18d   :  { %10437 = vmatprep.subr.bf16.mxu0 %v11307_v50  ;;  %v11268_v50 = vld [vmem:[#allocation2 + $0xa08] ss:$20 sps:$4 sm:$0xff]  }
 0x18e   :  { %3093 = vmatpush1.bf16.msra.mxu1 %v11229_v52  ;;  %v11273_v52 = vld [vmem:[#allocation2 + $0xa34] ss:$20 sps:$4 sm:$0xff]  }
 0x18f   :  { %3094 = vmatprep.subr.bf16.mxu1 %v11234_v53  ;;  %v11366_v53 = vld [vmem:[#allocation2 + $0xa10] ss:$20 sps:$4 sm:$0xff]  }
 0x190   :  { %10438 = vmatpush3.bf16.msra.mxu0 %v11311_v54  ;;  %v11271_v54 = vld [vmem:[#allocation2 + $0xa30] ss:$20 sps:$4 sm:$0xff]  }
 0x191   :  { %10439 = vmatprep.subr.bf16.mxu0 %v11312_v55  ;;  %v11368_v55 = vld [vmem:[#allocation2 + $0xb78] ss:$20 sps:$4 sm:$0xff]  }
 0x192   :  { %3095 = vmatpush1.bf16.msra.mxu1 %v11232_v56  ;;  %v11276_v56 = vld [vmem:[#allocation2 + $0xa5c] ss:$20 sps:$4 sm:$0xff]  }
 0x193   :  { %3096 = vmatprep.subr.bf16.mxu1 %v11237_v57  ;;  %v11370_v57 = vld [vmem:[#allocation2 + $0xa38] ss:$20 sps:$4 sm:$0xff]  }
 0x194   :  { %10440 = vmatpush3.bf16.msra.mxu0 %v11316_v47  ;;  %v12914_v63 = vpop.f32.mrb[0].mxu1  ;;  %v11372_v47 = vld [vmem:[#allocation2 + $0xba0] ss:$20 sps:$4 sm:$0xff]  }
 0x195   :  { %10441 = vmatprep.subr.bf16.mxu0 %v11317_v58  ;;  %v12916_v0 = vpop.f32.mrb[1].mxu1  ;;  %v11274_v58 = vld [vmem:[#allocation2 + $0xa58] ss:$20 sps:$4 sm:$0xff]  }
 0x196   :  { %v2796_v1 = vpop.f32.mrb[2].mxu1  ;;  %3097 = vmatpush1.bf16.msra.mxu1 %v11235_v59  ;;  %v11279_v59 = vld [vmem:[#allocation2 + $0xa84] ss:$20 sps:$4 sm:$0xff]  }
 0x197   :  { %v2797_v4 = vpop.f32.mrb[3].mxu1  ;;  %3098 = vmatprep.subr.bf16.mxu1 %v11240_v60  ;;  %v11374_v60 = vld [vmem:[#allocation2 + $0xa60] ss:$20 sps:$4 sm:$0xff]  }
 0x198   :  { %10442 = vmatpush3.bf16.msra.mxu0 %v11321_v61  ;;  %v11376_v61 = vld [vmem:[#allocation2 + $0xbc8] ss:$20 sps:$4 sm:$0xff]   ;;  %v11282_v1 = vld [vmem:[#allocation2 + $0xaac] ss:$20 sps:$4 sm:$0xff]   ;;  %v11382_v4 = vld [vmem:[#allocation2 + $0xab0] ss:$20 sps:$4 sm:$0xff]  }
 0x199   :  { %10443 = vmatprep.subr.bf16.mxu0 %v11322_v62  ;;  %v11277_v62 = vld [vmem:[#allocation2 + $0xa80] ss:$20 sps:$4 sm:$0xff]  }
 0x19a   :  { %3099 = vmatpush1.bf16.msra.mxu1 %v11238_v2  ;;  %v11378_v2 = vld [vmem:[#allocation2 + $0xa88] ss:$20 sps:$4 sm:$0xff]  }
 0x19b   :  { %3100 = vmatprep.subr.bf16.mxu1 %v11243_v3  ;;  %v11285_v3 = vld [vmem:[#allocation2 + $0xad4] ss:$20 sps:$4 sm:$0xff]  }
 0x19c   :  { %10444 = vmatpush3.bf16.msra.mxu0 %v11326_v5  ;;  %v11384_v5 = vld [vmem:[#allocation2 + $0xc18] ss:$20 sps:$4 sm:$0xff]  }
 0x19d   :  { %10445 = vmatprep.subr.bf16.mxu0 %v11327_v8  ;;  %v11283_v8 = vld [vmem:[#allocation2 + $0xad0] ss:$20 sps:$4 sm:$0xff]  }
 0x19e   :  { %3101 = vmatpush1.bf16.msra.mxu1 %v11241_v9  ;;  %v11288_v9 = vld [vmem:[#allocation2 + $0xafc] ss:$20 sps:$4 sm:$0xff]  }
 0x19f   :  { %3102 = vmatprep.subr.bf16.mxu1 %v11246_v10  ;;  %v11386_v10 = vld [vmem:[#allocation2 + $0xad8] ss:$20 sps:$4 sm:$0xff]  }
 0x1a0   :  { %10446 = vmatpush3.bf16.msra.mxu0 %v11331_v11  ;;  %v11388_v11 = vld [vmem:[#allocation2 + $0xc40] ss:$20 sps:$4 sm:$0xff]  }
 0x1a1   :  { %10475 = vmatprep.subr.bf16.mxu0 %v11332_v12  ;;  %v11286_v12 = vld [vmem:[#allocation2 + $0xaf8] ss:$20 sps:$4 sm:$0xff]  }
 0x1a2   :  { %3103 = vmatpush1.bf16.msra.mxu1 %v11244_v13  ;;  %v11291_v13 = vld [vmem:[#allocation2 + $0xb24] ss:$20 sps:$4 sm:$0xff]  }
 0x1a3   :  { %3201 = vmatmul.mubr.bf16.vlgmr.msra.gmra.mrb[4].mxu0 %v12855_v6  ;;  %3104 = vmatprep.subr.bf16.mxu1 %v11249_v15  ;;  %v11346_v6 = vld [vmem:[#allocation2 + $0x588] ss:$20 sps:$4 sm:$0xff]   ;;  %v11390_v15 = vld [vmem:[#allocation2 + $0xb00] ss:$20 sps:$4 sm:$0xff]  }
 0x1a4   :  { %10476 = vmatpush3.bf16.msra.mxu0 %v11334_v16  ;;  %3280 = vmatprep.mubr.bf16.mxu0 %v12869_v34  ;;  %v11350_v34 = vld [vmem:[#allocation2 + $0x5b0] ss:$20 sps:$4 sm:$0xff]   ;;  %v11392_v16 = vld [vmem:[#allocation2 + $0xc68] ss:$20 sps:$4 sm:$0xff]  }
 0x1a5   :  { %10477 = vmatprep.subr.bf16.mxu0 %v11336_v17  ;;  %v11289_v17 = vld [vmem:[#allocation2 + $0xb20] ss:$20 sps:$4 sm:$0xff]  }
 0x1a6   :  { %3105 = vmatpush1.bf16.msra.mxu1 %v11247_v18  ;;  %v11295_v18 = vld [vmem:[#allocation2 + $0xb4c] ss:$20 sps:$4 sm:$0xff]  }
 0x1a7   :  { %3106 = vmatprep.subr.bf16.mxu1 %v11252_v21  ;;  %v11394_v21 = vld [vmem:[#allocation2 + $0xb28] ss:$20 sps:$4 sm:$0xff]  }
 0x1a8   :  { %10478 = vmatpush3.bf16.msra.mxu0 %v11338_v22  ;;  %v11402_v22 = vld [vmem:[#allocation5 + $0xc8] ss:$12 sps:$4 sm:$0xff]  }
 0x1a9   :  { %10479 = vmatprep.subr.bf16.mxu0 %v11340_v23  ;;  %v11293_v23 = vld [vmem:[#allocation2 + $0xb48] ss:$20 sps:$4 sm:$0xff]  }
 0x1aa   :  { %3107 = vmatpush1.bf16.msra.mxu1 %v11250_v24  ;;  %v11300_v24 = vld [vmem:[#allocation2 + $0xb74] ss:$20 sps:$4 sm:$0xff]  }
 0x1ab   :  { %3108 = vmatprep.subr.bf16.mxu1 %v11255_v27  ;;  %v11403_v27 = vld [vmem:[#allocation5 + $0x8] ss:$12 sps:$4 sm:$0xff]  }
 0x1ac   :  { %10480 = vmatpush3.bf16.msra.mxu0 %v11342_v28  ;;  %v11407_v28 = vld [vmem:[#allocation5 + $0xe0] ss:$12 sps:$4 sm:$0xff]  }
 0x1ad   :  { %10481 = vmatprep.subr.bf16.mxu0 %v11344_v29  ;;  %v11298_v29 = vld [vmem:[#allocation2 + $0xb70] ss:$20 sps:$4 sm:$0xff]  }
 0x1ae   :  { %3109 = vmatpush1.bf16.msra.mxu1 %v11253_v30  ;;  %v11305_v30 = vld [vmem:[#allocation2 + $0xb9c] ss:$20 sps:$4 sm:$0xff]  }
 0x1af   :  { %3110 = vmatprep.subr.bf16.mxu1 %v11258_v31  ;;  %v11408_v31 = vld [vmem:[#allocation5 + $0x20] ss:$12 sps:$4 sm:$0xff]  }
 0x1b0   :  { %10482 = vmatpush3.bf16.msra.mxu0 %v11346_v6  ;;  %v11412_v6 = vld [vmem:[#allocation5 + $0xf8] ss:$12 sps:$4 sm:$0xff]  }
 0x1b1   :  { %10483 = vmatprep.subr.bf16.mxu0 %v11348_v19  ;;  %v11303_v19 = vld [vmem:[#allocation2 + $0xb98] ss:$20 sps:$4 sm:$0xff]  }
 0x1b2   :  { %3111 = vmatpush1.bf16.msra.mxu1 %v11256_v33  ;;  %v11310_v33 = vld [vmem:[#allocation2 + $0xbc4] ss:$20 sps:$4 sm:$0xff]  }
 0x1b3   :  { %3112 = vmatprep.subr.bf16.mxu1 %v11261_v35  ;;  %v11308_v35 = vld [vmem:[#allocation2 + $0xbc0] ss:$20 sps:$4 sm:$0xff]  }
 0x1b4   :  { %10484 = vmatpush3.bf16.msra.mxu0 %v11350_v34  ;;  %v11413_v34 = vld [vmem:[#allocation5 + $0x38] ss:$12 sps:$4 sm:$0xff]  }
 0x1b5   :  { %10485 = vmatprep.subr.bf16.mxu0 %v11352_v36  ;;  %v11417_v36 = vld [vmem:[#allocation5 + $0x110] ss:$12 sps:$4 sm:$0xff]  }
 0x1b6   :  { %3113 = vmatpush1.bf16.msra.mxu1 %v11259_v37  ;;  %v11315_v37 = vld [vmem:[#allocation2 + $0xbec] ss:$20 sps:$4 sm:$0xff]  }
 0x1b7   :  { %3114 = vmatprep.subr.bf16.mxu1 %v11264_v39  ;;  %v11418_v39 = vld [vmem:[#allocation5 + $0x50] ss:$12 sps:$4 sm:$0xff]  }
 0x1b8   :  { %10486 = vmatpush3.bf16.msra.mxu0 %v11354_v40  ;;  %v11422_v40 = vld [vmem:[#allocation5 + $0x128] ss:$12 sps:$4 sm:$0xff]  }
 0x1b9   :  { %10487 = vmatprep.subr.bf16.mxu0 %v11356_v41  ;;  %v11313_v41 = vld [vmem:[#allocation2 + $0xbe8] ss:$20 sps:$4 sm:$0xff]  }
 0x1ba   :  { %3115 = vmatpush1.bf16.msra.mxu1 %v11262_v42  ;;  %v11320_v42 = vld [vmem:[#allocation2 + $0xc14] ss:$20 sps:$4 sm:$0xff]  }
 0x1bb   :  { %3116 = vmatprep.subr.bf16.mxu1 %v11267_v43  ;;  %v11423_v43 = vld [vmem:[#allocation5 + $0x68] ss:$12 sps:$4 sm:$0xff]  }
 0x1bc   :  { %10488 = vmatpush3.bf16.msra.mxu0 %v11358_v44  ;;  %v11427_v44 = vld [vmem:[#allocation5 + $0x140] ss:$12 sps:$4 sm:$0xff]  }
 0x1bd   :  { %10489 = vmatprep.subr.bf16.mxu0 %v11360_v26  ;;  %v11318_v26 = vld [vmem:[#allocation2 + $0xc10] ss:$20 sps:$4 sm:$0xff]  }
 0x1be   :  { %3117 = vmatpush1.bf16.msra.mxu1 %v11265_v45  ;;  %v11325_v45 = vld [vmem:[#allocation2 + $0xc3c] ss:$20 sps:$4 sm:$0xff]  }
 0x1bf   :  { %3127 = vmatprep.subr.bf16.mxu1 %v11270_v46  ;;  %v11428_v46 = vld [vmem:[#allocation5 + $0x80] ss:$12 sps:$4 sm:$0xff]  }
 0x1c0   :  { %10490 = vmatpush3.bf16.msra.mxu0 %v11362_v48  ;;  %v11432_v48 = vld [vmem:[#allocation5 + $0x158] ss:$12 sps:$4 sm:$0xff]  }
 0x1c1   :  { %10519 = vmatprep.subr.bf16.mxu0 %v11364_v49  ;;  %3119 = vmatmul.mubr.bf16.vlgmr.msra.gmra.mrb[4].mxu1 %v12891_v25  ;;  %v11323_v49 = vld [vmem:[#allocation2 + $0xc38] ss:$20 sps:$4 sm:$0xff]  }
 0x1c2   :  { %3128 = vmatpush1.bf16.msra.mxu1 %v11268_v50  ;;  %3159 = vmatprep.mubr.bf16.mxu1 %v12900_v32  ;;  %v11330_v50 = vld [vmem:[#allocation2 + $0xc64] ss:$20 sps:$4 sm:$0xff]  }
 0x1c3   :  { %3129 = vmatprep.subr.bf16.mxu1 %v11273_v52  ;;  %3281 = vmatmul.mubr.bf16.vlgmr.msra.gmra.mrb[8].mxu0 %v12874_v14  ;;  %v11380_v14 = vld [vmem:[#allocation2 + $0xbf0] ss:$20 sps:$4 sm:$0xff]  }
 0x1c4   :  { %10520 = vmatpush3.bf16.msra.mxu0 %v11366_v53  ;;  %3360 = vmatprep.mubr.bf16.mxu0 %v12900_v32  ;;  %v11280_v32 = vld [vmem:[#allocation2 + $0xaa8] ss:$20 sps:$4 sm:$0xff]   ;;  %v11433_v52 = vld [vmem:[#allocation5 + $0x98] ss:$12 sps:$4 sm:$0xff]  }
 0x1c5   :  { %10521 = vmatprep.subr.bf16.mxu0 %v11368_v55  ;;  %v11437_v53 = vld [vmem:[#allocation5 + $0x170] ss:$12 sps:$4 sm:$0xff]  }
 0x1c6   :  { %3130 = vmatpush1.bf16.msra.mxu1 %v11271_v54  ;;  %v11328_v54 = vld [vmem:[#allocation2 + $0xc60] ss:$20 sps:$4 sm:$0xff]   ;;  %v11333_v55 = vld [vmem:[#allocation2 + $0x3d0] ss:$20 sps:$4 sm:$0xff]  }
 0x1c7   :  { %3131 = vmatprep.subr.bf16.mxu1 %v11276_v56  ;;  %v11438_v56 = vld [vmem:[#allocation5 + $0xb0] ss:$12 sps:$4 sm:$0xff]  }
 0x1c8   :  { %10522 = vmatpush3.bf16.msra.mxu0 %v11370_v57  ;;  %v11335_v57 = vld [vmem:[#allocation2 + $0x290] ss:$20 sps:$4 sm:$0xff]  }
 0x1c9   :  { %10523 = vmatprep.subr.bf16.mxu0 %v11372_v47  ;;  %v11337_v47 = vld [vmem:[#allocation2 + $0x3f8] ss:$20 sps:$4 sm:$0xff]  }
 0x1ca   :  { %3132 = vmatpush1.bf16.msra.mxu1 %v11274_v58  ;;  %v11339_v58 = vld [vmem:[#allocation2 + $0x2b8] ss:$20 sps:$4 sm:$0xff]  }
 0x1cb   :  { %3133 = vmatprep.subr.bf16.mxu1 %v11279_v59  ;;  %v11341_v59 = vld [vmem:[#allocation2 + $0x420] ss:$20 sps:$4 sm:$0xff]  }
 0x1cc   :  { %10524 = vmatpush3.bf16.msra.mxu0 %v11374_v60  ;;  %v11343_v60 = vld [vmem:[#allocation2 + $0x2e0] ss:$20 sps:$4 sm:$0xff]  }
 0x1cd   :  { %10525 = vmatprep.subr.bf16.mxu0 %v11376_v61  ;;  %v11345_v61 = vld [vmem:[#allocation2 + $0x448] ss:$20 sps:$4 sm:$0xff]  }
 0x1ce   :  { %3134 = vmatpush1.bf16.msra.mxu1 %v11277_v62  ;;  %v11347_v62 = vld [vmem:[#allocation2 + $0x308] ss:$20 sps:$4 sm:$0xff]  }
 0x1cf   :  { %3135 = vmatprep.subr.bf16.mxu1 %v11282_v1  ;;  %v11349_v1 = vld [vmem:[#allocation2 + $0x470] ss:$20 sps:$4 sm:$0xff]  }
 0x1d0   :  { %10526 = vmatpush3.bf16.msra.mxu0 %v11378_v2  ;;  %v11351_v2 = vld [vmem:[#allocation2 + $0x330] ss:$20 sps:$4 sm:$0xff]  }
 0x1d1   :  { %10527 = vmatprep.subr.bf16.mxu0 %v11380_v14  ;;  %v11353_v14 = vld [vmem:[#allocation2 + $0x498] ss:$20 sps:$4 sm:$0xff]  }
 0x1d2   :  { %3136 = vmatpush1.bf16.msra.mxu1 %v11280_v32  ;;  %v11357_v32 = vld [vmem:[#allocation2 + $0x4c0] ss:$20 sps:$4 sm:$0xff]  }
 0x1d3   :  { %3137 = vmatprep.subr.bf16.mxu1 %v11285_v3  ;;  %v11359_v3 = vld [vmem:[#allocation2 + $0x380] ss:$20 sps:$4 sm:$0xff]  }
 0x1d4   :  { %10528 = vmatpush3.bf16.msra.mxu0 %v11382_v4  ;;  %v11363_v4 = vld [vmem:[#allocation2 + $0x3a8] ss:$20 sps:$4 sm:$0xff]  }
 0x1d5   :  { %10529 = vmatprep.subr.bf16.mxu0 %v11384_v5  ;;  %v11365_v5 = vld [vmem:[#allocation2 + $0x8d0] ss:$20 sps:$4 sm:$0xff]  }
 0x1d6   :  { %3138 = vmatpush1.bf16.msra.mxu1 %v11283_v8  ;;  %v11367_v8 = vld [vmem:[#allocation2 + $0x790] ss:$20 sps:$4 sm:$0xff]  }
 0x1d7   :  { %3139 = vmatprep.subr.bf16.mxu1 %v11288_v9  ;;  %v11369_v9 = vld [vmem:[#allocation2 + $0x8f8] ss:$20 sps:$4 sm:$0xff]  }
 0x1d8   :  { %10530 = vmatpush3.bf16.msra.mxu0 %v11386_v10  ;;  %v11487_v10 = vld [vmem:[#allocation5 + $0x248] ss:$12 sps:$4 sm:$0xff]  }
 0x1d9   :  { %10531 = vmatprep.subr.bf16.mxu0 %v11388_v11  ;;  %v11371_v11 = vld [vmem:[#allocation2 + $0x7b8] ss:$20 sps:$4 sm:$0xff]  }
 0x1da   :  { %3140 = vmatpush1.bf16.msra.mxu1 %v11286_v12  ;;  %v11373_v12 = vld [vmem:[#allocation2 + $0x920] ss:$20 sps:$4 sm:$0xff]  }
 0x1db   :  { %3141 = vmatprep.subr.bf16.mxu1 %v11291_v13  ;;  %v11375_v13 = vld [vmem:[#allocation2 + $0x7e0] ss:$20 sps:$4 sm:$0xff]  }
 0x1dc   :  { %10532 = vmatpush3.bf16.msra.mxu0 %v11390_v15  ;;  %v11377_v15 = vld [vmem:[#allocation2 + $0x948] ss:$20 sps:$4 sm:$0xff]  }
 0x1dd   :  { %10533 = vmatprep.subr.bf16.mxu0 %v11392_v16  ;;  %v11379_v16 = vld [vmem:[#allocation2 + $0x808] ss:$20 sps:$4 sm:$0xff]  }
 0x1de   :  { %3142 = vmatpush1.bf16.msra.mxu1 %v11289_v17  ;;  %v11381_v17 = vld [vmem:[#allocation2 + $0x970] ss:$20 sps:$4 sm:$0xff]  }
 0x1df   :  { %3143 = vmatprep.subr.bf16.mxu1 %v11295_v18  ;;  %v11383_v18 = vld [vmem:[#allocation2 + $0x830] ss:$20 sps:$4 sm:$0xff]  }
 0x1e0   :  { %10534 = vmatpush3.bf16.msra.mxu0 %v11394_v21  ;;  %v11385_v21 = vld [vmem:[#allocation2 + $0x998] ss:$20 sps:$4 sm:$0xff]  }
 0x1e1   :  { %10541 = vmatprep.subr.bf16.mxu0 %v11402_v22  ;;  %v11389_v22 = vld [vmem:[#allocation2 + $0x9c0] ss:$20 sps:$4 sm:$0xff]  }
 0x1e2   :  { %3144 = vmatpush1.bf16.msra.mxu1 %v11293_v23  ;;  %v11391_v23 = vld [vmem:[#allocation2 + $0x880] ss:$20 sps:$4 sm:$0xff]  }
 0x1e3   :  { %3145 = vmatprep.subr.bf16.mxu1 %v11300_v24  ;;  %3361 = vmatmul.mubr.bf16.vlgmr.msra.gmra.mrb[12].mxu0 %v12908_v38  ;;  %v11395_v24 = vld [vmem:[#allocation2 + $0x8a8] ss:$20 sps:$4 sm:$0xff]  }
 0x1e4   :  { %10542 = vmatpush3.bf16.msra.mxu0 %v11403_v27  ;;  %v11398_v27 = vld [vmem:[#allocation5 + $0x4] ss:$12 sps:$4 sm:$0xff]  }
 0x1e5   :  { %10543 = vmatprep.subr.bf16.mxu0 %v11407_v28  ;;  %v11396_v28 = vld [vmem:[#allocation5] ss:$12 sps:$4 sm:$0xff]  }
 0x1e6   :  { %3146 = vmatpush1.bf16.msra.mxu1 %v11298_v29  ;;  %v11401_v29 = vld [vmem:[#allocation5 + $0x1c] ss:$12 sps:$4 sm:$0xff]  }
 0x1e7   :  { %3147 = vmatprep.subr.bf16.mxu1 %v11305_v30  ;;  %v11399_v30 = vld [vmem:[#allocation5 + $0x18] ss:$12 sps:$4 sm:$0xff]  }
 0x1e8   :  { %10544 = vmatpush3.bf16.msra.mxu0 %v11408_v31  ;;  %v11406_v31 = vld [vmem:[#allocation5 + $0x34] ss:$12 sps:$4 sm:$0xff]  }
 0x1e9   :  { %10545 = vmatprep.subr.bf16.mxu0 %v11412_v6  ;;  %v618_v6 = vlaneseq }
 0x1ea   :  { %3148 = vmatpush1.bf16.msra.mxu1 %v11303_v19  ;;  %v11404_v19 = vld [vmem:[#allocation5 + $0x30] ss:$12 sps:$4 sm:$0xff]  }
 0x1eb   :  { %3149 = vmatprep.subr.bf16.mxu1 %v11310_v33  ;;  %v11411_v33 = vld [vmem:[#allocation5 + $0x4c] ss:$12 sps:$4 sm:$0xff]  }
 0x1ec   :  { %10546 = vmatpush3.bf16.msra.mxu0 %v11413_v34  ;;  %v11409_v34 = vld [vmem:[#allocation5 + $0x48] ss:$12 sps:$4 sm:$0xff]  }
 0x1ed   :  { %10547 = vmatprep.subr.bf16.mxu0 %v11417_v36  ;;  %v11416_v36 = vld [vmem:[#allocation5 + $0x64] ss:$12 sps:$4 sm:$0xff]  }
 0x1ee   :  { %3150 = vmatpush1.bf16.msra.mxu1 %v11308_v35  ;;  %v12930_v35 = vshrl.u32 %v618_v6, 7  ;;  %v11460_v6 = vld [vmem:[#allocation5 + $0x180] ss:$12 sps:$4 sm:$0xff]  }
 0x1ef   :  { %3151 = vmatprep.subr.bf16.mxu1 %v11315_v37  ;;  %v616_v37 = vld [vmem:[#allocation13] sm:$0x1f] }
 0x1f0   :  { %10548 = vmatpush3.bf16.msra.mxu0 %v11418_v39  ;;  %v12933_v39 = vsub.s32 0, %v12930_v35 }
 0x1f1   :  { %10549 = vmatprep.subr.bf16.mxu0 %v11422_v40  ;;  %v11414_v40 = vld [vmem:[#allocation5 + $0x60] ss:$12 sps:$4 sm:$0xff]  }
 0x1f2   :  { %3152 = vmatpush1.bf16.msra.mxu1 %v11313_v41  ;;  %v11421_v41 = vld [vmem:[#allocation5 + $0x7c] ss:$12 sps:$4 sm:$0xff]  }
 0x1f3   :  { %3153 = vmatprep.subr.bf16.mxu1 %v11320_v42  ;;  %v621_v42 = vrot.slane %v616_v37, %v12933_v39 }
 0x1f4   :  { %10550 = vmatpush3.bf16.msra.mxu0 %v11423_v43 }
 0x1f5   :  { %10551 = vmatprep.subr.bf16.mxu0 %v11427_v44  ;;  %v11419_v44 = vld [vmem:[#allocation5 + $0x78] ss:$12 sps:$4 sm:$0xff]  }
 0x1f6   :  { %3154 = vmatpush1.bf16.msra.mxu1 %v11318_v26  ;;  %v2793_v26 = vadd.f32 %v12914_v63, %v621_v42  ;;  %v11436_v63 = vld [vmem:[#allocation5 + $0xc4] ss:$12 sps:$4 sm:$0xff]   ;;  %v11471_v42 = vld [vmem:[#allocation5 + $0x1cc] ss:$12 sps:$4 sm:$0xff]  }
 0x1f7   :  { %3155 = vmatprep.subr.bf16.mxu1 %v11325_v45  ;;  %v11426_v45 = vld [vmem:[#allocation5 + $0x94] ss:$12 sps:$4 sm:$0xff]  }
 0x1f8   :  { %10552 = vmatpush3.bf16.msra.mxu0 %v11428_v46 }
 0x1f9   :  { %10553 = vmatprep.subr.bf16.mxu0 %v11432_v48 }
 0x1fa   :  { %3156 = vmatpush1.bf16.msra.mxu1 %v11323_v49 }
 0x1fb   :  { %3157 = vmatprep.subr.bf16.mxu1 %v11330_v50 }
 0x1fc   :  { %10554 = vmatpush3.bf16.msra.mxu0 %v11433_v52 }
 0x1fd   :  { %10555 = vmatprep.subr.bf16.mxu0 %v11437_v53 }
 0x1fe   :  { %3158 = vmatpush1.bf16.msra.mxu1 %v11328_v54  ;;  %v11424_v54 = vld [vmem:[#allocation5 + $0x90] ss:$12 sps:$4 sm:$0xff]  }
 0x1ff   :  { %10453 = vmatprep.subr.bf16.mxu1 %v11333_v55 }
 0x200   :  { %10556 = vmatpush3.bf16.msra.mxu0 %v11438_v56  ;;  %v11431_v56 = vld [vmem:[#allocation5 + $0xac] ss:$12 sps:$4 sm:$0xff]  }
 0x201   :  { %3160 = vmatmul.mubr.bf16.vlgmr.msra.gmra.mrb[4].mxu1 %v12908_v38  ;;  %v11355_v38 = vld [vmem:[#allocation2 + $0x358] ss:$20 sps:$4 sm:$0xff]   ;;  %10563 = vmatprep.subr.bf16.mxu0 %v11487_v10  ;;  %v11502_v10 = vld [vmem:[#allocation5 + $0x290] ss:$12 sps:$4 sm:$0xff]  }
 0x202   :  { %10454 = vmatpush3.bf16.msra.mxu1 %v11335_v57  ;;  %3240 = vmatprep.mubr.bf16.mxu1 %v12851_v51  ;;  %v11361_v51 = vld [vmem:[#allocation2 + $0x4e8] ss:$20 sps:$4 sm:$0xff]  }
 0x203   :  { %10455 = vmatprep.subr.bf16.mxu1 %v11337_v47 }
 0x206   :  { %10456 = vmatpush3.bf16.msra.mxu1 %v11339_v58  ;;  %v11429_v58 = vld [vmem:[#allocation5 + $0xa8] ss:$12 sps:$4 sm:$0xff]  }
 0x207   :  { %10457 = vmatprep.subr.bf16.mxu1 %v11341_v59  ;;  %v11434_v59 = vld [vmem:[#allocation5 + $0xc0] ss:$12 sps:$4 sm:$0xff]  }
 0x20a   :  { %10458 = vmatpush3.bf16.msra.mxu1 %v11343_v60  ;;  %v11439_v60 = vld [vmem:[#allocation5 + $0xd8] ss:$12 sps:$4 sm:$0xff]  }
 0x20b   :  { %10459 = vmatprep.subr.bf16.mxu1 %v11345_v61  ;;  %v11444_v61 = vld [vmem:[#allocation5 + $0xf4] ss:$12 sps:$4 sm:$0xff]  }
 0x20e   :  { %10460 = vmatpush3.bf16.msra.mxu1 %v11347_v62  ;;  %v11488_v62 = vld [vmem:[#allocation5 + $0x188] ss:$12 sps:$4 sm:$0xff]  }
 0x20f   :  { %10461 = vmatprep.subr.bf16.mxu1 %v11349_v1  ;;  %v11442_v1 = vld [vmem:[#allocation5 + $0xf0] ss:$12 sps:$4 sm:$0xff]  }
 0x212   :  { %10462 = vmatpush3.bf16.msra.mxu1 %v11351_v2  ;;  %v11492_v2 = vld [vmem:[#allocation5 + $0x260] ss:$12 sps:$4 sm:$0xff]  }
 0x213   :  { %10463 = vmatprep.subr.bf16.mxu1 %v11353_v14 }
 0x216   :  { %10464 = vmatpush3.bf16.msra.mxu1 %v11355_v38  ;;  %v11447_v38 = vld [vmem:[#allocation5 + $0x10c] ss:$12 sps:$4 sm:$0xff]  }
 0x217   :  { %10465 = vmatprep.subr.bf16.mxu1 %v11357_v32 }
 0x21a   :  { %10466 = vmatpush3.bf16.msra.mxu1 %v11359_v3  ;;  %v11493_v3 = vld [vmem:[#allocation5 + $0x1a0] ss:$12 sps:$4 sm:$0xff]  }
 0x21b   :  { %10467 = vmatprep.subr.bf16.mxu1 %v11361_v51  ;;  %v11445_v51 = vld [vmem:[#allocation5 + $0x108] ss:$12 sps:$4 sm:$0xff]  }
 0x21e   :  { %10468 = vmatpush3.bf16.msra.mxu1 %v11363_v4  ;;  %v11497_v4 = vld [vmem:[#allocation5 + $0x278] ss:$12 sps:$4 sm:$0xff]  }
 0x21f   :  { %10497 = vmatprep.subr.bf16.mxu1 %v11365_v5  ;;  %v11450_v5 = vld [vmem:[#allocation5 + $0x124] ss:$12 sps:$4 sm:$0xff]  }
 0x221   :  { %3241 = vmatmul.mubr.bf16.vlgmr.msra.gmra.mrb[8].mxu1 %v12857_v7  ;;  %v11387_v7 = vld [vmem:[#allocation2 + $0x858] ss:$20 sps:$4 sm:$0xff]  }
 0x222   :  { %10498 = vmatpush3.bf16.msra.mxu1 %v11367_v8  ;;  %3320 = vmatprep.mubr.bf16.mxu1 %v12883_v20  ;;  %v11393_v20 = vld [vmem:[#allocation2 + $0x9e8] ss:$20 sps:$4 sm:$0xff]   ;;  %v11498_v8 = vld [vmem:[#allocation5 + $0x1b8] ss:$12 sps:$4 sm:$0xff]  }
 0x223   :  { %10499 = vmatprep.subr.bf16.mxu1 %v11369_v9  ;;  %v11448_v9 = vld [vmem:[#allocation5 + $0x120] ss:$12 sps:$4 sm:$0xff]  }
 0x226   :  { %10500 = vmatpush3.bf16.msra.mxu1 %v11371_v11  ;;  %v11453_v11 = vld [vmem:[#allocation5 + $0x13c] ss:$12 sps:$4 sm:$0xff]  }
 0x227   :  { %10501 = vmatprep.subr.bf16.mxu1 %v11373_v12  ;;  %v11503_v12 = vld [vmem:[#allocation5 + $0x1d0] ss:$12 sps:$4 sm:$0xff]  }
 0x22a   :  { %10502 = vmatpush3.bf16.msra.mxu1 %v11375_v13  ;;  %v11451_v13 = vld [vmem:[#allocation5 + $0x138] ss:$12 sps:$4 sm:$0xff]  }
 0x22b   :  { %10503 = vmatprep.subr.bf16.mxu1 %v11377_v15  ;;  %v11507_v15 = vld [vmem:[#allocation5 + $0x2a8] ss:$12 sps:$4 sm:$0xff]  }
 0x22e   :  { %10504 = vmatpush3.bf16.msra.mxu1 %v11379_v16  ;;  %v11456_v16 = vld [vmem:[#allocation5 + $0x154] ss:$12 sps:$4 sm:$0xff]  }
 0x22f   :  { %10505 = vmatprep.subr.bf16.mxu1 %v11381_v17  ;;  %v11508_v17 = vld [vmem:[#allocation5 + $0x1e8] ss:$12 sps:$4 sm:$0xff]  }
 0x232   :  { %10506 = vmatpush3.bf16.msra.mxu1 %v11383_v18  ;;  %v11454_v18 = vld [vmem:[#allocation5 + $0x150] ss:$12 sps:$4 sm:$0xff]  }
 0x233   :  { %10507 = vmatprep.subr.bf16.mxu1 %v11385_v21  ;;  %v11512_v21 = vld [vmem:[#allocation5 + $0x2c0] ss:$12 sps:$4 sm:$0xff]  }
 0x236   :  { %10508 = vmatpush3.bf16.msra.mxu1 %v11387_v7  ;;  %v11459_v7 = vld [vmem:[#allocation5 + $0x16c] ss:$12 sps:$4 sm:$0xff]  }
 0x237   :  { %10509 = vmatprep.subr.bf16.mxu1 %v11389_v22 }
 0x23a   :  { %10510 = vmatpush3.bf16.msra.mxu1 %v11391_v23 }
 0x23b   :  { %10511 = vmatprep.subr.bf16.mxu1 %v11393_v20 }
 0x23e   :  { %10512 = vmatpush3.bf16.msra.mxu1 %v11395_v24 }
 0x23f   :  { %4195 = vmatprep.subr.bf16.mxu1 %v11398_v27  ;;  %v11513_v27 = vld [vmem:[#allocation5 + $0x200] ss:$12 sps:$4 sm:$0xff]  }
 0x241   :  { %3321 = vmatmul.mubr.bf16.vlgmr.msra.gmra.mrb[12].mxu1 %v12891_v25  ;;  %v12936_v25 = vsub.s32 1, %v12930_v35 }
 0x242   :  { %4196 = vmatpush1.bf16.msra.mxu1 %v11396_v28 }
 0x243   :  { %4197 = vmatprep.subr.bf16.mxu1 %v11401_v29  ;;  %v625_v43 = vrot.slane %v616_v37, %v12936_v25  ;;  %v11457_v29 = vld [vmem:[#allocation5 + $0x168] ss:$12 sps:$4 sm:$0xff]   ;;  %v11463_v37 = vld [vmem:[#allocation5 + $0x198] ss:$12 sps:$4 sm:$0xff]  }
 0x245   :  { %v2795_v46 = vadd.f32 %v12916_v0, %v625_v43  ;;  %v11441_v0 = vld [vmem:[#allocation5 + $0xdc] ss:$12 sps:$4 sm:$0xff]   ;;  %v12688_v43 = vmov 0.0  }
 0x246   :  { %4198 = vmatpush1.bf16.msra.mxu1 %v11399_v30  ;;  %v11517_v30 = vld [vmem:[#allocation5 + $0x2d8] ss:$12 sps:$4 sm:$0xff]  }
 0x247   :  { %4199 = vmatprep.subr.bf16.mxu1 %v11406_v31  ;;  %v11462_v31 = vld [vmem:[#allocation5 + $0x184] ss:$12 sps:$4 sm:$0xff]  }
 0x24a   :  { %4200 = vmatpush1.bf16.msra.mxu1 %v11404_v19  ;;  %v11518_v19 = vld [vmem:[#allocation5 + $0x218] ss:$12 sps:$4 sm:$0xff]  }
 0x24b   :  { %4201 = vmatprep.subr.bf16.mxu1 %v11411_v33  ;;  %v11465_v33 = vld [vmem:[#allocation5 + $0x19c] ss:$12 sps:$4 sm:$0xff]  }
 0x24e   :  { %4202 = vmatpush1.bf16.msra.mxu1 %v11409_v34  ;;  %v11522_v34 = vld [vmem:[#allocation5 + $0x2f0] ss:$12 sps:$4 sm:$0xff]  }
 0x24f   :  { %4203 = vmatprep.subr.bf16.mxu1 %v11416_v36  ;;  %v11523_v36 = vld [vmem:[#allocation5 + $0x230] ss:$12 sps:$4 sm:$0xff]  }
 0x252   :  { %4204 = vmatpush1.bf16.msra.mxu1 %v11414_v40  ;;  %v11468_v40 = vld [vmem:[#allocation5 + $0x1b4] ss:$12 sps:$4 sm:$0xff]  }
 0x253   :  { %4205 = vmatprep.subr.bf16.mxu1 %v11421_v41  ;;  %v11466_v41 = vld [vmem:[#allocation5 + $0x1b0] ss:$12 sps:$4 sm:$0xff]  }
 0x255   :  { %v2956_v48 = vpop.f32.mrb[0].mxu0 }
 0x256   :  { %v10695_v49 = vadd.f32 %v2956_v48, %v2793_v26  ;;  %v2958_v50 = vpop.f32.mrb[1].mxu0  ;;  %4206 = vmatpush1.bf16.msra.mxu1 %v11419_v44  ;;  %v11469_v44 = vld [vmem:[#allocation5 + $0x1c8] ss:$12 sps:$4 sm:$0xff]   ;;  %v11474_v26 = vld [vmem:[#allocation5 + $0x1e4] ss:$12 sps:$4 sm:$0xff]  }
 0x257   :  { %v10697_v52 = vadd.f32 %v2958_v50, %v2795_v46  ;;  %v2960_v53 = vpop.f32.mrb[2].mxu0  ;;  %4207 = vmatprep.subr.bf16.mxu1 %v11426_v45  ;;  %v11472_v45 = vld [vmem:[#allocation5 + $0x1e0] ss:$12 sps:$4 sm:$0xff]   ;;  %v11477_v46 = vld [vmem:[#allocation5 + $0x1fc] ss:$12 sps:$4 sm:$0xff]  }
 0x258   :  { %v2961_v55 = vpop.f32.mrb[3].mxu0  ;;  %v3368_v57 = vpack.c.bf16 %v10695_v49, %v10695_v49  ;;  %v11475_v48 = vld [vmem:[#allocation5 + $0x1f8] ss:$12 sps:$4 sm:$0xff]   ;;  %v11480_v49 = vld [vmem:[#allocation5 + $0x214] ss:$12 sps:$4 sm:$0xff]  }
 0x259   :  { %v3369_v47 = vpack.c.bf16 %v10697_v52, %v10697_v52  ;;  %v11478_v50 = vld [vmem:[#allocation5 + $0x210] ss:$12 sps:$4 sm:$0xff]   ;;  %v11483_v52 = vld [vmem:[#allocation5 + $0x22c] ss:$12 sps:$4 sm:$0xff]  }
 0x25a   :  { %4208 = vmatpush1.bf16.msra.mxu1 %v11424_v54 }
 0x25b   :  { %12428 = vtanh.bf16 %v3369_v47  ;;  %4209 = vmatprep.subr.bf16.mxu1 %v11431_v56  ;;  %v11481_v47 = vld [vmem:[#allocation5 + $0x228] ss:$12 sps:$4 sm:$0xff]  }
 0x25c   :  { %12430 = vtanh.bf16 %v3368_v57 }
 0x25e   :  { %4210 = vmatpush1.bf16.msra.mxu1 %v11429_v58  ;;  %v11486_v58 = vld [vmem:[#allocation5 + $0x244] ss:$12 sps:$4 sm:$0xff]  }
 0x25f   :  { %4211 = vmatprep.subr.bf16.mxu1 %v11436_v63  ;;  %v11484_v63 = vld [vmem:[#allocation5 + $0x240] ss:$12 sps:$4 sm:$0xff]  }
 0x262   :  { %4212 = vmatpush1.bf16.msra.mxu1 %v11434_v59  ;;  %v11491_v59 = vld [vmem:[#allocation5 + $0x25c] ss:$12 sps:$4 sm:$0xff]  }
 0x263   :  { %4213 = vmatprep.subr.bf16.mxu1 %v11441_v0  ;;  %v11489_v0 = vld [vmem:[#allocation5 + $0x258] ss:$12 sps:$4 sm:$0xff]  }
 0x266   :  { %v12429_v14 = vpop.eup %12428  ;;  %4214 = vmatpush1.bf16.msra.mxu1 %v11439_v60  ;;  %v11496_v60 = vld [vmem:[#allocation5 + $0x274] ss:$12 sps:$4 sm:$0xff]  }
 0x267   :  { %4227 = vmatprep.mubr.bf16.mxu1 %v12429_v14  ;;  %v12431_v32 = vpop.eup %12430  ;;  %4350 = vmatprep.mubr.bf16.mxu0 %v12429_v14  ;;  %v11504_v14 = vld [vmem:[#allocation5 + $0x2a0] ss:$12 sps:$4 sm:$0xff]  }
 0x268   :  { %4215 = vmatprep.subr.bf16.mxu1 %v11444_v61  ;;  %4351 = vmatmul.mubr.bf16.vlgmr.msra.gmra.mrb[16].mxu0 %v12431_v32  ;;  %v11494_v61 = vld [vmem:[#allocation5 + $0x270] ss:$12 sps:$4 sm:$0xff]  }
 0x269   :  { %10564 = vmatpush3.bf16.msra.mxu0 %v11488_v62  ;;  %v11501_v62 = vld [vmem:[#allocation5 + $0x28c] ss:$12 sps:$4 sm:$0xff]  }
 0x26a   :  { %4216 = vmatpush1.bf16.msra.mxu1 %v11442_v1  ;;  %10565 = vmatprep.subr.bf16.mxu0 %v11492_v2  ;;  %v11499_v1 = vld [vmem:[#allocation5 + $0x288] ss:$12 sps:$4 sm:$0xff]   ;;  %v11506_v2 = vld [vmem:[#allocation5 + $0x2a4] ss:$12 sps:$4 sm:$0xff]  }
 0x26b   :  { %4217 = vmatprep.subr.bf16.mxu1 %v11447_v38  ;;  %v11511_v38 = vld [vmem:[#allocation5 + $0x2bc] ss:$12 sps:$4 sm:$0xff]  }
 0x26d   :  { %10566 = vmatpush3.bf16.msra.mxu0 %v11493_v3  ;;  %v11516_v3 = vld [vmem:[#allocation5 + $0x2d4] ss:$12 sps:$4 sm:$0xff]  }
 0x26e   :  { %4218 = vmatpush1.bf16.msra.mxu1 %v11445_v51  ;;  %10567 = vmatprep.subr.bf16.mxu0 %v11497_v4  ;;  %v11514_v51 = vld [vmem:[#allocation5 + $0x2d0] ss:$12 sps:$4 sm:$0xff]   ;;  %v11521_v4 = vld [vmem:[#allocation5 + $0x2ec] ss:$12 sps:$4 sm:$0xff]  }
 0x26f   :  { %4219 = vmatprep.subr.bf16.mxu1 %v11450_v5 }
 0x271   :  { %10568 = vmatpush3.bf16.msra.mxu0 %v11498_v8 }
 0x272   :  { %4220 = vmatpush1.bf16.msra.mxu1 %v11448_v9  ;;  %10569 = vmatprep.subr.bf16.mxu0 %v11502_v10  ;;  %v11519_v9 = vld [vmem:[#allocation5 + $0x2e8] ss:$12 sps:$4 sm:$0xff]  }
 0x273   :  { %4221 = vmatprep.subr.bf16.mxu1 %v11453_v11 }
 0x275   :  { %10570 = vmatpush3.bf16.msra.mxu0 %v11503_v12 }
 0x276   :  { %v10447_v22 = vpop.f32.mrb[4].mxu0  ;;  %4222 = vmatpush1.bf16.msra.mxu1 %v11451_v13  ;;  %10571 = vmatprep.subr.bf16.mxu0 %v11507_v15  ;;  %v11526_v13 = vld [vmem:[#allocation5 + $0x304] ss:$12 sps:$4 sm:$0xff]   ;;  %v12950_v15 = vsub.s32 2, %v12930_v35 }
 0x277   :  { %v10448_v23 = vpop.f32.mrb[5].mxu0  ;;  %4223 = vmatprep.subr.bf16.mxu1 %v11456_v16  ;;  %v12953_v16 = vsub.s32 3, %v12930_v35 }
 0x278   :  { %v12942_v20 = vadd.f32 %v10448_v23, %v10447_v22  ;;  %v10450_v24 = vpop.f32.mrb[6].mxu0 }
 0x279   :  { %v10451_v28 = vpop.f32.mrb[7].mxu0  ;;  %10572 = vmatpush3.bf16.msra.mxu0 %v11508_v17  ;;  %v12462_v17 = vld [vmem:[#allocation13] sm:$0x1f] }
 0x27a   :  { %4224 = vmatpush1.bf16.msra.mxu1 %v11454_v18  ;;  %10573 = vmatprep.subr.bf16.mxu0 %v11512_v21  ;;  %v629_v18 = vrot.slane %v12462_v17, %v12950_v15  ;;  %v633_v21 = vrot.slane %v12462_v17, %v12953_v16 }
 0x27b   :  { %4225 = vmatprep.subr.bf16.mxu1 %v11459_v7 }
 0x27d   :  { %10574 = vmatpush3.bf16.msra.mxu0 %v11513_v27 }
 0x27e   :  { %4226 = vmatpush1.bf16.msra.mxu1 %v11457_v29  ;;  %10575 = vmatprep.subr.bf16.mxu0 %v11517_v30 }
 0x27f   :  { %4236 = vmatprep.subr.bf16.mxu1 %v11462_v31  ;;  %v11524_v31 = vld [vmem:[#allocation5 + $0x300] ss:$12 sps:$4 sm:$0xff]  }
 0x281   :  { %4228 = vmatmul.mubr.bf16.vlgmr.msra.gmra.mrb[16].mxu1 %v12431_v32  ;;  %10576 = vmatpush3.bf16.msra.mxu0 %v11518_v19  ;;  %v11509_v32 = vld [vmem:[#allocation5 + $0x2b8] ss:$12 sps:$4 sm:$0xff]  }
 0x282   :  { %4237 = vmatpush1.bf16.msra.mxu1 %v11460_v6  ;;  %10577 = vmatprep.subr.bf16.mxu0 %v11522_v34  ;;  %v11527_v6 = vld [vmem:[#allocation5 + $0x308] ss:$12 sps:$4 sm:$0xff]  }
 0x283   :  { %4238 = vmatprep.subr.bf16.mxu1 %v11465_v33  ;;  %v11530_v33 = vld [vmem:[#allocation5 + $0x31c] ss:$12 sps:$4 sm:$0xff]  }
 0x285   :  { %10578 = vmatpush3.bf16.msra.mxu0 %v11523_v36  ;;  %v11528_v36 = vld [vmem:[#allocation5 + $0x318] ss:$12 sps:$4 sm:$0xff]  }
 0x286   :  { %4239 = vmatpush1.bf16.msra.mxu1 %v11463_v37  ;;  %10634 = vmatprep.subr.bf16.mxu0 %v12688_v43  ;;  %v11531_v37 = vld [vmem:[#allocation5 + $0x320] ss:$12 sps:$4 sm:$0xff]  }
 0x287   :  { %4240 = vmatprep.subr.bf16.mxu1 %v11468_v40  ;;  %v11534_v40 = vld [vmem:[#allocation5 + $0x334] ss:$12 sps:$4 sm:$0xff]  }
 0x28a   :  { %4241 = vmatpush1.bf16.msra.mxu1 %v11466_v41  ;;  %v12689_v41 = vmov 0  }
 0x28b   :  { %4242 = vmatprep.subr.bf16.mxu1 %v11471_v42  ;;  %v11532_v42 = vld [vmem:[#allocation5 + $0x330] ss:$12 sps:$4 sm:$0xff]  }
 0x28e   :  { %4243 = vmatpush1.bf16.msra.mxu1 %v11469_v44  ;;  %v11535_v44 = vld [vmem:[#allocation5 + $0x338] ss:$12 sps:$4 sm:$0xff]  }
 0x28f   :  { %4244 = vmatprep.subr.bf16.mxu1 %v11474_v26  ;;  %v11538_v26 = vld [vmem:[#allocation5 + $0x34c] ss:$12 sps:$4 sm:$0xff]  }
 0x292   :  { %4245 = vmatpush1.bf16.msra.mxu1 %v11472_v45  ;;  %v12963_v45 = vsub.s32 4, %v12930_v35 }
 0x293   :  { %4246 = vmatprep.subr.bf16.mxu1 %v11477_v46  ;;  %v11536_v46 = vld [vmem:[#allocation5 + $0x348] ss:$12 sps:$4 sm:$0xff]  }
 0x296   :  { %4247 = vmatpush1.bf16.msra.mxu1 %v11475_v48  ;;  %v10491_v53 = vpop.f32.mrb[8].mxu0  ;;  %v11539_v48 = vld [vmem:[#allocation5 + $0x350] ss:$12 sps:$4 sm:$0xff]  }
 0x297   :  { %4248 = vmatprep.subr.bf16.mxu1 %v11480_v49  ;;  %v10492_v54 = vpop.f32.mrb[9].mxu0  ;;  %v11542_v49 = vld [vmem:[#allocation5 + $0x364] ss:$12 sps:$4 sm:$0xff]  }
 0x298   :  { %v12945_v55 = vadd.f32 %v10492_v54, %v10491_v53  ;;  %v10494_v56 = vpop.f32.mrb[10].mxu0  ;;  %v11540_v53 = vld [vmem:[#allocation5 + $0x360] ss:$12 sps:$4 sm:$0xff]   ;;  %v11543_v54 = vld [vmem:[#allocation5 + $0x368] ss:$12 sps:$4 sm:$0xff]  }
 0x299   :  { %v10495_v57 = vpop.f32.mrb[11].mxu0 }
 0x29a   :  { %4249 = vmatpush1.bf16.msra.mxu1 %v11478_v50  ;;  %v637_v50 = vrot.slane %v12462_v17, %v12963_v45  ;;  %v11546_v57 = vld [vmem:[#allocation5 + $0x37c] ss:$12 sps:$4 sm:$0xff]  }
 0x29b   :  { %4250 = vmatprep.subr.bf16.mxu1 %v11483_v52 }
 0x29e   :  { %4251 = vmatpush1.bf16.msra.mxu1 %v11481_v47  ;;  %v3203_v47 = vadd.f32 %v12942_v20, %v637_v50  ;;  %v11554_v20 = vld [vmem:[#allocation5 + $0x3ac] ss:$12 sps:$4 sm:$0xff]   ;;  %v11591_v50 = vld [vmem:[#allocation7 + $0xb4] ss:$8 sps:$4 sm:$0xff]  }
 0x29f   :  { %4252 = vmatprep.subr.bf16.mxu1 %v11486_v58 }
 0x2a2   :  { %4253 = vmatpush1.bf16.msra.mxu1 %v11484_v63 }
 0x2a3   :  { %4254 = vmatprep.subr.bf16.mxu1 %v11491_v59 }
 0x2a6   :  { %4255 = vmatpush1.bf16.msra.mxu1 %v11489_v0 }
 0x2a7   :  { %4256 = vmatprep.subr.bf16.mxu1 %v11496_v60  ;;  %v11544_v60 = vld [vmem:[#allocation5 + $0x378] ss:$12 sps:$4 sm:$0xff]  }
 0x2aa   :  { %4257 = vmatpush1.bf16.msra.mxu1 %v11494_v61  ;;  %v11547_v61 = vld [vmem:[#allocation5 + $0x380] ss:$12 sps:$4 sm:$0xff]  }
 0x2ab   :  { %4258 = vmatprep.subr.bf16.mxu1 %v11501_v62  ;;  %v11550_v62 = vld [vmem:[#allocation5 + $0x394] ss:$12 sps:$4 sm:$0xff]  }
 0x2ae   :  { %4259 = vmatpush1.bf16.msra.mxu1 %v11499_v1 }
 0x2af   :  { %4260 = vmatprep.subr.bf16.mxu1 %v11506_v2  ;;  %v11548_v2 = vld [vmem:[#allocation5 + $0x390] ss:$12 sps:$4 sm:$0xff]  }
 0x2b2   :  { %4261 = vmatpush1.bf16.msra.mxu1 %v11504_v14  ;;  %v11551_v14 = vld [vmem:[#allocation5 + $0x398] ss:$12 sps:$4 sm:$0xff]  }
 0x2b3   :  { %4262 = vmatprep.subr.bf16.mxu1 %v11511_v38  ;;  %v11552_v38 = vld [vmem:[#allocation5 + $0x3a8] ss:$12 sps:$4 sm:$0xff]  }
 0x2b6   :  { %4263 = vmatpush1.bf16.msra.mxu1 %v11509_v32  ;;  %v10535_v5 = vpop.f32.mrb[12].mxu0  ;;  %v11555_v32 = vld [vmem:[#allocation5 + $0x3b0] ss:$12 sps:$4 sm:$0xff]  }
 0x2b7   :  { %4264 = vmatprep.subr.bf16.mxu1 %v11516_v3  ;;  %v10536_v8 = vpop.f32.mrb[13].mxu0 }
 0x2b8   :  { %v12947_v10 = vadd.f32 %v10536_v8, %v10535_v5  ;;  %v10538_v11 = vpop.f32.mrb[14].mxu0 }
 0x2b9   :  { %v10539_v12 = vpop.f32.mrb[15].mxu0 }
 0x2ba   :  { %4265 = vmatpush1.bf16.msra.mxu1 %v11514_v51 }
 0x2bb   :  { %4266 = vmatprep.subr.bf16.mxu1 %v11521_v4 }
 0x2be   :  { %4267 = vmatpush1.bf16.msra.mxu1 %v11519_v9 }
 0x2bf   :  { %4277 = vmatprep.subr.bf16.mxu1 %v11526_v13 }
 0x2d4   :  { %v3161_v7 = vpop.f32.mrb[4].mxu1 }
 0x2d5   :  { %v10698_v22 = vadd.f32 %v3161_v7, %v629_v18  ;;  %v3163_v23 = vpop.f32.mrb[5].mxu1  ;;  %v11556_v7 = vld [vmem:[#allocation7] ss:$8 sps:$4 sm:$0xff]  }
 0x2d6   :  { %v10699_v24 = vadd.f32 %v3163_v23, %v633_v21  ;;  %v3165_v27 = vpop.f32.mrb[6].mxu1 }
 0x2d7   :  { %v3370_v28 = vpack.c.bf16 %v10698_v22, %v10698_v22  ;;  %v3166_v29 = vpop.f32.mrb[7].mxu1  ;;  %v11558_v22 = vld [vmem:[#allocation7 + $0x4] ss:$8 sps:$4 sm:$0xff]   ;;  %v11559_v27 = vld [vmem:[#allocation7 + $0x10] ss:$8 sps:$4 sm:$0xff]  }
 0x2d8   :  { %v3371_v30 = vpack.c.bf16 %v10699_v24, %v10699_v24  ;;  %v11561_v24 = vld [vmem:[#allocation7 + $0x14] ss:$8 sps:$4 sm:$0xff]  }
 0x2d9   :  { %v11567_v29 = vld [vmem:[#allocation7 + $0x34] ss:$8 sps:$4 sm:$0xff]  }
 0x2da   :  { %12432 = vtanh.bf16 %v3371_v30  ;;  %v11565_v30 = vld [vmem:[#allocation7 + $0x30] ss:$8 sps:$4 sm:$0xff]  }
 0x2db   :  { %12434 = vtanh.bf16 %v3370_v28  ;;  %v11562_v28 = vld [vmem:[#allocation7 + $0x20] ss:$8 sps:$4 sm:$0xff]  }
 0x2e5   :  { %v12433_v19 = vpop.eup %12432 }
 0x2e6   :  { %v12435_v34 = vpop.eup %12434  ;;  %4268 = vmatprep.mubr.bf16.mxu1 %v12433_v19  ;;  %4390 = vmatprep.mubr.bf16.mxu0 %v12433_v19  ;;  %v11573_v19 = vld [vmem:[#allocation7 + $0x54] ss:$8 sps:$4 sm:$0xff]  }
 0x2e7   :  { %4269 = vmatmul.mubr.bf16.vlgmr.msra.gmra.mrb[16].mxu1 %v12435_v34  ;;  %4391 = vmatmul.mubr.bf16.vlgmr.msra.gmra.mrb[20].mxu0 %v12435_v34  ;;  %v11576_v34 = vld [vmem:[#allocation7 + $0x64] ss:$8 sps:$4 sm:$0xff]  }
 0x2e8   :  { %4278 = vmatpush1.bf16.msra.mxu1 %v11524_v31  ;;  %10635 = vmatpush3.bf16.msra.mxu0 %v11527_v6  ;;  %v11570_v31 = vld [vmem:[#allocation7 + $0x44] ss:$8 sps:$4 sm:$0xff]   ;;  %v11568_v6 = vld [vmem:[#allocation7 + $0x40] ss:$8 sps:$4 sm:$0xff]  }
 0x2e9   :  { %4279 = vmatprep.subr.bf16.mxu1 %v11530_v33  ;;  %10636 = vmatprep.subr.bf16.mxu0 %v12688_v43  ;;  %v11571_v33 = vld [vmem:[#allocation7 + $0x50] ss:$8 sps:$4 sm:$0xff]  }
 0x2ea   :  { %4309 = vmatprep.mubr.bf16.mxu1 %v12689_v41  ;;  %10650 = vmatprep.mubr.msk.bf16.mxu0 %vm12690_vm0, %v12688_v43 }
 0x2ec   :  { %4280 = vmatpush1.bf16.msra.mxu1 %v11528_v36  ;;  %10637 = vmatpush3.bf16.msra.mxu0 %v11531_v37  ;;  %v11574_v36 = vld [vmem:[#allocation7 + $0x60] ss:$8 sps:$4 sm:$0xff]   ;;  %v11579_v37 = vld [vmem:[#allocation7 + $0x74] ss:$8 sps:$4 sm:$0xff]  }
 0x2ed   :  { %4281 = vmatprep.subr.bf16.mxu1 %v11534_v40  ;;  %10638 = vmatprep.subr.bf16.mxu0 %v12688_v43  ;;  %v11577_v40 = vld [vmem:[#allocation7 + $0x70] ss:$8 sps:$4 sm:$0xff]  }
 0x2f0   :  { %4282 = vmatpush1.bf16.msra.mxu1 %v11532_v42  ;;  %10639 = vmatpush3.bf16.msra.mxu0 %v11535_v44  ;;  %v11582_v42 = vld [vmem:[#allocation7 + $0x84] ss:$8 sps:$4 sm:$0xff]   ;;  %v11580_v44 = vld [vmem:[#allocation7 + $0x80] ss:$8 sps:$4 sm:$0xff]  }
 0x2f1   :  { %4283 = vmatprep.subr.bf16.mxu1 %v11538_v26  ;;  %10640 = vmatprep.subr.bf16.mxu0 %v12688_v43  ;;  %v11585_v26 = vld [vmem:[#allocation7 + $0x94] ss:$8 sps:$4 sm:$0xff]  }
 0x2f4   :  { %v10469_v52 = vpop.f32.mrb[8].mxu1  ;;  %4284 = vmatpush1.bf16.msra.mxu1 %v11536_v46  ;;  %10641 = vmatpush3.bf16.msra.mxu0 %v11539_v48  ;;  %v11583_v46 = vld [vmem:[#allocation7 + $0x90] ss:$8 sps:$4 sm:$0xff]   ;;  %v11588_v48 = vld [vmem:[#allocation7 + $0xa4] ss:$8 sps:$4 sm:$0xff]  }
 0x2f5   :  { %v10470_v56 = vpop.f32.mrb[9].mxu1  ;;  %4285 = vmatprep.subr.bf16.mxu1 %v11542_v49  ;;  %10642 = vmatprep.subr.bf16.mxu0 %v12688_v43  ;;  %v11586_v49 = vld [vmem:[#allocation7 + $0xa0] ss:$8 sps:$4 sm:$0xff]  }
 0x2f6   :  { %v10471_v58 = vadd.f32 %v10470_v56, %v10469_v52  ;;  %v10472_v63 = vpop.f32.mrb[10].mxu1  ;;  %v11589_v52 = vld [vmem:[#allocation7 + $0xb0] ss:$8 sps:$4 sm:$0xff]   ;;  %v11597_v56 = vld [vmem:[#allocation7 + $0xd4] ss:$8 sps:$4 sm:$0xff]  }
 0x2f7   :  { %v10473_v59 = vpop.f32.mrb[11].mxu1  ;;  %v11603_v63 = vld [vmem:[#allocation7 + $0xf4] ss:$8 sps:$4 sm:$0xff]  }
 0x2f8   :  { %v3243_v0 = vadd.f32 %v10471_v58, %v3203_v47  ;;  %4286 = vmatpush1.bf16.msra.mxu1 %v11540_v53  ;;  %10643 = vmatpush3.bf16.msra.mxu0 %v11543_v54  ;;  %v11594_v53 = vld [vmem:[#allocation7 + $0xc4] ss:$8 sps:$4 sm:$0xff]   ;;  %v11592_v54 = vld [vmem:[#allocation7 + $0xc0] ss:$8 sps:$4 sm:$0xff]   ;;  %v11601_v59 = vld [vmem:[#allocation7 + $0xf0] ss:$8 sps:$4 sm:$0xff]  }
 0x2f9   :  { %4287 = vmatprep.subr.bf16.mxu1 %v11546_v57  ;;  %10644 = vmatprep.subr.bf16.mxu0 %v12688_v43  ;;  %v11595_v57 = vld [vmem:[#allocation7 + $0xd0] ss:$8 sps:$4 sm:$0xff]   ;;  %v11600_v47 = vld [vmem:[#allocation7 + $0xe4] ss:$8 sps:$4 sm:$0xff]   ;;  %v11598_v58 = vld [vmem:[#allocation7 + $0xe0] ss:$8 sps:$4 sm:$0xff]  }
 0x2fa   :  { %v3283_v1 = vadd.f32 %v12945_v55, %v3243_v0  ;;  %v11606_v0 = vld [vmem:[#allocation7 + $0x104] ss:$8 sps:$4 sm:$0xff]  }
 0x2fc   :  { %4288 = vmatpush1.bf16.msra.mxu1 %v11544_v60  ;;  %10645 = vmatpush3.bf16.msra.mxu0 %v11547_v61  ;;  %v11628_v60 = vld [vmem:[#allocation8] ss:$12 sps:$4 sm:$0xff]   ;;  %v11630_v61 = vld [vmem:[#allocation8 + $0x4] ss:$12 sps:$4 sm:$0xff]  }
 0x2fd   :  { %4289 = vmatprep.subr.bf16.mxu1 %v11550_v62  ;;  %10646 = vmatprep.subr.bf16.mxu0 %v12688_v43  ;;  %v11633_v62 = vld [vmem:[#allocation8 + $0x1c] ss:$12 sps:$4 sm:$0xff]  }
 0x300   :  { %4290 = vmatpush1.bf16.msra.mxu1 %v11548_v2  ;;  %10647 = vmatpush3.bf16.msra.mxu0 %v11551_v14  ;;  %v3538_v2 = vld [vmem:[#allocation13 + $0x5] sm:$0x7] }
 0x301   :  { %4291 = vmatprep.subr.bf16.mxu1 %v11554_v20  ;;  %10648 = vmatprep.subr.bf16.mxu0 %v12688_v43  ;;  %v3551_v14 = vrot.slane %v3538_v2, %v12950_v15 }
 0x304   :  { %4292 = vmatpush1.bf16.msra.mxu1 %v11552_v38  ;;  %10649 = vmatpush3.bf16.msra.mxu0 %v11555_v32 }
 0x305   :  { %4744 = vmatprep.subr.bf16.mxu0 %v11558_v22  ;;  %5011 = vmatprep.subr.bf16.mxu1 %v11630_v61  ;;  %v11651_v61 = vld [vmem:[#allocation8 + $0xac] ss:$12 sps:$4 sm:$0xff]  }
 0x314   :  { %v10513_v3 = vpop.f32.mrb[12].mxu1 }
 0x315   :  { %v10514_v51 = vpop.f32.mrb[13].mxu1 }
 0x316   :  { %v10515_v55 = vadd.f32 %v10514_v51, %v10513_v3  ;;  %v10516_v4 = vpop.f32.mrb[14].mxu1 }
 0x317   :  { %v10517_v5 = vpop.f32.mrb[15].mxu1 }
 0x318   :  { %v3323_v8 = vadd.f32 %v10515_v55, %v3283_v1  ;;  %v11631_v1 = vld [vmem:[#allocation8 + $0x18] ss:$12 sps:$4 sm:$0xff]   ;;  %v3543_v5 = vrot.slane %v3538_v2, %v12933_v39 }
 0x31a   :  { %v3363_v9 = vadd.f32 %v12947_v10, %v3323_v8  ;;  %v11564_v10 = vld [vmem:[#allocation7 + $0x24] ss:$8 sps:$4 sm:$0xff]   ;;  %v3547_v8 = vrot.slane %v3538_v2, %v12936_v25 }
 0x31b   :  { %v11662_v2 = vld [vmem:[#allocation10 + $0x4] ss:$20 sps:$4 sm:$0xff]  }
 0x31c   :  { %v3372_v11 = vpack.c.bf16 %v3363_v9, %v3363_v9 }
 0x31e   :  { %12436 = vtanh.bf16 %v3372_v11 }
 0x329   :  { %v12437_v12 = vpop.eup %12436 }
 0x32a   :  { %4310 = vmatmul.mubr.bf16.vlgmr.msra.gmra.mrb[16].mxu1 %v12437_v12  ;;  %10651 = vmatmul.mubr.bf16.vlgmr.msra.gmra.mrb[24].mxu0 %v12437_v12 }
 0x32b   :  { %5043 = vmatprep.mubr.bf16.mxu1 %v12689_v41  ;;  %4745 = vmatpush1.bf16.msra.mxu0 %v11556_v7 }
 0x32c   :  { %4746 = vmatprep.subr.bf16.mxu0 %v11561_v24  ;;  %5012 = vmatpush1.bf16.msra.mxu1 %v11628_v60  ;;  %v11646_v60 = vld [vmem:[#allocation8 + $0x90] ss:$12 sps:$4 sm:$0xff]  }
 0x32d   :  { %5013 = vmatprep.subr.bf16.mxu1 %v11633_v62  ;;  %v11649_v62 = vld [vmem:[#allocation8 + $0xa8] ss:$12 sps:$4 sm:$0xff]  }
 0x32f   :  { %4747 = vmatpush1.bf16.msra.mxu0 %v11559_v27 }
 0x330   :  { %4748 = vmatprep.subr.bf16.mxu0 %v11564_v10  ;;  %5014 = vmatpush1.bf16.msra.mxu1 %v11631_v1  ;;  %v11660_v1 = vld [vmem:[#allocation10] ss:$20 sps:$4 sm:$0xff]  }
 0x333   :  { %4749 = vmatpush1.bf16.msra.mxu0 %v11562_v28  ;;  %v11604_v28 = vld [vmem:[#allocation7 + $0x100] ss:$8 sps:$4 sm:$0xff]  }
 0x334   :  { %4750 = vmatprep.subr.bf16.mxu0 %v11567_v29 }
 0x337   :  { %4751 = vmatpush1.bf16.msra.mxu0 %v11565_v30  ;;  %v11609_v30 = vld [vmem:[#allocation7 + $0x114] ss:$8 sps:$4 sm:$0xff]  }
 0x338   :  { %4752 = vmatprep.subr.bf16.mxu0 %v11570_v31 }
 0x33b   :  { %v10557_v13 = vpop.f32.mrb[16].mxu0  ;;  %4753 = vmatpush1.bf16.msra.mxu0 %v11568_v6  ;;  %v11607_v6 = vld [vmem:[#allocation7 + $0x110] ss:$8 sps:$4 sm:$0xff]  }
 0x33c   :  { %v10558_v17 = vpop.f32.mrb[17].mxu0  ;;  %4754 = vmatprep.subr.bf16.mxu0 %v11573_v19  ;;  %v11612_v19 = vld [vmem:[#allocation7 + $0x124] ss:$8 sps:$4 sm:$0xff]  }
 0x33d   :  { %v12975_v18 = vadd.f32 %v10558_v17, %v10557_v13  ;;  %v10560_v21 = vpop.f32.mrb[18].mxu0 }
 0x33e   :  { %v10561_v23 = vpop.f32.mrb[19].mxu0 }
 0x33f   :  { %4755 = vmatpush1.bf16.msra.mxu0 %v11571_v33  ;;  %v4353_v32 = vadd.f32 %v12975_v18, %v3551_v14  ;;  %v11610_v33 = vld [vmem:[#allocation7 + $0x120] ss:$8 sps:$4 sm:$0xff]  }
 0x340   :  { %4756 = vmatprep.subr.bf16.mxu0 %v11576_v34  ;;  %v11615_v34 = vld [vmem:[#allocation7 + $0x134] ss:$8 sps:$4 sm:$0xff]   ;;  %v11668_v14 = vld [vmem:[#allocation10 + $0x2c] ss:$20 sps:$4 sm:$0xff]  }
 0x343   :  { %4757 = vmatpush1.bf16.msra.mxu0 %v11574_v36  ;;  %v11613_v36 = vld [vmem:[#allocation7 + $0x130] ss:$8 sps:$4 sm:$0xff]  }
 0x344   :  { %4758 = vmatprep.subr.bf16.mxu0 %v11579_v37  ;;  %v11618_v37 = vld [vmem:[#allocation7 + $0x144] ss:$8 sps:$4 sm:$0xff]  }
 0x347   :  { %4759 = vmatpush1.bf16.msra.mxu0 %v11577_v40  ;;  %v11616_v40 = vld [vmem:[#allocation7 + $0x140] ss:$8 sps:$4 sm:$0xff]  }
 0x348   :  { %4760 = vmatprep.subr.bf16.mxu0 %v11582_v42  ;;  %v11621_v42 = vld [vmem:[#allocation7 + $0x154] ss:$8 sps:$4 sm:$0xff]  }
 0x34b   :  { %4761 = vmatpush1.bf16.msra.mxu0 %v11580_v44 }
 0x34c   :  { %4762 = vmatprep.subr.bf16.mxu0 %v11585_v26  ;;  %v11619_v26 = vld [vmem:[#allocation7 + $0x150] ss:$8 sps:$4 sm:$0xff]  }
 0x34f   :  { %4763 = vmatpush1.bf16.msra.mxu0 %v11583_v46  ;;  %v11624_v46 = vld [vmem:[#allocation7 + $0x164] ss:$8 sps:$4 sm:$0xff]  }
 0x350   :  { %4764 = vmatprep.subr.bf16.mxu0 %v11588_v48  ;;  %v11622_v48 = vld [vmem:[#allocation7 + $0x160] ss:$8 sps:$4 sm:$0xff]  }
 0x353   :  { %4765 = vmatpush1.bf16.msra.mxu0 %v11586_v49  ;;  %v11627_v49 = vld [vmem:[#allocation7 + $0x174] ss:$8 sps:$4 sm:$0xff]  }
 0x354   :  { %4766 = vmatprep.subr.bf16.mxu0 %v11591_v50  ;;  %v11625_v50 = vld [vmem:[#allocation7 + $0x170] ss:$8 sps:$4 sm:$0xff]  }
 0x357   :  { %4767 = vmatpush1.bf16.msra.mxu0 %v11589_v52 }
 0x358   :  { %4768 = vmatprep.subr.bf16.mxu0 %v11594_v53  ;;  %v11636_v53 = vld [vmem:[#allocation8 + $0x34] ss:$12 sps:$4 sm:$0xff]  }
 0x359   :  { %5015 = vmatprep.subr.bf16.mxu1 %v11636_v53  ;;  %v11655_v53 = vld [vmem:[#allocation8 + $0x50] ss:$12 sps:$4 sm:$0xff]  }
 0x35b   :  { %4769 = vmatpush1.bf16.msra.mxu0 %v11592_v54  ;;  %v11634_v54 = vld [vmem:[#allocation8 + $0x30] ss:$12 sps:$4 sm:$0xff]  }
 0x35c   :  { %4770 = vmatprep.subr.bf16.mxu0 %v11597_v56  ;;  %5016 = vmatpush1.bf16.msra.mxu1 %v11634_v54  ;;  %v11639_v56 = vld [vmem:[#allocation8 + $0x4c] ss:$12 sps:$4 sm:$0xff]   ;;  %v11656_v54 = vld [vmem:[#allocation8 + $0x68] ss:$12 sps:$4 sm:$0xff]  }
 0x35d   :  { %5017 = vmatprep.subr.bf16.mxu1 %v11639_v56  ;;  %v11657_v56 = vld [vmem:[#allocation8 + $0x80] ss:$12 sps:$4 sm:$0xff]  }
 0x35f   :  { %4771 = vmatpush1.bf16.msra.mxu0 %v11595_v57  ;;  %v11637_v57 = vld [vmem:[#allocation8 + $0x48] ss:$12 sps:$4 sm:$0xff]  }
 0x360   :  { %4772 = vmatprep.subr.bf16.mxu0 %v11600_v47  ;;  %5018 = vmatpush1.bf16.msra.mxu1 %v11637_v57  ;;  %v11642_v47 = vld [vmem:[#allocation8 + $0x64] ss:$12 sps:$4 sm:$0xff]  }
 0x361   :  { %5019 = vmatprep.subr.bf16.mxu1 %v11642_v47  ;;  %v11658_v57 = vld [vmem:[#allocation8 + $0x98] ss:$12 sps:$4 sm:$0xff]   ;;  %v11659_v47 = vld [vmem:[#allocation8 + $0xb0] ss:$12 sps:$4 sm:$0xff]  }
 0x363   :  { %4773 = vmatpush1.bf16.msra.mxu0 %v11598_v58  ;;  %v11640_v58 = vld [vmem:[#allocation8 + $0x60] ss:$12 sps:$4 sm:$0xff]  }
 0x364   :  { %4774 = vmatprep.subr.bf16.mxu0 %v11603_v63  ;;  %v11645_v63 = vld [vmem:[#allocation8 + $0x7c] ss:$12 sps:$4 sm:$0xff]   ;;  %5020 = vmatpush1.bf16.msra.mxu1 %v11640_v58  ;;  %v11665_v58 = vld [vmem:[#allocation10 + $0xc] ss:$20 sps:$4 sm:$0xff]  }
 0x365   :  { %5021 = vmatprep.subr.bf16.mxu1 %v11645_v63  ;;  %v11663_v63 = vld [vmem:[#allocation10 + $0x8] ss:$20 sps:$4 sm:$0xff]  }
 0x367   :  { %4775 = vmatpush1.bf16.msra.mxu0 %v11601_v59  ;;  %v11643_v59 = vld [vmem:[#allocation8 + $0x78] ss:$12 sps:$4 sm:$0xff]  }
 0x368   :  { %4785 = vmatprep.subr.bf16.mxu0 %v11606_v0  ;;  %v11648_v0 = vld [vmem:[#allocation8 + $0x94] ss:$12 sps:$4 sm:$0xff]   ;;  %5022 = vmatpush1.bf16.msra.mxu1 %v11643_v59 }
 0x369   :  { %5023 = vmatprep.subr.bf16.mxu1 %v11648_v0  ;;  %v11671_v59 = vld [vmem:[#allocation10 + $0x34] ss:$20 sps:$4 sm:$0xff]   ;;  %v11669_v0 = vld [vmem:[#allocation10 + $0x30] ss:$20 sps:$4 sm:$0xff]  }
 0x36c   :  { %5024 = vmatpush1.bf16.msra.mxu1 %v11646_v60  ;;  %v11677_v60 = vld [vmem:[#allocation10 + $0x5c] ss:$20 sps:$4 sm:$0xff]  }
 0x36d   :  { %5025 = vmatprep.subr.bf16.mxu1 %v11651_v61  ;;  %v11675_v61 = vld [vmem:[#allocation10 + $0x58] ss:$20 sps:$4 sm:$0xff]  }
 0x370   :  { %5026 = vmatpush1.bf16.msra.mxu1 %v11649_v62  ;;  %v11683_v62 = vld [vmem:[#allocation10 + $0x84] ss:$20 sps:$4 sm:$0xff]  }
 0x371   :  { %10654 = vmatprep.subr.bf16.mxu1 %v12688_v43 }
 0x3ba   :  { %v10579_v20 = vpop.f32.mrb[20].mxu0 }
 0x3bb   :  { %v10580_v38 = vpop.f32.mrb[21].mxu0 }
 0x3bc   :  { %v10581_v3 = vadd.f32 %v10580_v38, %v10579_v20  ;;  %v10582_v51 = vpop.f32.mrb[22].mxu0  ;;  %v11666_v20 = vld [vmem:[#allocation10 + $0x28] ss:$20 sps:$4 sm:$0xff]  }
 0x3bd   :  { %v10583_v55 = vpop.f32.mrb[23].mxu0  ;;  %v11674_v38 = vld [vmem:[#allocation10 + $0x54] ss:$20 sps:$4 sm:$0xff]   ;;  %v11678_v51 = vld [vmem:[#allocation10 + $0x78] ss:$20 sps:$4 sm:$0xff]  }
 0x3be   :  { %v4393_v4 = vadd.f32 %v10581_v3, %v4353_v32  ;;  %v11672_v32 = vld [vmem:[#allocation10 + $0x50] ss:$20 sps:$4 sm:$0xff]  }
 0x3bf   :  { %v11680_v3 = vld [vmem:[#allocation10 + $0x7c] ss:$20 sps:$4 sm:$0xff]   ;;  %v11686_v55 = vld [vmem:[#allocation10 + $0xa4] ss:$20 sps:$4 sm:$0xff]  }
 0x3fd   :  { %v4311_v9 = vpop.f32.mrb[16].mxu1  ;;  %v4432_v11 = vpop.f32.mrb[24].mxu0 }
 0x3fe   :  { %v10700_v12 = vadd.f32 %v4311_v9, %v3543_v5  ;;  %v4433_v13 = vadd.f32 %v4432_v11, %v4393_v4  ;;  %v4313_v17 = vpop.f32.mrb[17].mxu1  ;;  %v10652_v21 = vpop.f32.mrb[25].mxu0  ;;  %v11684_v4 = vld [vmem:[#allocation10 + $0xa0] ss:$20 sps:$4 sm:$0xff]   ;;  %v11696_v11 = vld [vmem:[#allocation10 + $0xf0] ss:$20 sps:$4 sm:$0xff]  }
 0x3ff   :  { %v10701_v7 = vadd.f32 %v4313_v17, %v3547_v8  ;;  %v4315_v22 = vpop.f32.mrb[18].mxu1  ;;  %v4435_v23 = vpop.f32.mrb[26].mxu0  ;;  %v11692_v5 = vld [vmem:[#allocation10 + $0xcc] ss:$20 sps:$4 sm:$0xff]   ;;  %v11690_v8 = vld [vmem:[#allocation10 + $0xc8] ss:$20 sps:$4 sm:$0xff]  }
 0x400   :  { %v4316_v24 = vpop.f32.mrb[19].mxu1  ;;  %v10653_v27 = vpop.f32.mrb[27].mxu0  ;;  %v4438_v18 = vpack.c.bf16 %v10700_v12, %v10700_v12  ;;  %v4440_v44 = vpack.c.bf16 %v4433_v13, %v4433_v13  ;;  %v11698_v9 = vld [vmem:[#allocation10 + $0xf4] ss:$20 sps:$4 sm:$0xff]   ;;  %v11704_v12 = vld [vmem:[#allocation10 + $0x11c] ss:$20 sps:$4 sm:$0xff]  }
 0x401   :  { %v4439_v10 = vpack.c.bf16 %v10701_v7, %v10701_v7  ;;  %v11702_v13 = vld [vmem:[#allocation10 + $0x118] ss:$20 sps:$4 sm:$0xff]   ;;  %v11708_v21 = vld [vmem:[#allocation10 + $0x140] ss:$20 sps:$4 sm:$0xff]   ;;  %v11714_v22 = vld [vmem:[#allocation10 + $0x168] ss:$20 sps:$4 sm:$0xff]  }
 0x402   :  { %v11710_v17 = vld [vmem:[#allocation10 + $0x144] ss:$20 sps:$4 sm:$0xff]   ;;  %v11716_v7 = vld [vmem:[#allocation10 + $0x16c] ss:$20 sps:$4 sm:$0xff]   ;;  %v11722_v23 = vld [vmem:[#allocation10 + $0x194] ss:$20 sps:$4 sm:$0xff]  }
 0x403   :  { %12438 = vtanh.bf16 %v4439_v10  ;;  %v11720_v24 = vld [vmem:[#allocation10 + $0x190] ss:$20 sps:$4 sm:$0xff]   ;;  %v4492_v10 = vld [vmem:[#allocation13 + $0x8] sm:$0x3] }
 0x404   :  { %12440 = vtanh.bf16 %v4438_v18  ;;  %v11728_v27 = vld [vmem:[#allocation10 + $0x1bc] ss:$20 sps:$4 sm:$0xff]   ;;  %v11726_v18 = vld [vmem:[#allocation10 + $0x1b8] ss:$20 sps:$4 sm:$0xff]  }
 0x405   :  { %12442 = vtanh.bf16 %v4440_v44 }
 0x40e   :  { %v12439_v29 = vpop.eup %12438 }
 0x40f   :  { %v12441_v31 = vpop.eup %12440  ;;  %4776 = vmatprep.mubr.bf16.mxu0 %v12439_v29  ;;  %v4501_v29 = vrot.slane %v4492_v10, %v12936_v25 }
 0x410   :  { %4777 = vmatmul.mubr.bf16.vlgmr.msra.gmra.mrb[28].mxu0 %v12441_v31  ;;  %v12443_v52 = vpop.eup %12442 }
 0x411   :  { %4786 = vmatpush1.bf16.msra.mxu0 %v11604_v28  ;;  %4817 = vmatprep.mubr.bf16.mxu0 %v12689_v41  ;;  %v4497_v28 = vrot.slane %v4492_v10, %v12933_v39  ;;  %v11741_v10 = vld [vmem:[#allocation10 + $0x210] ss:$20 sps:$4 sm:$0xff]  }
 0x412   :  { %4787 = vmatprep.subr.bf16.mxu0 %v11609_v30 }
 0x415   :  { %4788 = vmatpush1.bf16.msra.mxu0 %v11607_v6 }
 0x416   :  { %4789 = vmatprep.subr.bf16.mxu0 %v11612_v19 }
 0x419   :  { %4790 = vmatpush1.bf16.msra.mxu0 %v11610_v33 }
 0x41a   :  { %4791 = vmatprep.subr.bf16.mxu0 %v11615_v34 }
 0x41d   :  { %4792 = vmatpush1.bf16.msra.mxu0 %v11613_v36 }
 0x41e   :  { %4793 = vmatprep.subr.bf16.mxu0 %v11618_v37 }
 0x421   :  { %4794 = vmatpush1.bf16.msra.mxu0 %v11616_v40  ;;  %v4826_v40 = vld [vmem:[%s13146_s1] sm:$0xf] }
 0x422   :  { %4795 = vmatprep.subr.bf16.mxu0 %v11621_v42  ;;  %v4827_v42 = vunpack.c.l.bf16 %v4826_v40  ;;  %v4866_v40 = vld [vmem:[#allocation13 + $0xa] sm:$0x7] }
 0x425   :  { %4796 = vmatpush1.bf16.msra.mxu0 %v11619_v26 }
 0x426   :  { %4797 = vmatprep.subr.bf16.mxu0 %v11624_v46 }
 0x429   :  { %4798 = vmatpush1.bf16.msra.mxu0 %v11622_v48  ;;  %v11652_v48 = vld [vmem:[#allocation8 + $0x8] ss:$12 sps:$4 sm:$0xff]  }
 0x42a   :  { %4799 = vmatprep.subr.bf16.mxu0 %v11627_v49 }
 0x42d   :  { %4800 = vmatpush1.bf16.msra.mxu0 %v11625_v50  ;;  %v11653_v50 = vld [vmem:[#allocation8 + $0x20] ss:$12 sps:$4 sm:$0xff]  }
 0x42e   :  { %5893 = vmatprep.subr.bf16.mxu0 %v11662_v2  ;;  %v11689_v2 = vld [vmem:[#allocation10 + $0xac] ss:$20 sps:$4 sm:$0xff]  }
 0x430   :  { %4818 = vmatmul.mubr.bf16.vlgmr.msra.gmra.mrb[28].mxu0 %v12443_v52  ;;  %v11654_v52 = vld [vmem:[#allocation8 + $0x38] ss:$12 sps:$4 sm:$0xff]  }
 0x431   :  { %5894 = vmatpush1.bf16.msra.mxu0 %v11660_v1  ;;  %v11681_v1 = vld [vmem:[#allocation10 + $0x80] ss:$20 sps:$4 sm:$0xff]  }
 0x432   :  { %5895 = vmatprep.subr.bf16.mxu0 %v11668_v14  ;;  %v11687_v14 = vld [vmem:[#allocation10 + $0xa8] ss:$20 sps:$4 sm:$0xff]  }
 0x435   :  { %5896 = vmatpush1.bf16.msra.mxu0 %v11666_v20  ;;  %v11695_v20 = vld [vmem:[#allocation10 + $0xd4] ss:$20 sps:$4 sm:$0xff]  }
 0x436   :  { %5897 = vmatprep.subr.bf16.mxu0 %v11674_v38  ;;  %v11693_v38 = vld [vmem:[#allocation10 + $0xd0] ss:$20 sps:$4 sm:$0xff]  }
 0x439   :  { %5898 = vmatpush1.bf16.msra.mxu0 %v11672_v32  ;;  %v11701_v32 = vld [vmem:[#allocation10 + $0xfc] ss:$20 sps:$4 sm:$0xff]  }
 0x43a   :  { %5899 = vmatprep.subr.bf16.mxu0 %v11680_v3  ;;  %v11699_v3 = vld [vmem:[#allocation10 + $0xf8] ss:$20 sps:$4 sm:$0xff]  }
 0x43d   :  { %5900 = vmatpush1.bf16.msra.mxu0 %v11678_v51  ;;  %v11707_v51 = vld [vmem:[#allocation10 + $0x124] ss:$20 sps:$4 sm:$0xff]  }
 0x43e   :  { %5901 = vmatprep.subr.bf16.mxu0 %v11686_v55  ;;  %v11705_v55 = vld [vmem:[#allocation10 + $0x120] ss:$20 sps:$4 sm:$0xff]  }
 0x441   :  { %5902 = vmatpush1.bf16.msra.mxu0 %v11684_v4  ;;  %v11713_v4 = vld [vmem:[#allocation10 + $0x14c] ss:$20 sps:$4 sm:$0xff]  }
 0x442   :  { %5903 = vmatprep.subr.bf16.mxu0 %v11692_v5  ;;  %v11711_v5 = vld [vmem:[#allocation10 + $0x148] ss:$20 sps:$4 sm:$0xff]  }
 0x445   :  { %5904 = vmatpush1.bf16.msra.mxu0 %v11690_v8  ;;  %v11719_v8 = vld [vmem:[#allocation10 + $0x174] ss:$20 sps:$4 sm:$0xff]  }
 0x446   :  { %5905 = vmatprep.subr.bf16.mxu0 %v11698_v9  ;;  %v11717_v9 = vld [vmem:[#allocation10 + $0x170] ss:$20 sps:$4 sm:$0xff]  }
 0x449   :  { %5906 = vmatpush1.bf16.msra.mxu0 %v11696_v11  ;;  %v11725_v11 = vld [vmem:[#allocation10 + $0x19c] ss:$20 sps:$4 sm:$0xff]  }
 0x44a   :  { %5907 = vmatprep.subr.bf16.mxu0 %v11704_v12  ;;  %v11723_v12 = vld [vmem:[#allocation10 + $0x198] ss:$20 sps:$4 sm:$0xff]  }
 0x44d   :  { %5908 = vmatpush1.bf16.msra.mxu0 %v11702_v13  ;;  %v11731_v13 = vld [vmem:[#allocation10 + $0x1c4] ss:$20 sps:$4 sm:$0xff]  }
 0x44e   :  { %5909 = vmatprep.subr.bf16.mxu0 %v11710_v17  ;;  %v11729_v17 = vld [vmem:[#allocation10 + $0x1c0] ss:$20 sps:$4 sm:$0xff]  }
 0x451   :  { %5910 = vmatpush1.bf16.msra.mxu0 %v11708_v21  ;;  %v11734_v21 = vld [vmem:[#allocation10 + $0x1e4] ss:$20 sps:$4 sm:$0xff]  }
 0x452   :  { %5911 = vmatprep.subr.bf16.mxu0 %v11716_v7  ;;  %v11737_v7 = vld [vmem:[#allocation10 + $0x1ec] ss:$20 sps:$4 sm:$0xff]  }
 0x455   :  { %5912 = vmatpush1.bf16.msra.mxu0 %v11714_v22  ;;  %v11732_v22 = vld [vmem:[#allocation10 + $0x1e0] ss:$20 sps:$4 sm:$0xff]  }
 0x456   :  { %5913 = vmatprep.subr.bf16.mxu0 %v11722_v23  ;;  %v11735_v23 = vld [vmem:[#allocation10 + $0x1e8] ss:$20 sps:$4 sm:$0xff]  }
 0x459   :  { %5914 = vmatpush1.bf16.msra.mxu0 %v11720_v24  ;;  %v11740_v24 = vld [vmem:[#allocation10 + $0x20c] ss:$20 sps:$4 sm:$0xff]  }
 0x45a   :  { %5915 = vmatprep.subr.bf16.mxu0 %v11728_v27  ;;  %v11743_v27 = vld [vmem:[#allocation10 + $0x214] ss:$20 sps:$4 sm:$0xff]  }
 0x45d   :  { %5916 = vmatpush1.bf16.msra.mxu0 %v11726_v18  ;;  %v11738_v18 = vld [vmem:[#allocation10 + $0x208] ss:$20 sps:$4 sm:$0xff]  }
 0x45e   :  { %5917 = vmatprep.subr.bf16.mxu0 %v11734_v21 }
 0x461   :  { %5918 = vmatpush1.bf16.msra.mxu0 %v11732_v22  ;;  %v11786_v22 = vld [vmem:[#allocation10 + $0x348] ss:$20 sps:$4 sm:$0xff]  }
 0x462   :  { %5919 = vmatprep.subr.bf16.mxu0 %v11740_v24  ;;  %v11794_v24 = vld [vmem:[#allocation10 + $0x374] ss:$20 sps:$4 sm:$0xff]  }
 0x465   :  { %5920 = vmatpush1.bf16.msra.mxu0 %v11738_v18  ;;  %v11792_v18 = vld [vmem:[#allocation10 + $0x370] ss:$20 sps:$4 sm:$0xff]  }
 0x503   :  { %v4819_v30 = vpop.f32.mrb[28].mxu0 }
 0x504   :  { %v10702_v31 = vadd.f32 %v4819_v30, %v4497_v28  ;;  %v4821_v6 = vpop.f32.mrb[29].mxu0  ;;  %v11746_v28 = vld [vmem:[#allocation10 + $0x234] ss:$20 sps:$4 sm:$0xff]   ;;  %v11744_v30 = vld [vmem:[#allocation10 + $0x230] ss:$20 sps:$4 sm:$0xff]  }
 0x505   :  { %v10703_v19 = vadd.f32 %v4821_v6, %v4501_v29  ;;  %v4823_v33 = vpop.f32.mrb[30].mxu0  ;;  %v11749_v29 = vld [vmem:[#allocation10 + $0x23c] ss:$20 sps:$4 sm:$0xff]   ;;  %5921 = vmatprep.subr.bf16.mxu0 %v11746_v28 }
 0x506   :  { %9261 = vst [vmem:[#allocation14] sm:$0xff] %v10702_v31  ;;  %v4824_v34 = vpop.f32.mrb[31].mxu0  ;;  %v11752_v6 = vld [vmem:[#allocation10 + $0x25c] ss:$20 sps:$4 sm:$0xff]   ;;  %5922 = vmatpush1.bf16.msra.mxu0 %v11744_v30  ;;  %v11750_v33 = vld [vmem:[#allocation10 + $0x258] ss:$20 sps:$4 sm:$0xff]  }
 0x507   :  { %v4828_v36 = vmul.f32 0.5, %v10703_v19  ;;  %9262 = vst [vmem:[#allocation15] sm:$0xff] %v10703_v19  ;;  %v11755_v19 = vld [vmem:[#allocation10 + $0x264] ss:$20 sps:$4 sm:$0xff]   ;;  %v11753_v34 = vld [vmem:[#allocation10 + $0x260] ss:$20 sps:$4 sm:$0xff]   ;;  %5923 = vmatprep.subr.bf16.mxu0 %v11752_v6 }
 0x508   :  { %v11800_v28 = vld [vmem:[#allocation10 + $0x39c] ss:$20 sps:$4 sm:$0xff]   ;;  %v11798_v30 = vld [vmem:[#allocation10 + $0x398] ss:$20 sps:$4 sm:$0xff]  }
 0x509   :  { %v4829_v37 = vmul.f32 1.442695, %v4828_v36  ;;  %v11758_v36 = vld [vmem:[#allocation10 + $0x284] ss:$20 sps:$4 sm:$0xff]  }
 0x50a   :  { %5924 = vmatpush1.bf16.msra.mxu0 %v11750_v33  ;;  %v11804_v6 = vld [vmem:[#allocation10 + $0x150] ss:$20 sps:$4 sm:$0xff]  }
 0x50b   :  { %12444 = vpow2.f32 %v4829_v37  ;;  %v11761_v37 = vld [vmem:[#allocation10 + $0x28c] ss:$20 sps:$4 sm:$0xff]   ;;  %5934 = vmatprep.subr.bf16.mxu0 %v11758_v36  ;;  %v11806_v33 = vld [vmem:[#allocation10 + $0x290] ss:$20 sps:$4 sm:$0xff]  }
 0x515   :  { %v12445_v44 = vpop.eup %12444 }
 0x516   :  { %v4831_v26 = vmul.f32 %v12445_v44, %v4827_v42  ;;  %v4871_v42 = vrot.slane %v4866_v40, %v12933_v39  ;;  %v4875_v44 = vrot.slane %v4866_v40, %v12936_v25 }
 0x518   :  { %v4832_v46 = vadd.f32 %v10702_v31, %v4831_v26  ;;  %v11747_v31 = vld [vmem:[#allocation10 + $0x238] ss:$20 sps:$4 sm:$0xff]  }
 0x51a   :  { %v4833_v49 = vpack.c.bf16 %v4832_v46, %v4832_v46 }
 0x51c   :  { %5044 = vmatmul.mubr.bf16.vlgmr.msra.gmra.mrb[20].mxu1 %v4833_v49 }
 0x51d   :  { %10655 = vmatpush3.bf16.msra.mxu1 %v11652_v48  ;;  %10670 = vmatprep.mubr.msk.bf16.mxu1 %vm12690_vm0, %v12688_v43 }
 0x51e   :  { %10656 = vmatprep.subr.bf16.mxu1 %v12688_v43 }
 0x521   :  { %10657 = vmatpush3.bf16.msra.mxu1 %v11653_v50 }
 0x522   :  { %10658 = vmatprep.subr.bf16.mxu1 %v12688_v43 }
 0x525   :  { %10659 = vmatpush3.bf16.msra.mxu1 %v11654_v52 }
 0x526   :  { %10660 = vmatprep.subr.bf16.mxu1 %v12688_v43 }
 0x529   :  { %10661 = vmatpush3.bf16.msra.mxu1 %v11655_v53 }
 0x52a   :  { %10662 = vmatprep.subr.bf16.mxu1 %v12688_v43 }
 0x52d   :  { %10663 = vmatpush3.bf16.msra.mxu1 %v11656_v54 }
 0x52e   :  { %10664 = vmatprep.subr.bf16.mxu1 %v12688_v43 }
 0x531   :  { %10665 = vmatpush3.bf16.msra.mxu1 %v11657_v56  ;;  %v11756_v56 = vld [vmem:[#allocation10 + $0x280] ss:$20 sps:$4 sm:$0xff]  }
 0x532   :  { %10666 = vmatprep.subr.bf16.mxu1 %v12688_v43 }
 0x535   :  { %10667 = vmatpush3.bf16.msra.mxu1 %v11658_v57  ;;  %v11759_v57 = vld [vmem:[#allocation10 + $0x288] ss:$20 sps:$4 sm:$0xff]  }
 0x536   :  { %10668 = vmatprep.subr.bf16.mxu1 %v12688_v43 }
 0x539   :  { %10669 = vmatpush3.bf16.msra.mxu1 %v11659_v47 }
 0x53a   :  { %5975 = vmatprep.subr.bf16.mxu1 %v11665_v58  ;;  %v11764_v58 = vld [vmem:[#allocation10 + $0x2ac] ss:$20 sps:$4 sm:$0xff]  }
 0x53c   :  { %10671 = vmatmul.mubr.bf16.vlgmr.msra.gmra.mrb[24].mxu1 %v4833_v49 }
 0x53d   :  { %5976 = vmatpush1.bf16.msra.mxu1 %v11663_v63  ;;  %v11767_v63 = vld [vmem:[#allocation10 + $0x2b4] ss:$20 sps:$4 sm:$0xff]  }
 0x53e   :  { %5977 = vmatprep.subr.bf16.mxu1 %v11671_v59 }
 0x541   :  { %5978 = vmatpush1.bf16.msra.mxu1 %v11669_v0  ;;  %v11762_v0 = vld [vmem:[#allocation10 + $0x2a8] ss:$20 sps:$4 sm:$0xff]  }
 0x542   :  { %5979 = vmatprep.subr.bf16.mxu1 %v11677_v60  ;;  %v11765_v60 = vld [vmem:[#allocation10 + $0x2b0] ss:$20 sps:$4 sm:$0xff]  }
 0x545   :  { %5980 = vmatpush1.bf16.msra.mxu1 %v11675_v61  ;;  %v11770_v61 = vld [vmem:[#allocation10 + $0x2d4] ss:$20 sps:$4 sm:$0xff]  }
 0x546   :  { %5981 = vmatprep.subr.bf16.mxu1 %v11683_v62  ;;  %v11773_v62 = vld [vmem:[#allocation10 + $0x2dc] ss:$20 sps:$4 sm:$0xff]  }
 0x549   :  { %5982 = vmatpush1.bf16.msra.mxu1 %v11681_v1  ;;  %v11768_v1 = vld [vmem:[#allocation10 + $0x2d0] ss:$20 sps:$4 sm:$0xff]  }
 0x54a   :  { %5983 = vmatprep.subr.bf16.mxu1 %v11689_v2  ;;  %v11771_v2 = vld [vmem:[#allocation10 + $0x2d8] ss:$20 sps:$4 sm:$0xff]  }
 0x54d   :  { %5984 = vmatpush1.bf16.msra.mxu1 %v11687_v14  ;;  %v11776_v14 = vld [vmem:[#allocation10 + $0x2fc] ss:$20 sps:$4 sm:$0xff]  }
 0x54e   :  { %5985 = vmatprep.subr.bf16.mxu1 %v11695_v20  ;;  %v11779_v20 = vld [vmem:[#allocation10 + $0x304] ss:$20 sps:$4 sm:$0xff]  }
 0x551   :  { %5986 = vmatpush1.bf16.msra.mxu1 %v11693_v38  ;;  %v11774_v38 = vld [vmem:[#allocation10 + $0x2f8] ss:$20 sps:$4 sm:$0xff]  }
 0x552   :  { %5987 = vmatprep.subr.bf16.mxu1 %v11701_v32  ;;  %v11777_v32 = vld [vmem:[#allocation10 + $0x300] ss:$20 sps:$4 sm:$0xff]  }
 0x555   :  { %5988 = vmatpush1.bf16.msra.mxu1 %v11699_v3  ;;  %v4879_v3 = vrot.slane %v4866_v40, %v12950_v15  ;;  %v11809_v40 = vld [vmem:[#allocation10 + $0x2b8] ss:$20 sps:$4 sm:$0xff]  }
 0x556   :  { %5989 = vmatprep.subr.bf16.mxu1 %v11707_v51  ;;  %v11782_v51 = vld [vmem:[#allocation10 + $0x324] ss:$20 sps:$4 sm:$0xff]  }
 0x559   :  { %5990 = vmatpush1.bf16.msra.mxu1 %v11705_v55  ;;  %v11785_v55 = vld [vmem:[#allocation10 + $0x32c] ss:$20 sps:$4 sm:$0xff]  }
 0x55a   :  { %5991 = vmatprep.subr.bf16.mxu1 %v11713_v4 }
 0x55d   :  { %5992 = vmatpush1.bf16.msra.mxu1 %v11711_v5  ;;  %v11780_v5 = vld [vmem:[#allocation10 + $0x320] ss:$20 sps:$4 sm:$0xff]  }
 0x55e   :  { %5993 = vmatprep.subr.bf16.mxu1 %v11719_v8  ;;  %v11783_v8 = vld [vmem:[#allocation10 + $0x328] ss:$20 sps:$4 sm:$0xff]  }
 0x561   :  { %5994 = vmatpush1.bf16.msra.mxu1 %v11717_v9 }
 0x562   :  { %5995 = vmatprep.subr.bf16.mxu1 %v11725_v11 }
 0x565   :  { %5996 = vmatpush1.bf16.msra.mxu1 %v11723_v12  ;;  %v11788_v12 = vld [vmem:[#allocation10 + $0x34c] ss:$20 sps:$4 sm:$0xff]  }
 0x566   :  { %5997 = vmatprep.subr.bf16.mxu1 %v11731_v13  ;;  %v11791_v13 = vld [vmem:[#allocation10 + $0x354] ss:$20 sps:$4 sm:$0xff]  }
 0x569   :  { %5998 = vmatpush1.bf16.msra.mxu1 %v11729_v17 }
 0x56a   :  { %5999 = vmatprep.subr.bf16.mxu1 %v11737_v7 }
 0x56d   :  { %6000 = vmatpush1.bf16.msra.mxu1 %v11735_v23  ;;  %v11789_v23 = vld [vmem:[#allocation10 + $0x350] ss:$20 sps:$4 sm:$0xff]  }
 0x56e   :  { %6001 = vmatprep.subr.bf16.mxu1 %v11743_v27  ;;  %v11797_v27 = vld [vmem:[#allocation10 + $0x37c] ss:$20 sps:$4 sm:$0xff]  }
 0x571   :  { %6002 = vmatpush1.bf16.msra.mxu1 %v11741_v10  ;;  %v11795_v10 = vld [vmem:[#allocation10 + $0x378] ss:$20 sps:$4 sm:$0xff]  }
 0x572   :  { %6003 = vmatprep.subr.bf16.mxu1 %v11749_v29  ;;  %v11803_v29 = vld [vmem:[#allocation10 + $0x3a4] ss:$20 sps:$4 sm:$0xff]  }
 0x575   :  { %6004 = vmatpush1.bf16.msra.mxu1 %v11747_v31  ;;  %v11801_v31 = vld [vmem:[#allocation10 + $0x3a0] ss:$20 sps:$4 sm:$0xff]  }
 0x576   :  { %6005 = vmatprep.subr.bf16.mxu1 %v11755_v19  ;;  %v11805_v19 = vld [vmem:[#allocation10 + $0x10] ss:$20 sps:$4 sm:$0xff]  }
 0x579   :  { %6006 = vmatpush1.bf16.msra.mxu1 %v11753_v34  ;;  %v11807_v34 = vld [vmem:[#allocation10 + $0x178] ss:$20 sps:$4 sm:$0xff]  }
 0x57a   :  { %6016 = vmatprep.subr.bf16.mxu1 %v11761_v37  ;;  %v11808_v37 = vld [vmem:[#allocation10 + $0x38] ss:$20 sps:$4 sm:$0xff]  }
 0x5ef   :  { %v5045_v26 = vpop.f32.mrb[20].mxu1 }
 0x5f0   :  { %v5046_v46 = vadd.f32 %v5045_v26, %v4871_v42  ;;  %v5047_v48 = vpop.f32.mrb[21].mxu1  ;;  %v11810_v42 = vld [vmem:[#allocation10 + $0x1a0] ss:$20 sps:$4 sm:$0xff]  }
 0x5f1   :  { %v5048_v49 = vadd.f32 %v5047_v48, %v4875_v44  ;;  %v5049_v50 = vpop.f32.mrb[22].mxu1  ;;  %v11811_v44 = vld [vmem:[#allocation10 + $0x60] ss:$20 sps:$4 sm:$0xff]   ;;  %v11814_v48 = vld [vmem:[#allocation10 + $0x88] ss:$20 sps:$4 sm:$0xff]  }
 0x5f2   :  { %v5092_v52 = vpack.c.bf16 %v5046_v46, %v5046_v46  ;;  %v5050_v53 = vpop.f32.mrb[23].mxu1  ;;  %v11812_v26 = vld [vmem:[#allocation10 + $0x2e0] ss:$20 sps:$4 sm:$0xff]   ;;  %v11813_v46 = vld [vmem:[#allocation10 + $0x1c8] ss:$20 sps:$4 sm:$0xff]  }
 0x5f3   :  { %v5093_v54 = vpack.c.bf16 %v5048_v49, %v5048_v49  ;;  %v11815_v49 = vld [vmem:[#allocation10 + $0x308] ss:$20 sps:$4 sm:$0xff]   ;;  %v11816_v50 = vld [vmem:[#allocation10 + $0x1f0] ss:$20 sps:$4 sm:$0xff]  }
 0x5f4   :  { %v11818_v53 = vld [vmem:[#allocation10 + $0x330] ss:$20 sps:$4 sm:$0xff]  }
 0x5f5   :  { %12446 = vtanh.bf16 %v5093_v54  ;;  %v11819_v54 = vld [vmem:[#allocation10 + $0x218] ss:$20 sps:$4 sm:$0xff]  }
 0x5f6   :  { %12448 = vtanh.bf16 %v5092_v52  ;;  %v11817_v52 = vld [vmem:[#allocation10 + $0xb0] ss:$20 sps:$4 sm:$0xff]  }
 0x600   :  { %v12999_v47 = vpop.eup %12446 }
 0x601   :  { %v13001_v59 = vpop.eup %12448  ;;  %5925 = vmatprep.mubr.bf16.mxu0 %v12999_v47  ;;  %6007 = vmatprep.mubr.bf16.mxu1 %v12999_v47 }
 0x602   :  { %5926 = vmatmul.mubr.bf16.vlgmr.msra.gmra.mrb[32].mxu0 %v13001_v59  ;;  %6008 = vmatmul.mubr.bf16.vlgmr.msra.gmra.mrb[28].mxu1 %v13001_v59 }
 0x603   :  { %5935 = vmatpush1.bf16.msra.mxu0 %v11756_v56  ;;  %6017 = vmatpush1.bf16.msra.mxu1 %v11759_v57  ;;  %v11820_v56 = vld [vmem:[#allocation10 + $0xd8] ss:$20 sps:$4 sm:$0xff]  }
 0x604   :  { %5936 = vmatprep.subr.bf16.mxu0 %v11764_v58  ;;  %6018 = vmatprep.subr.bf16.mxu1 %v11767_v63  ;;  %v11821_v57 = vld [vmem:[#allocation10 + $0x358] ss:$20 sps:$4 sm:$0xff]   ;;  %v11823_v58 = vld [vmem:[#allocation10 + $0x100] ss:$20 sps:$4 sm:$0xff]  }
 0x605   :  { %5966 = vmatprep.mubr.bf16.mxu0 %v12689_v41  ;;  %6048 = vmatprep.mubr.bf16.mxu1 %v12689_v41  ;;  %v11824_v63 = vld [vmem:[#allocation10 + $0x380] ss:$20 sps:$4 sm:$0xff]  }
 0x607   :  { %5937 = vmatpush1.bf16.msra.mxu0 %v11762_v0  ;;  %6019 = vmatpush1.bf16.msra.mxu1 %v11765_v60  ;;  %v11825_v0 = vld [vmem:[#allocation10 + $0x268] ss:$20 sps:$4 sm:$0xff]  }
 0x608   :  { %5938 = vmatprep.subr.bf16.mxu0 %v11770_v61  ;;  %6020 = vmatprep.subr.bf16.mxu1 %v11773_v62  ;;  %v11826_v60 = vld [vmem:[#allocation10 + $0x128] ss:$20 sps:$4 sm:$0xff]   ;;  %v11830_v62 = vld [vmem:[#allocation11 + $0x4] ss:$40 sps:$4 sm:$0xff]  }
 0x609   :  { %v11827_v61 = vld [vmem:[#allocation10 + $0x3a8] ss:$20 sps:$4 sm:$0xff]  }
 0x60b   :  { %5939 = vmatpush1.bf16.msra.mxu0 %v11768_v1  ;;  %6021 = vmatpush1.bf16.msra.mxu1 %v11771_v2  ;;  %v11833_v1 = vld [vmem:[#allocation11 + $0xc] ss:$40 sps:$4 sm:$0xff]   ;;  %v11828_v2 = vld [vmem:[#allocation11] ss:$40 sps:$4 sm:$0xff]  }
 0x60c   :  { %5940 = vmatprep.subr.bf16.mxu0 %v11776_v14  ;;  %6022 = vmatprep.subr.bf16.mxu1 %v11779_v20  ;;  %v11831_v14 = vld [vmem:[#allocation11 + $0x8] ss:$40 sps:$4 sm:$0xff]   ;;  %v11836_v20 = vld [vmem:[#allocation11 + $0x54] ss:$40 sps:$4 sm:$0xff]  }
 0x60f   :  { %v5086_v4 = vpop.f32.mrb[24].mxu1  ;;  %5941 = vmatpush1.bf16.msra.mxu0 %v11774_v38  ;;  %6023 = vmatpush1.bf16.msra.mxu1 %v11777_v32  ;;  %v11839_v38 = vld [vmem:[#allocation11 + $0x5c] ss:$40 sps:$4 sm:$0xff]   ;;  %v11834_v32 = vld [vmem:[#allocation11 + $0x50] ss:$40 sps:$4 sm:$0xff]  }
 0x610   :  { %v5087_v9 = vadd.f32 %v5086_v4, %v4879_v3  ;;  %v10672_v11 = vpop.f32.mrb[25].mxu1  ;;  %5942 = vmatprep.subr.bf16.mxu0 %v11782_v51  ;;  %6024 = vmatprep.subr.bf16.mxu1 %v11785_v55  ;;  %v11837_v3 = vld [vmem:[#allocation11 + $0x58] ss:$40 sps:$4 sm:$0xff]   ;;  %v11842_v51 = vld [vmem:[#allocation11 + $0xa4] ss:$40 sps:$4 sm:$0xff]  }
 0x611   :  { %v5089_v17 = vpop.f32.mrb[26].mxu1  ;;  %v11840_v55 = vld [vmem:[#allocation11 + $0xa0] ss:$40 sps:$4 sm:$0xff]   ;;  %v11854_v11 = vld [vmem:[#allocation11 + $0x144] ss:$40 sps:$4 sm:$0xff]  }
 0x612   :  { %v5094_v21 = vpack.c.bf16 %v5087_v9, %v5087_v9  ;;  %v10673_v7 = vpop.f32.mrb[27].mxu1  ;;  %v11843_v4 = vld [vmem:[#allocation11 + $0xa8] ss:$40 sps:$4 sm:$0xff]   ;;  %v11849_v9 = vld [vmem:[#allocation11 + $0xf8] ss:$40 sps:$4 sm:$0xff]  }
 0x613   :  { %5943 = vmatpush1.bf16.msra.mxu0 %v11780_v5  ;;  %6025 = vmatpush1.bf16.msra.mxu1 %v11783_v8  ;;  %v11848_v5 = vld [vmem:[#allocation11 + $0xf4] ss:$40 sps:$4 sm:$0xff]   ;;  %v11855_v17 = vld [vmem:[#allocation11 + $0x148] ss:$40 sps:$4 sm:$0xff]  }
 0x614   :  { %5944 = vmatprep.subr.bf16.mxu0 %v11788_v12  ;;  %6026 = vmatprep.subr.bf16.mxu1 %v11791_v13  ;;  %12450 = vtanh.bf16 %v5094_v21  ;;  %v11851_v8 = vld [vmem:[#allocation11 + $0xfc] ss:$40 sps:$4 sm:$0xff]   ;;  %v11857_v12 = vld [vmem:[#allocation11 + $0x14c] ss:$40 sps:$4 sm:$0xff]   ;;  %v11852_v13 = vld [vmem:[#allocation11 + $0x140] ss:$40 sps:$4 sm:$0xff]  }
 0x615   :  { %v11860_v21 = vld [vmem:[#allocation11 + $0x194] ss:$40 sps:$4 sm:$0xff]  }
 0x616   :  { %v11863_v7 = vld [vmem:[#allocation11 + $0x19c] ss:$40 sps:$4 sm:$0xff]  }
 0x617   :  { %5945 = vmatpush1.bf16.msra.mxu0 %v11786_v22  ;;  %6027 = vmatpush1.bf16.msra.mxu1 %v11789_v23  ;;  %v11858_v22 = vld [vmem:[#allocation11 + $0x190] ss:$40 sps:$4 sm:$0xff]  }
 0x618   :  { %5946 = vmatprep.subr.bf16.mxu0 %v11794_v24  ;;  %6028 = vmatprep.subr.bf16.mxu1 %v11797_v27  ;;  %v11861_v23 = vld [vmem:[#allocation11 + $0x198] ss:$40 sps:$4 sm:$0xff]   ;;  %v11866_v24 = vld [vmem:[#allocation11 + $0x1e4] ss:$40 sps:$4 sm:$0xff]  }
 0x619   :  { %v11869_v27 = vld [vmem:[#allocation11 + $0x1ec] ss:$40 sps:$4 sm:$0xff]  }
 0x61b   :  { %5947 = vmatpush1.bf16.msra.mxu0 %v11792_v18  ;;  %6029 = vmatpush1.bf16.msra.mxu1 %v11795_v10  ;;  %v11864_v18 = vld [vmem:[#allocation11 + $0x1e0] ss:$40 sps:$4 sm:$0xff]  }
 0x61c   :  { %5948 = vmatprep.subr.bf16.mxu0 %v11800_v28  ;;  %6030 = vmatprep.subr.bf16.mxu1 %v11803_v29  ;;  %v11867_v10 = vld [vmem:[#allocation11 + $0x1e8] ss:$40 sps:$4 sm:$0xff]   ;;  %v11872_v28 = vld [vmem:[#allocation11 + $0x234] ss:$40 sps:$4 sm:$0xff]  }
 0x61d   :  { %v11875_v29 = vld [vmem:[#allocation11 + $0x23c] ss:$40 sps:$4 sm:$0xff]  }
 0x61f   :  { %5949 = vmatpush1.bf16.msra.mxu0 %v11798_v30  ;;  %6031 = vmatpush1.bf16.msra.mxu1 %v11801_v31  ;;  %v13011_v36 = vpop.eup %12450  ;;  %v11870_v30 = vld [vmem:[#allocation11 + $0x230] ss:$40 sps:$4 sm:$0xff]  }
 0x620   :  { %10603 = vmatprep.subr.bf16.mxu0 %v11804_v6  ;;  %10674 = vmatprep.subr.bf16.mxu1 %v12688_v43  ;;  %v11873_v31 = vld [vmem:[#allocation11 + $0x238] ss:$40 sps:$4 sm:$0xff]   ;;  %v11878_v6 = vld [vmem:[#allocation11 + $0x284] ss:$40 sps:$4 sm:$0xff]  }
 0x622   :  { %5967 = vmatmul.mubr.bf16.vlgmr.msra.gmra.mrb[32].mxu0 %v13011_v36  ;;  %6049 = vmatmul.mubr.bf16.vlgmr.msra.gmra.mrb[28].mxu1 %v13011_v36 }
 0x623   :  { %10604 = vmatpush3.bf16.msra.mxu0 %v11805_v19  ;;  %6089 = vmatprep.mubr.bf16.mxu0 %v12999_v47  ;;  %v11822_v47 = vld [vmem:[#allocation10 + $0x240] ss:$20 sps:$4 sm:$0xff]  }
 0x624   :  { %10675 = vmatpush3.bf16.msra.mxu1 %v11806_v33  ;;  %10605 = vmatprep.subr.bf16.mxu0 %v11807_v34  ;;  %v11881_v19 = vld [vmem:[#allocation11 + $0x28c] ss:$40 sps:$4 sm:$0xff]   ;;  %v11876_v33 = vld [vmem:[#allocation11 + $0x280] ss:$40 sps:$4 sm:$0xff]  }
 0x625   :  { %10676 = vmatprep.subr.bf16.mxu1 %v12688_v43  ;;  %10690 = vmatprep.mubr.msk.bf16.mxu1 %vm12690_vm0, %v12688_v43  ;;  %v11879_v34 = vld [vmem:[#allocation11 + $0x288] ss:$40 sps:$4 sm:$0xff]  }
 0x627   :  { %10606 = vmatpush3.bf16.msra.mxu0 %v11808_v37  ;;  %v11887_v37 = vld [vmem:[#allocation11 + $0x2dc] ss:$40 sps:$4 sm:$0xff]  }
 0x628   :  { %10677 = vmatpush3.bf16.msra.mxu1 %v11809_v40  ;;  %10607 = vmatprep.subr.bf16.mxu0 %v11810_v42  ;;  %v11882_v40 = vld [vmem:[#allocation11 + $0x2d0] ss:$40 sps:$4 sm:$0xff]  }
 0x629   :  { %10678 = vmatprep.subr.bf16.mxu1 %v12688_v43  ;;  %v11885_v42 = vld [vmem:[#allocation11 + $0x2d8] ss:$40 sps:$4 sm:$0xff]  }
 0x62b   :  { %10608 = vmatpush3.bf16.msra.mxu0 %v11811_v44  ;;  %v11890_v44 = vld [vmem:[#allocation11 + $0x324] ss:$40 sps:$4 sm:$0xff]  }
 0x62c   :  { %10679 = vmatpush3.bf16.msra.mxu1 %v11812_v26  ;;  %10609 = vmatprep.subr.bf16.mxu0 %v11813_v46  ;;  %v11893_v26 = vld [vmem:[#allocation11 + $0x32c] ss:$40 sps:$4 sm:$0xff]   ;;  %v11888_v46 = vld [vmem:[#allocation11 + $0x320] ss:$40 sps:$4 sm:$0xff]  }
 0x62d   :  { %10680 = vmatprep.subr.bf16.mxu1 %v12688_v43 }
 0x62f   :  { %10610 = vmatpush3.bf16.msra.mxu0 %v11814_v48  ;;  %v11891_v48 = vld [vmem:[#allocation11 + $0x328] ss:$40 sps:$4 sm:$0xff]  }
 0x630   :  { %10681 = vmatpush3.bf16.msra.mxu1 %v11815_v49  ;;  %10611 = vmatprep.subr.bf16.mxu0 %v11816_v50  ;;  %v11896_v49 = vld [vmem:[#allocation11 + $0x374] ss:$40 sps:$4 sm:$0xff]  }
 0x631   :  { %10682 = vmatprep.subr.bf16.mxu1 %v12688_v43  ;;  %v11899_v50 = vld [vmem:[#allocation11 + $0x37c] ss:$40 sps:$4 sm:$0xff]  }
 0x633   :  { %10612 = vmatpush3.bf16.msra.mxu0 %v11817_v52  ;;  %v11894_v52 = vld [vmem:[#allocation11 + $0x370] ss:$40 sps:$4 sm:$0xff]  }
 0x634   :  { %10683 = vmatpush3.bf16.msra.mxu1 %v11818_v53  ;;  %10613 = vmatprep.subr.bf16.mxu0 %v11819_v54  ;;  %v11897_v53 = vld [vmem:[#allocation11 + $0x378] ss:$40 sps:$4 sm:$0xff]   ;;  %v11902_v54 = vld [vmem:[#allocation11 + $0x3c4] ss:$40 sps:$4 sm:$0xff]  }
 0x635   :  { %10684 = vmatprep.subr.bf16.mxu1 %v12688_v43 }
 0x637   :  { %10614 = vmatpush3.bf16.msra.mxu0 %v11820_v56  ;;  %v11905_v56 = vld [vmem:[#allocation11 + $0x3cc] ss:$40 sps:$4 sm:$0xff]  }
 0x638   :  { %10685 = vmatpush3.bf16.msra.mxu1 %v11821_v57  ;;  %10615 = vmatprep.subr.bf16.mxu0 %v11822_v47  ;;  %v11900_v57 = vld [vmem:[#allocation11 + $0x3c0] ss:$40 sps:$4 sm:$0xff]  }
 0x639   :  { %10686 = vmatprep.subr.bf16.mxu1 %v12688_v43  ;;  %v11903_v47 = vld [vmem:[#allocation11 + $0x3c8] ss:$40 sps:$4 sm:$0xff]  }
 0x63b   :  { %10616 = vmatpush3.bf16.msra.mxu0 %v11823_v58  ;;  %v11908_v58 = vld [vmem:[#allocation11 + $0x414] ss:$40 sps:$4 sm:$0xff]  }
 0x63c   :  { %10687 = vmatpush3.bf16.msra.mxu1 %v11824_v63  ;;  %10617 = vmatprep.subr.bf16.mxu0 %v11825_v0  ;;  %v11911_v63 = vld [vmem:[#allocation11 + $0x41c] ss:$40 sps:$4 sm:$0xff]   ;;  %v11906_v0 = vld [vmem:[#allocation11 + $0x410] ss:$40 sps:$4 sm:$0xff]  }
 0x63d   :  { %10688 = vmatprep.subr.bf16.mxu1 %v12688_v43  ;;  %v11845_v43 = vld [vmem:[#allocation11 + $0xac] ss:$40 sps:$4 sm:$0xff]  }
 0x63f   :  { %10618 = vmatpush3.bf16.msra.mxu0 %v11826_v60  ;;  %v11909_v60 = vld [vmem:[#allocation11 + $0x418] ss:$40 sps:$4 sm:$0xff]  }
 0x640   :  { %10689 = vmatpush3.bf16.msra.mxu1 %v11827_v61  ;;  %8601 = vmatprep.subr.bf16.mxu0 %v11830_v62  ;;  %v11914_v61 = vld [vmem:[#allocation11 + $0x464] ss:$40 sps:$4 sm:$0xff]   ;;  %v11912_v62 = vld [vmem:[#allocation11 + $0x460] ss:$40 sps:$4 sm:$0xff]  }
 0x641   :  { %8724 = vmatprep.subr.bf16.mxu1 %v11833_v1  ;;  %v11915_v1 = vld [vmem:[#allocation11 + $0x468] ss:$40 sps:$4 sm:$0xff]  }
 0x642   :  { %6090 = vmatmul.mubr.bf16.vlgmr.msra.gmra.mrb[36].mxu0 %v13001_v59  ;;  %v11846_v59 = vld [vmem:[#allocation11 + $0xf0] ss:$40 sps:$4 sm:$0xff]  }
 0x643   :  { %10691 = vmatmul.mubr.bf16.vlgmr.msra.gmra.mrb[32].mxu1 %v13011_v36  ;;  %8602 = vmatpush1.bf16.msra.mxu0 %v11828_v2  ;;  %v11884_v36 = vld [vmem:[#allocation11 + $0x2d4] ss:$40 sps:$4 sm:$0xff]  }
 0x644   :  { %8725 = vmatpush1.bf16.msra.mxu1 %v11831_v14  ;;  %8603 = vmatprep.subr.bf16.mxu0 %v11836_v20  ;;  %v11917_v2 = vld [vmem:[#allocation11 + $0x46c] ss:$40 sps:$4 sm:$0xff]   ;;  %v11923_v20 = vld [vmem:[#allocation11 + $0x4bc] ss:$40 sps:$4 sm:$0xff]  }
 0x645   :  { %8726 = vmatprep.subr.bf16.mxu1 %v11839_v38  ;;  %v11920_v14 = vld [vmem:[#allocation11 + $0x4b4] ss:$40 sps:$4 sm:$0xff]   ;;  %v11918_v38 = vld [vmem:[#allocation11 + $0x4b0] ss:$40 sps:$4 sm:$0xff]  }
 0x647   :  { %8604 = vmatpush1.bf16.msra.mxu0 %v11834_v32  ;;  %v11921_v32 = vld [vmem:[#allocation11 + $0x4b8] ss:$40 sps:$4 sm:$0xff]  }
 0x648   :  { %8727 = vmatpush1.bf16.msra.mxu1 %v11837_v3  ;;  %8605 = vmatprep.subr.bf16.mxu0 %v11842_v51  ;;  %v11926_v3 = vld [vmem:[#allocation11 + $0x504] ss:$40 sps:$4 sm:$0xff]  }
 0x649   :  { %8728 = vmatprep.subr.bf16.mxu1 %v11845_v43  ;;  %v11929_v51 = vld [vmem:[#allocation11 + $0x50c] ss:$40 sps:$4 sm:$0xff]  }
 0x64a   :  { %v13027_v43 = vld [vmem:[#allocation13 + $0xd] sm:$0x1f] }
 0x64b   :  { %8606 = vmatpush1.bf16.msra.mxu0 %v11840_v55  ;;  %v5247_v55 = vrot.slane %v13027_v43, %v12933_v39 }
 0x64c   :  { %8729 = vmatpush1.bf16.msra.mxu1 %v11843_v4  ;;  %8607 = vmatprep.subr.bf16.mxu0 %v11848_v5  ;;  %v5251_v4 = vrot.slane %v13027_v43, %v12936_v25  ;;  %v5259_v5 = vrot.slane %v13027_v43, %v12953_v16 }
 0x64d   :  { %8730 = vmatprep.subr.bf16.mxu1 %v11851_v8 }
 0x64f   :  { %8608 = vmatpush1.bf16.msra.mxu0 %v11846_v59 }
 0x650   :  { %8731 = vmatpush1.bf16.msra.mxu1 %v11849_v9  ;;  %8609 = vmatprep.subr.bf16.mxu0 %v11854_v11 }
 0x651   :  { %8732 = vmatprep.subr.bf16.mxu1 %v11857_v12 }
 0x653   :  { %8610 = vmatpush1.bf16.msra.mxu0 %v11852_v13 }
 0x654   :  { %8733 = vmatpush1.bf16.msra.mxu1 %v11855_v17  ;;  %8611 = vmatprep.subr.bf16.mxu0 %v11860_v21 }
 0x655   :  { %8734 = vmatprep.subr.bf16.mxu1 %v11863_v7 }
 0x657   :  { %8612 = vmatpush1.bf16.msra.mxu0 %v11858_v22 }
 0x658   :  { %8735 = vmatpush1.bf16.msra.mxu1 %v11861_v23  ;;  %8613 = vmatprep.subr.bf16.mxu0 %v11866_v24 }
 0x659   :  { %8736 = vmatprep.subr.bf16.mxu1 %v11869_v27 }
 0x65b   :  { %8614 = vmatpush1.bf16.msra.mxu0 %v11864_v18 }
 0x65c   :  { %8737 = vmatpush1.bf16.msra.mxu1 %v11867_v10  ;;  %8615 = vmatprep.subr.bf16.mxu0 %v11872_v28  ;;  %v11924_v10 = vld [vmem:[#allocation11 + $0x500] ss:$40 sps:$4 sm:$0xff]  }
 0x65d   :  { %8738 = vmatprep.subr.bf16.mxu1 %v11875_v29  ;;  %v11927_v28 = vld [vmem:[#allocation11 + $0x508] ss:$40 sps:$4 sm:$0xff]  }
 0x65f   :  { %8616 = vmatpush1.bf16.msra.mxu0 %v11870_v30 }
 0x660   :  { %8739 = vmatpush1.bf16.msra.mxu1 %v11873_v31  ;;  %8617 = vmatprep.subr.bf16.mxu0 %v11878_v6  ;;  %v11932_v31 = vld [vmem:[#allocation11 + $0x554] ss:$40 sps:$4 sm:$0xff]  }
 0x661   :  { %8740 = vmatprep.subr.bf16.mxu1 %v11881_v19  ;;  %v11935_v6 = vld [vmem:[#allocation11 + $0x55c] ss:$40 sps:$4 sm:$0xff]  }
 0x663   :  { %8618 = vmatpush1.bf16.msra.mxu0 %v11876_v33  ;;  %v11930_v33 = vld [vmem:[#allocation11 + $0x550] ss:$40 sps:$4 sm:$0xff]  }
 0x664   :  { %8741 = vmatpush1.bf16.msra.mxu1 %v11879_v34  ;;  %8619 = vmatprep.subr.bf16.mxu0 %v11884_v36  ;;  %v11933_v34 = vld [vmem:[#allocation11 + $0x558] ss:$40 sps:$4 sm:$0xff]   ;;  %v11938_v36 = vld [vmem:[#allocation11 + $0x5a4] ss:$40 sps:$4 sm:$0xff]  }
 0x665   :  { %8742 = vmatprep.subr.bf16.mxu1 %v11887_v37  ;;  %v11941_v37 = vld [vmem:[#allocation11 + $0x5ac] ss:$40 sps:$4 sm:$0xff]  }
 0x667   :  { %8620 = vmatpush1.bf16.msra.mxu0 %v11882_v40  ;;  %v11936_v40 = vld [vmem:[#allocation11 + $0x5a0] ss:$40 sps:$4 sm:$0xff]  }
 0x668   :  { %8743 = vmatpush1.bf16.msra.mxu1 %v11885_v42  ;;  %8621 = vmatprep.subr.bf16.mxu0 %v11890_v44  ;;  %v11939_v42 = vld [vmem:[#allocation11 + $0x5a8] ss:$40 sps:$4 sm:$0xff]   ;;  %v11944_v44 = vld [vmem:[#allocation11 + $0x5f4] ss:$40 sps:$4 sm:$0xff]  }
 0x669   :  { %8744 = vmatprep.subr.bf16.mxu1 %v11893_v26  ;;  %v11947_v26 = vld [vmem:[#allocation11 + $0x5fc] ss:$40 sps:$4 sm:$0xff]  }
 0x66b   :  { %8622 = vmatpush1.bf16.msra.mxu0 %v11888_v46  ;;  %v11942_v46 = vld [vmem:[#allocation11 + $0x5f0] ss:$40 sps:$4 sm:$0xff]  }
 0x66c   :  { %8745 = vmatpush1.bf16.msra.mxu1 %v11891_v48  ;;  %8623 = vmatprep.subr.bf16.mxu0 %v11896_v49  ;;  %v11945_v48 = vld [vmem:[#allocation11 + $0x5f8] ss:$40 sps:$4 sm:$0xff]   ;;  %v11950_v49 = vld [vmem:[#allocation11 + $0x644] ss:$40 sps:$4 sm:$0xff]  }
 0x66d   :  { %8746 = vmatprep.subr.bf16.mxu1 %v11899_v50  ;;  %v11953_v50 = vld [vmem:[#allocation11 + $0x64c] ss:$40 sps:$4 sm:$0xff]  }
 0x66f   :  { %8624 = vmatpush1.bf16.msra.mxu0 %v11894_v52 }
 0x670   :  { %8747 = vmatpush1.bf16.msra.mxu1 %v11897_v53  ;;  %8625 = vmatprep.subr.bf16.mxu0 %v11902_v54  ;;  %v5263_v53 = vrot.slane %v13027_v43, %v12963_v45 }
 0x671   :  { %8748 = vmatprep.subr.bf16.mxu1 %v11905_v56 }
 0x673   :  { %8626 = vmatpush1.bf16.msra.mxu0 %v11900_v57  ;;  %v11948_v57 = vld [vmem:[#allocation11 + $0x640] ss:$40 sps:$4 sm:$0xff]  }
 0x674   :  { %8749 = vmatpush1.bf16.msra.mxu1 %v11903_v47  ;;  %8627 = vmatprep.subr.bf16.mxu0 %v11908_v58  ;;  %v11951_v47 = vld [vmem:[#allocation11 + $0x648] ss:$40 sps:$4 sm:$0xff]  }
 0x675   :  { %8750 = vmatprep.subr.bf16.mxu1 %v11911_v63 }
 0x677   :  { %8628 = vmatpush1.bf16.msra.mxu0 %v11906_v0 }
 0x678   :  { %8751 = vmatpush1.bf16.msra.mxu1 %v11909_v60  ;;  %8629 = vmatprep.subr.bf16.mxu0 %v11914_v61  ;;  %v11956_v60 = vld [vmem:[#allocation11 + $0x694] ss:$40 sps:$4 sm:$0xff]  }
 0x679   :  { %8752 = vmatprep.subr.bf16.mxu1 %v11917_v2  ;;  %v11959_v61 = vld [vmem:[#allocation11 + $0x69c] ss:$40 sps:$4 sm:$0xff]  }
 0x67b   :  { %8630 = vmatpush1.bf16.msra.mxu0 %v11912_v62 }
 0x67c   :  { %8753 = vmatpush1.bf16.msra.mxu1 %v11915_v1  ;;  %8631 = vmatprep.subr.bf16.mxu0 %v11920_v14 }
 0x67d   :  { %8754 = vmatprep.subr.bf16.mxu1 %v11923_v20  ;;  %v11954_v20 = vld [vmem:[#allocation11 + $0x690] ss:$40 sps:$4 sm:$0xff]  }
 0x67f   :  { %8632 = vmatpush1.bf16.msra.mxu0 %v11918_v38  ;;  %v11957_v38 = vld [vmem:[#allocation11 + $0x698] ss:$40 sps:$4 sm:$0xff]  }
 0x680   :  { %8755 = vmatpush1.bf16.msra.mxu1 %v11921_v32  ;;  %8642 = vmatprep.subr.bf16.mxu0 %v11926_v3  ;;  %v11962_v3 = vld [vmem:[#allocation11 + $0x6e4] ss:$40 sps:$4 sm:$0xff]  }
 0x681   :  { %8765 = vmatprep.subr.bf16.mxu1 %v11929_v51  ;;  %v11965_v51 = vld [vmem:[#allocation11 + $0x6ec] ss:$40 sps:$4 sm:$0xff]  }
 0x6f5   :  { %v5968_v8 = vpop.f32.mrb[32].mxu0  ;;  %v13035_v59 = vpop.f32.mrb[28].mxu1 }
 0x6f6   :  { %v10704_v9 = vadd.f32 %v5968_v8, %v5247_v55  ;;  %v5970_v11 = vpop.f32.mrb[33].mxu0  ;;  %v6052_v12 = vpop.f32.mrb[29].mxu1  ;;  %v11960_v55 = vld [vmem:[#allocation11 + $0x6e0] ss:$40 sps:$4 sm:$0xff]   ;;  %v11971_v8 = vld [vmem:[#allocation11 + $0x73c] ss:$40 sps:$4 sm:$0xff]  }
 0x6f7   :  { %v10705_v13 = vadd.f32 %v5970_v11, %v5251_v4  ;;  %v10707_v17 = vadd.f32 %v6052_v12, %v5259_v5  ;;  %v5972_v21 = vpop.f32.mrb[34].mxu0  ;;  %v6054_v7 = vpop.f32.mrb[30].mxu1  ;;  %v11963_v4 = vld [vmem:[#allocation11 + $0x6e8] ss:$40 sps:$4 sm:$0xff]   ;;  %v11968_v5 = vld [vmem:[#allocation11 + $0x734] ss:$40 sps:$4 sm:$0xff]  }
 0x6f8   :  { %v5973_v22 = vpop.f32.mrb[35].mxu0  ;;  %v6055_v23 = vpop.f32.mrb[31].mxu1  ;;  %v6137_v24 = vpack.c.bf16 %v10704_v9, %v10704_v9  ;;  %v11966_v9 = vld [vmem:[#allocation11 + $0x730] ss:$40 sps:$4 sm:$0xff]   ;;  %v11974_v12 = vld [vmem:[#allocation11 + $0x784] ss:$40 sps:$4 sm:$0xff]  }
 0x6f9   :  { %v6138_v27 = vpack.c.bf16 %v10705_v13, %v10705_v13  ;;  %v6140_v18 = vpack.c.bf16 %v10707_v17, %v10707_v17  ;;  %v11969_v11 = vld [vmem:[#allocation11 + $0x738] ss:$40 sps:$4 sm:$0xff]   ;;  %v11977_v13 = vld [vmem:[#allocation11 + $0x78c] ss:$40 sps:$4 sm:$0xff]   ;;  %v11975_v21 = vld [vmem:[#allocation11 + $0x788] ss:$40 sps:$4 sm:$0xff]  }
 0x6fa   :  { %v11972_v17 = vld [vmem:[#allocation11 + $0x780] ss:$40 sps:$4 sm:$0xff]   ;;  %v11980_v7 = vld [vmem:[#allocation11 + $0x7d4] ss:$40 sps:$4 sm:$0xff]   ;;  %v11978_v23 = vld [vmem:[#allocation11 + $0x7d0] ss:$40 sps:$4 sm:$0xff]  }
 0x6fb   :  { %12452 = vtanh.bf16 %v6138_v27  ;;  %v11983_v22 = vld [vmem:[#allocation11 + $0x7dc] ss:$40 sps:$4 sm:$0xff]  }
 0x6fc   :  { %12454 = vtanh.bf16 %v6137_v24  ;;  %v11981_v24 = vld [vmem:[#allocation11 + $0x7d8] ss:$40 sps:$4 sm:$0xff]   ;;  %v11986_v27 = vld [vmem:[#allocation11 + $0x824] ss:$40 sps:$4 sm:$0xff]  }
 0x6fd   :  { %12456 = vtanh.bf16 %v6140_v18  ;;  %v11989_v18 = vld [vmem:[#allocation11 + $0x82c] ss:$40 sps:$4 sm:$0xff]  }
 0x706   :  { %v13037_v29 = vpop.eup %12452 }
 0x707   :  { %v13039_v30 = vpop.eup %12454  ;;  %8633 = vmatprep.mubr.bf16.mxu0 %v13037_v29  ;;  %8756 = vmatprep.mubr.bf16.mxu1 %v13037_v29 }
 0x708   :  { %8634 = vmatmul.mubr.bf16.vlgmr.msra.gmra.mrb[40].mxu0 %v13039_v30  ;;  %8757 = vmatmul.mubr.bf16.vlgmr.msra.gmra.mrb[36].mxu1 %v13039_v30  ;;  %v13045_v19 = vpop.eup %12456 }
 0x709   :  { %8643 = vmatpush1.bf16.msra.mxu0 %v11924_v10  ;;  %8766 = vmatpush1.bf16.msra.mxu1 %v11927_v28  ;;  %v11984_v10 = vld [vmem:[#allocation11 + $0x820] ss:$40 sps:$4 sm:$0xff]  }
 0x70a   :  { %8674 = vmatprep.mubr.bf16.mxu0 %v13045_v19  ;;  %8797 = vmatprep.mubr.bf16.mxu1 %v13045_v19  ;;  %v11987_v28 = vld [vmem:[#allocation11 + $0x828] ss:$40 sps:$4 sm:$0xff]  }
 0x70b   :  { %8644 = vmatprep.subr.bf16.mxu0 %v11932_v31  ;;  %8767 = vmatprep.subr.bf16.mxu1 %v11935_v6  ;;  %v11992_v31 = vld [vmem:[#allocation11 + $0x874] ss:$40 sps:$4 sm:$0xff]  }
 0x70c   :  { %v11995_v6 = vld [vmem:[#allocation11 + $0x87c] ss:$40 sps:$4 sm:$0xff]  }
 0x70d   :  { %8645 = vmatpush1.bf16.msra.mxu0 %v11930_v33  ;;  %8768 = vmatpush1.bf16.msra.mxu1 %v11933_v34  ;;  %v5255_v33 = vrot.slane %v13027_v43, %v12950_v15  ;;  %v11990_v34 = vld [vmem:[#allocation11 + $0x870] ss:$40 sps:$4 sm:$0xff]  }
 0x70e   :  { %8646 = vmatprep.subr.bf16.mxu0 %v11938_v36  ;;  %8769 = vmatprep.subr.bf16.mxu1 %v11941_v37  ;;  %v11993_v36 = vld [vmem:[#allocation11 + $0x878] ss:$40 sps:$4 sm:$0xff]   ;;  %v11998_v37 = vld [vmem:[#allocation11 + $0x8c4] ss:$40 sps:$4 sm:$0xff]  }
 0x70f   :  { %v12002_v43 = vld [vmem:[#allocation11 + $0x910] ss:$40 sps:$4 sm:$0xff]  }
 0x711   :  { %8647 = vmatpush1.bf16.msra.mxu0 %v11936_v40  ;;  %8770 = vmatpush1.bf16.msra.mxu1 %v11939_v42  ;;  %v12001_v40 = vld [vmem:[#allocation11 + $0x8cc] ss:$40 sps:$4 sm:$0xff]   ;;  %v10706_v42 = vadd.f32 %v13035_v59, %v5255_v33  ;;  %v12008_v59 = vld [vmem:[#allocation11 + $0x960] ss:$40 sps:$4 sm:$0xff]  }
 0x712   :  { %8648 = vmatprep.subr.bf16.mxu0 %v11944_v44  ;;  %8771 = vmatprep.subr.bf16.mxu1 %v11947_v26  ;;  %v11996_v44 = vld [vmem:[#allocation11 + $0x8c0] ss:$40 sps:$4 sm:$0xff]  }
 0x713   :  { %v11999_v26 = vld [vmem:[#allocation11 + $0x8c8] ss:$40 sps:$4 sm:$0xff]   ;;  %v12065_v33 = vld [vmem:[#allocation11 + $0xc38] ss:$40 sps:$4 sm:$0xff]  }
 0x715   :  { %v10619_v52 = vpop.f32.mrb[36].mxu0  ;;  %8649 = vmatpush1.bf16.msra.mxu0 %v11942_v46  ;;  %8772 = vmatpush1.bf16.msra.mxu1 %v11945_v48  ;;  %v12004_v46 = vld [vmem:[#allocation11 + $0x914] ss:$40 sps:$4 sm:$0xff]  }
 0x716   :  { %v6131_v54 = vpop.f32.mrb[32].mxu1  ;;  %v10620_v56 = vpop.f32.mrb[37].mxu0  ;;  %8650 = vmatprep.subr.bf16.mxu0 %v11950_v49  ;;  %8773 = vmatprep.subr.bf16.mxu1 %v11953_v50  ;;  %v12007_v48 = vld [vmem:[#allocation11 + $0x91c] ss:$40 sps:$4 sm:$0xff]   ;;  %v6139_v49 = vpack.c.bf16 %v10706_v42, %v10706_v42  ;;  %v12005_v50 = vld [vmem:[#allocation11 + $0x918] ss:$40 sps:$4 sm:$0xff]  }
 0x717   :  { %v10621_v58 = vadd.f32 %v10620_v56, %v10619_v52  ;;  %v10692_v63 = vpop.f32.mrb[33].mxu1  ;;  %v10622_v0 = vpop.f32.mrb[38].mxu0  ;;  %v12010_v52 = vld [vmem:[#allocation11 + $0x964] ss:$40 sps:$4 sm:$0xff]   ;;  %v12016_v56 = vld [vmem:[#allocation11 + $0x9b4] ss:$40 sps:$4 sm:$0xff]  }
 0x718   :  { %v6134_v62 = vpop.f32.mrb[34].mxu1  ;;  %v10623_v1 = vpop.f32.mrb[39].mxu0  ;;  %12458 = vtanh.bf16 %v6139_v49  ;;  %v12022_v63 = vld [vmem:[#allocation11 + $0xa04] ss:$40 sps:$4 sm:$0xff]   ;;  %v12082_v49 = vld [vmem:[#allocation11 + $0xb4] ss:$40 sps:$4 sm:$0xff]  }
 0x719   :  { %v6092_v2 = vadd.f32 %v10621_v58, %v5263_v53  ;;  %v10693_v14 = vpop.f32.mrb[35].mxu1  ;;  %8651 = vmatpush1.bf16.msra.mxu0 %v11948_v57  ;;  %8774 = vmatpush1.bf16.msra.mxu1 %v11951_v47  ;;  %v12013_v53 = vld [vmem:[#allocation11 + $0x96c] ss:$40 sps:$4 sm:$0xff]   ;;  %v12019_v57 = vld [vmem:[#allocation11 + $0x9bc] ss:$40 sps:$4 sm:$0xff]  }
 0x71a   :  { %8652 = vmatprep.subr.bf16.mxu0 %v11956_v60  ;;  %8775 = vmatprep.subr.bf16.mxu1 %v11959_v61  ;;  %v12014_v47 = vld [vmem:[#allocation11 + $0x9b0] ss:$40 sps:$4 sm:$0xff]   ;;  %v12025_v0 = vld [vmem:[#allocation11 + $0xa0c] ss:$40 sps:$4 sm:$0xff]   ;;  %v12020_v60 = vld [vmem:[#allocation11 + $0xa00] ss:$40 sps:$4 sm:$0xff]  }
 0x71b   :  { %v13051_v32 = vadd.f32 %v6131_v54, %v6092_v2  ;;  %v12011_v54 = vld [vmem:[#allocation11 + $0x968] ss:$40 sps:$4 sm:$0xff]   ;;  %v12017_v58 = vld [vmem:[#allocation11 + $0x9b8] ss:$40 sps:$4 sm:$0xff]   ;;  %v12028_v62 = vld [vmem:[#allocation11 + $0xa54] ss:$40 sps:$4 sm:$0xff]  }
 0x71c   :  { %v12023_v61 = vld [vmem:[#allocation11 + $0xa08] ss:$40 sps:$4 sm:$0xff]   ;;  %v12031_v1 = vld [vmem:[#allocation11 + $0xa5c] ss:$40 sps:$4 sm:$0xff]  }
 0x71d   :  { %8653 = vmatpush1.bf16.msra.mxu0 %v11954_v20  ;;  %8776 = vmatpush1.bf16.msra.mxu1 %v11957_v38  ;;  %v12026_v14 = vld [vmem:[#allocation11 + $0xa50] ss:$40 sps:$4 sm:$0xff]   ;;  %v12034_v38 = vld [vmem:[#allocation11 + $0xaa4] ss:$40 sps:$4 sm:$0xff]  }
 0x71e   :  { %8654 = vmatprep.subr.bf16.mxu0 %v11962_v3  ;;  %8777 = vmatprep.subr.bf16.mxu1 %v11965_v51  ;;  %v12029_v20 = vld [vmem:[#allocation11 + $0xa58] ss:$40 sps:$4 sm:$0xff]   ;;  %v12037_v3 = vld [vmem:[#allocation11 + $0xaac] ss:$40 sps:$4 sm:$0xff]  }
 0x71f   :  { %v12032_v51 = vld [vmem:[#allocation11 + $0xaa0] ss:$40 sps:$4 sm:$0xff]  }
 0x721   :  { %8655 = vmatpush1.bf16.msra.mxu0 %v11960_v55  ;;  %8778 = vmatpush1.bf16.msra.mxu1 %v11963_v4  ;;  %v12035_v55 = vld [vmem:[#allocation11 + $0xaa8] ss:$40 sps:$4 sm:$0xff]   ;;  %v12040_v4 = vld [vmem:[#allocation11 + $0xaf4] ss:$40 sps:$4 sm:$0xff]  }
 0x722   :  { %8656 = vmatprep.subr.bf16.mxu0 %v11968_v5  ;;  %8779 = vmatprep.subr.bf16.mxu1 %v11971_v8  ;;  %v12043_v5 = vld [vmem:[#allocation11 + $0xafc] ss:$40 sps:$4 sm:$0xff]   ;;  %v12038_v8 = vld [vmem:[#allocation11 + $0xaf0] ss:$40 sps:$4 sm:$0xff]  }
 0x723   :  { %v13056_v2 = vpop.eup %12458 }
 0x725   :  { %8657 = vmatpush1.bf16.msra.mxu0 %v11966_v9  ;;  %8780 = vmatpush1.bf16.msra.mxu1 %v11969_v11  ;;  %v12041_v9 = vld [vmem:[#allocation11 + $0xaf8] ss:$40 sps:$4 sm:$0xff]   ;;  %v12046_v11 = vld [vmem:[#allocation11 + $0xb44] ss:$40 sps:$4 sm:$0xff]  }
 0x726   :  { %8658 = vmatprep.subr.bf16.mxu0 %v11974_v12  ;;  %8781 = vmatprep.subr.bf16.mxu1 %v11977_v13  ;;  %v12049_v12 = vld [vmem:[#allocation11 + $0xb4c] ss:$40 sps:$4 sm:$0xff]   ;;  %v12044_v13 = vld [vmem:[#allocation11 + $0xb40] ss:$40 sps:$4 sm:$0xff]  }
 0x729   :  { %8659 = vmatpush1.bf16.msra.mxu0 %v11972_v17  ;;  %8782 = vmatpush1.bf16.msra.mxu1 %v11975_v21  ;;  %v12047_v17 = vld [vmem:[#allocation11 + $0xb48] ss:$40 sps:$4 sm:$0xff]   ;;  %v12052_v21 = vld [vmem:[#allocation11 + $0xb94] ss:$40 sps:$4 sm:$0xff]  }
 0x72a   :  { %8660 = vmatprep.subr.bf16.mxu0 %v11980_v7  ;;  %8783 = vmatprep.subr.bf16.mxu1 %v11983_v22  ;;  %v12055_v7 = vld [vmem:[#allocation11 + $0xb9c] ss:$40 sps:$4 sm:$0xff]   ;;  %v6141_v22 = vpack.c.bf16 %v13051_v32, %v13051_v32  ;;  %v12062_v32 = vld [vmem:[#allocation11 + $0xc30] ss:$40 sps:$4 sm:$0xff]  }
 0x72c   :  { %12460 = vtanh.bf16 %v6141_v22  ;;  %v12133_v22 = vld [vmem:[#allocation11 + $0x33c] ss:$40 sps:$4 sm:$0xff]  }
 0x72d   :  { %8661 = vmatpush1.bf16.msra.mxu0 %v11978_v23  ;;  %8784 = vmatpush1.bf16.msra.mxu1 %v11981_v24  ;;  %v12050_v23 = vld [vmem:[#allocation11 + $0xb90] ss:$40 sps:$4 sm:$0xff]  }
 0x72e   :  { %8662 = vmatprep.subr.bf16.mxu0 %v11986_v27  ;;  %8785 = vmatprep.subr.bf16.mxu1 %v11989_v18  ;;  %v12053_v24 = vld [vmem:[#allocation11 + $0xb98] ss:$40 sps:$4 sm:$0xff]   ;;  %v12058_v27 = vld [vmem:[#allocation11 + $0xbe4] ss:$40 sps:$4 sm:$0xff]  }
 0x72f   :  { %v12061_v18 = vld [vmem:[#allocation11 + $0xbec] ss:$40 sps:$4 sm:$0xff]  }
 0x731   :  { %8663 = vmatpush1.bf16.msra.mxu0 %v11984_v10  ;;  %8786 = vmatpush1.bf16.msra.mxu1 %v11987_v28  ;;  %v12056_v10 = vld [vmem:[#allocation11 + $0xbe0] ss:$40 sps:$4 sm:$0xff]  }
 0x732   :  { %8664 = vmatprep.subr.bf16.mxu0 %v11992_v31  ;;  %8787 = vmatprep.subr.bf16.mxu1 %v11995_v6  ;;  %v12059_v28 = vld [vmem:[#allocation11 + $0xbe8] ss:$40 sps:$4 sm:$0xff]   ;;  %v12064_v31 = vld [vmem:[#allocation11 + $0xc34] ss:$40 sps:$4 sm:$0xff]  }
 0x733   :  { %v12067_v6 = vld [vmem:[#allocation11 + $0xc3c] ss:$40 sps:$4 sm:$0xff]  }
 0x735   :  { %8665 = vmatpush1.bf16.msra.mxu0 %v11990_v34  ;;  %8788 = vmatpush1.bf16.msra.mxu1 %v11993_v36  ;;  %v12070_v34 = vld [vmem:[#allocation11 + $0x14] ss:$40 sps:$4 sm:$0xff]  }
 0x736   :  { %8666 = vmatprep.subr.bf16.mxu0 %v11998_v37  ;;  %8789 = vmatprep.subr.bf16.mxu1 %v12001_v40  ;;  %v12073_v36 = vld [vmem:[#allocation11 + $0x1c] ss:$40 sps:$4 sm:$0xff]   ;;  %v12068_v37 = vld [vmem:[#allocation11 + $0x10] ss:$40 sps:$4 sm:$0xff]  }
 0x737   :  { %v12071_v40 = vld [vmem:[#allocation11 + $0x18] ss:$40 sps:$4 sm:$0xff]   ;;  %v13064_v42 = vpop.eup %12460 }
 0x739   :  { %8667 = vmatpush1.bf16.msra.mxu0 %v11996_v44  ;;  %8790 = vmatpush1.bf16.msra.mxu1 %v11999_v26  ;;  %v12076_v44 = vld [vmem:[#allocation11 + $0x64] ss:$40 sps:$4 sm:$0xff]  }
 0x73a   :  { %8668 = vmatprep.subr.bf16.mxu0 %v12004_v46  ;;  %8791 = vmatprep.subr.bf16.mxu1 %v12007_v48  ;;  %v12079_v26 = vld [vmem:[#allocation11 + $0x6c] ss:$40 sps:$4 sm:$0xff]   ;;  %v12074_v46 = vld [vmem:[#allocation11 + $0x60] ss:$40 sps:$4 sm:$0xff]  }
 0x73b   :  { %v12077_v48 = vld [vmem:[#allocation11 + $0x68] ss:$40 sps:$4 sm:$0xff]  }
 0x73d   :  { %8669 = vmatpush1.bf16.msra.mxu0 %v12002_v43  ;;  %8792 = vmatpush1.bf16.msra.mxu1 %v12005_v50  ;;  %v12085_v43 = vld [vmem:[#allocation11 + $0xbc] ss:$40 sps:$4 sm:$0xff]   ;;  %v12080_v50 = vld [vmem:[#allocation11 + $0xb0] ss:$40 sps:$4 sm:$0xff]  }
 0x73e   :  { %8670 = vmatprep.subr.bf16.mxu0 %v12010_v52  ;;  %8793 = vmatprep.subr.bf16.mxu1 %v12013_v53  ;;  %v12083_v52 = vld [vmem:[#allocation11 + $0xb8] ss:$40 sps:$4 sm:$0xff]   ;;  %v12088_v53 = vld [vmem:[#allocation11 + $0x104] ss:$40 sps:$4 sm:$0xff]  }
 0x741   :  { %8671 = vmatpush1.bf16.msra.mxu0 %v12008_v59  ;;  %8794 = vmatpush1.bf16.msra.mxu1 %v12011_v54  ;;  %v12091_v59 = vld [vmem:[#allocation11 + $0x10c] ss:$40 sps:$4 sm:$0xff]   ;;  %v12086_v54 = vld [vmem:[#allocation11 + $0x100] ss:$40 sps:$4 sm:$0xff]  }
 0x742   :  { %8672 = vmatprep.subr.bf16.mxu0 %v12016_v56  ;;  %8795 = vmatprep.subr.bf16.mxu1 %v12019_v57  ;;  %v12089_v56 = vld [vmem:[#allocation11 + $0x108] ss:$40 sps:$4 sm:$0xff]   ;;  %v12094_v57 = vld [vmem:[#allocation11 + $0x154] ss:$40 sps:$4 sm:$0xff]  }
 0x745   :  { %8673 = vmatpush1.bf16.msra.mxu0 %v12014_v47  ;;  %8796 = vmatpush1.bf16.msra.mxu1 %v12017_v58  ;;  %v12097_v47 = vld [vmem:[#allocation11 + $0x15c] ss:$40 sps:$4 sm:$0xff]   ;;  %v12092_v58 = vld [vmem:[#allocation11 + $0x150] ss:$40 sps:$4 sm:$0xff]  }
 0x746   :  { %8683 = vmatprep.subr.bf16.mxu0 %v12022_v63  ;;  %8806 = vmatprep.subr.bf16.mxu1 %v12025_v0  ;;  %v12095_v63 = vld [vmem:[#allocation11 + $0x158] ss:$40 sps:$4 sm:$0xff]   ;;  %v12100_v0 = vld [vmem:[#allocation11 + $0x1a4] ss:$40 sps:$4 sm:$0xff]  }
 0x748   :  { %8675 = vmatmul.mubr.bf16.vlgmr.msra.gmra.mrb[40].mxu0 %v13056_v2  ;;  %8798 = vmatmul.mubr.bf16.vlgmr.msra.gmra.mrb[36].mxu1 %v13056_v2 }
 0x749   :  { %8684 = vmatpush1.bf16.msra.mxu0 %v12020_v60  ;;  %8807 = vmatpush1.bf16.msra.mxu1 %v12023_v61  ;;  %v12103_v60 = vld [vmem:[#allocation11 + $0x1ac] ss:$40 sps:$4 sm:$0xff]   ;;  %v12098_v61 = vld [vmem:[#allocation11 + $0x1a0] ss:$40 sps:$4 sm:$0xff]  }
 0x74a   :  { %8685 = vmatprep.subr.bf16.mxu0 %v12028_v62  ;;  %8808 = vmatprep.subr.bf16.mxu1 %v12031_v1  ;;  %v12101_v62 = vld [vmem:[#allocation11 + $0x1a8] ss:$40 sps:$4 sm:$0xff]   ;;  %v12106_v1 = vld [vmem:[#allocation11 + $0x1f4] ss:$40 sps:$4 sm:$0xff]  }
 0x74b   :  { %8715 = vmatprep.mubr.bf16.mxu0 %v12689_v41  ;;  %8838 = vmatprep.mubr.bf16.mxu1 %v12689_v41 }
 0x74d   :  { %8686 = vmatpush1.bf16.msra.mxu0 %v12026_v14  ;;  %8809 = vmatpush1.bf16.msra.mxu1 %v12029_v20  ;;  %v12109_v14 = vld [vmem:[#allocation11 + $0x1fc] ss:$40 sps:$4 sm:$0xff]   ;;  %v12104_v20 = vld [vmem:[#allocation11 + $0x1f0] ss:$40 sps:$4 sm:$0xff]  }
 0x74e   :  { %8687 = vmatprep.subr.bf16.mxu0 %v12034_v38  ;;  %8810 = vmatprep.subr.bf16.mxu1 %v12037_v3  ;;  %v12107_v38 = vld [vmem:[#allocation11 + $0x1f8] ss:$40 sps:$4 sm:$0xff]   ;;  %v12112_v3 = vld [vmem:[#allocation11 + $0x244] ss:$40 sps:$4 sm:$0xff]  }
 0x751   :  { %8688 = vmatpush1.bf16.msra.mxu0 %v12032_v51  ;;  %8811 = vmatpush1.bf16.msra.mxu1 %v12035_v55  ;;  %v12115_v51 = vld [vmem:[#allocation11 + $0x24c] ss:$40 sps:$4 sm:$0xff]   ;;  %v12110_v55 = vld [vmem:[#allocation11 + $0x240] ss:$40 sps:$4 sm:$0xff]  }
 0x752   :  { %8689 = vmatprep.subr.bf16.mxu0 %v12040_v4  ;;  %8812 = vmatprep.subr.bf16.mxu1 %v12043_v5  ;;  %v12113_v4 = vld [vmem:[#allocation11 + $0x248] ss:$40 sps:$4 sm:$0xff]   ;;  %v12118_v5 = vld [vmem:[#allocation11 + $0x294] ss:$40 sps:$4 sm:$0xff]  }
 0x755   :  { %8690 = vmatpush1.bf16.msra.mxu0 %v12038_v8  ;;  %8813 = vmatpush1.bf16.msra.mxu1 %v12041_v9  ;;  %v12121_v8 = vld [vmem:[#allocation11 + $0x29c] ss:$40 sps:$4 sm:$0xff]   ;;  %v12116_v9 = vld [vmem:[#allocation11 + $0x290] ss:$40 sps:$4 sm:$0xff]  }
 0x756   :  { %8691 = vmatprep.subr.bf16.mxu0 %v12046_v11  ;;  %8814 = vmatprep.subr.bf16.mxu1 %v12049_v12  ;;  %v12119_v11 = vld [vmem:[#allocation11 + $0x298] ss:$40 sps:$4 sm:$0xff]   ;;  %v12124_v12 = vld [vmem:[#allocation11 + $0x2e4] ss:$40 sps:$4 sm:$0xff]  }
 0x759   :  { %8692 = vmatpush1.bf16.msra.mxu0 %v12044_v13  ;;  %8815 = vmatpush1.bf16.msra.mxu1 %v12047_v17  ;;  %v12127_v13 = vld [vmem:[#allocation11 + $0x2ec] ss:$40 sps:$4 sm:$0xff]   ;;  %v12122_v17 = vld [vmem:[#allocation11 + $0x2e0] ss:$40 sps:$4 sm:$0xff]  }
 0x75a   :  { %8693 = vmatprep.subr.bf16.mxu0 %v12052_v21  ;;  %8816 = vmatprep.subr.bf16.mxu1 %v12055_v7  ;;  %v12125_v21 = vld [vmem:[#allocation11 + $0x2e8] ss:$40 sps:$4 sm:$0xff]   ;;  %v12130_v7 = vld [vmem:[#allocation11 + $0x334] ss:$40 sps:$4 sm:$0xff]  }
 0x75d   :  { %8694 = vmatpush1.bf16.msra.mxu0 %v12050_v23  ;;  %8817 = vmatpush1.bf16.msra.mxu1 %v12053_v24  ;;  %v12128_v23 = vld [vmem:[#allocation11 + $0x330] ss:$40 sps:$4 sm:$0xff]  }
 0x75e   :  { %8695 = vmatprep.subr.bf16.mxu0 %v12058_v27  ;;  %8818 = vmatprep.subr.bf16.mxu1 %v12061_v18  ;;  %v12131_v24 = vld [vmem:[#allocation11 + $0x338] ss:$40 sps:$4 sm:$0xff]   ;;  %v12136_v27 = vld [vmem:[#allocation11 + $0x384] ss:$40 sps:$4 sm:$0xff]  }
 0x75f   :  { %v12139_v18 = vld [vmem:[#allocation11 + $0x38c] ss:$40 sps:$4 sm:$0xff]  }
 0x761   :  { %8696 = vmatpush1.bf16.msra.mxu0 %v12056_v10  ;;  %8819 = vmatpush1.bf16.msra.mxu1 %v12059_v28  ;;  %v12134_v10 = vld [vmem:[#allocation11 + $0x380] ss:$40 sps:$4 sm:$0xff]  }
 0x762   :  { %8697 = vmatprep.subr.bf16.mxu0 %v12064_v31  ;;  %8820 = vmatprep.subr.bf16.mxu1 %v12067_v6  ;;  %v12137_v28 = vld [vmem:[#allocation11 + $0x388] ss:$40 sps:$4 sm:$0xff]   ;;  %v12142_v31 = vld [vmem:[#allocation11 + $0x3d4] ss:$40 sps:$4 sm:$0xff]  }
 0x763   :  { %v12145_v6 = vld [vmem:[#allocation11 + $0x3dc] ss:$40 sps:$4 sm:$0xff]  }
 0x765   :  { %8698 = vmatpush1.bf16.msra.mxu0 %v12062_v32  ;;  %8821 = vmatpush1.bf16.msra.mxu1 %v12065_v33  ;;  %v12140_v32 = vld [vmem:[#allocation11 + $0x3d0] ss:$40 sps:$4 sm:$0xff]  }
 0x766   :  { %8847 = vmatprep.subr.bf16.mxu0 %v12070_v34  ;;  %8970 = vmatprep.subr.bf16.mxu1 %v12073_v36  ;;  %v12143_v33 = vld [vmem:[#allocation11 + $0x3d8] ss:$40 sps:$4 sm:$0xff]   ;;  %v12148_v34 = vld [vmem:[#allocation11 + $0x424] ss:$40 sps:$4 sm:$0xff]  }
 0x767   :  { %v12151_v36 = vld [vmem:[#allocation11 + $0x42c] ss:$40 sps:$4 sm:$0xff]  }
 0x768   :  { %8716 = vmatmul.mubr.bf16.vlgmr.msra.gmra.mrb[40].mxu0 %v13064_v42  ;;  %8839 = vmatmul.mubr.bf16.vlgmr.msra.gmra.mrb[36].mxu1 %v13064_v42 }
 0x769   :  { %8848 = vmatpush1.bf16.msra.mxu0 %v12068_v37  ;;  %8879 = vmatprep.mubr.bf16.mxu0 %v13037_v29  ;;  %v12146_v37 = vld [vmem:[#allocation11 + $0x420] ss:$40 sps:$4 sm:$0xff]  }
 0x76a   :  { %8971 = vmatpush1.bf16.msra.mxu1 %v12071_v40  ;;  %9002 = vmatprep.mubr.bf16.mxu1 %v13037_v29  ;;  %v12149_v40 = vld [vmem:[#allocation11 + $0x428] ss:$40 sps:$4 sm:$0xff]  }
 0x76b   :  { %8849 = vmatprep.subr.bf16.mxu0 %v12076_v44  ;;  %8972 = vmatprep.subr.bf16.mxu1 %v12079_v26  ;;  %v12154_v44 = vld [vmem:[#allocation11 + $0x474] ss:$40 sps:$4 sm:$0xff]  }
 0x76c   :  { %v12157_v26 = vld [vmem:[#allocation11 + $0x47c] ss:$40 sps:$4 sm:$0xff]  }
 0x76d   :  { %8850 = vmatpush1.bf16.msra.mxu0 %v12074_v46  ;;  %v12152_v46 = vld [vmem:[#allocation11 + $0x470] ss:$40 sps:$4 sm:$0xff]  }
 0x76e   :  { %8973 = vmatpush1.bf16.msra.mxu1 %v12077_v48  ;;  %8851 = vmatprep.subr.bf16.mxu0 %v12082_v49  ;;  %v12155_v48 = vld [vmem:[#allocation11 + $0x478] ss:$40 sps:$4 sm:$0xff]   ;;  %v12160_v49 = vld [vmem:[#allocation11 + $0x4c4] ss:$40 sps:$4 sm:$0xff]  }
 0x76f   :  { %8974 = vmatprep.subr.bf16.mxu1 %v12085_v43  ;;  %v12163_v43 = vld [vmem:[#allocation11 + $0x4cc] ss:$40 sps:$4 sm:$0xff]  }
 0x771   :  { %8852 = vmatpush1.bf16.msra.mxu0 %v12080_v50  ;;  %v12158_v50 = vld [vmem:[#allocation11 + $0x4c0] ss:$40 sps:$4 sm:$0xff]  }
 0x772   :  { %8975 = vmatpush1.bf16.msra.mxu1 %v12083_v52  ;;  %8853 = vmatprep.subr.bf16.mxu0 %v12088_v53  ;;  %v12161_v52 = vld [vmem:[#allocation11 + $0x4c8] ss:$40 sps:$4 sm:$0xff]   ;;  %v12166_v53 = vld [vmem:[#allocation11 + $0x514] ss:$40 sps:$4 sm:$0xff]  }
 0x773   :  { %8976 = vmatprep.subr.bf16.mxu1 %v12091_v59  ;;  %v12169_v59 = vld [vmem:[#allocation11 + $0x51c] ss:$40 sps:$4 sm:$0xff]  }
 0x775   :  { %8854 = vmatpush1.bf16.msra.mxu0 %v12086_v54  ;;  %v12164_v54 = vld [vmem:[#allocation11 + $0x510] ss:$40 sps:$4 sm:$0xff]  }
 0x776   :  { %8977 = vmatpush1.bf16.msra.mxu1 %v12089_v56  ;;  %8855 = vmatprep.subr.bf16.mxu0 %v12094_v57  ;;  %v12167_v56 = vld [vmem:[#allocation11 + $0x518] ss:$40 sps:$4 sm:$0xff]   ;;  %v12172_v57 = vld [vmem:[#allocation11 + $0x564] ss:$40 sps:$4 sm:$0xff]  }
 0x777   :  { %8978 = vmatprep.subr.bf16.mxu1 %v12097_v47  ;;  %v12175_v47 = vld [vmem:[#allocation11 + $0x56c] ss:$40 sps:$4 sm:$0xff]  }
 0x779   :  { %8856 = vmatpush1.bf16.msra.mxu0 %v12092_v58  ;;  %v12170_v58 = vld [vmem:[#allocation11 + $0x560] ss:$40 sps:$4 sm:$0xff]  }
 0x77a   :  { %8979 = vmatpush1.bf16.msra.mxu1 %v12095_v63  ;;  %8857 = vmatprep.subr.bf16.mxu0 %v12100_v0  ;;  %v12173_v63 = vld [vmem:[#allocation11 + $0x568] ss:$40 sps:$4 sm:$0xff]   ;;  %v12178_v0 = vld [vmem:[#allocation11 + $0x5b4] ss:$40 sps:$4 sm:$0xff]  }
 0x77b   :  { %8980 = vmatprep.subr.bf16.mxu1 %v12103_v60  ;;  %v12181_v60 = vld [vmem:[#allocation11 + $0x5bc] ss:$40 sps:$4 sm:$0xff]  }
 0x77d   :  { %8858 = vmatpush1.bf16.msra.mxu0 %v12098_v61  ;;  %v12176_v61 = vld [vmem:[#allocation11 + $0x5b0] ss:$40 sps:$4 sm:$0xff]  }
 0x77e   :  { %8981 = vmatpush1.bf16.msra.mxu1 %v12101_v62  ;;  %8859 = vmatprep.subr.bf16.mxu0 %v12106_v1  ;;  %v12179_v62 = vld [vmem:[#allocation11 + $0x5b8] ss:$40 sps:$4 sm:$0xff]   ;;  %v12184_v1 = vld [vmem:[#allocation11 + $0x604] ss:$40 sps:$4 sm:$0xff]  }
 0x77f   :  { %8982 = vmatprep.subr.bf16.mxu1 %v12109_v14  ;;  %v12187_v14 = vld [vmem:[#allocation11 + $0x60c] ss:$40 sps:$4 sm:$0xff]  }
 0x781   :  { %8860 = vmatpush1.bf16.msra.mxu0 %v12104_v20  ;;  %v12182_v20 = vld [vmem:[#allocation11 + $0x600] ss:$40 sps:$4 sm:$0xff]  }
 0x782   :  { %8983 = vmatpush1.bf16.msra.mxu1 %v12107_v38  ;;  %8861 = vmatprep.subr.bf16.mxu0 %v12112_v3  ;;  %v12185_v38 = vld [vmem:[#allocation11 + $0x608] ss:$40 sps:$4 sm:$0xff]   ;;  %v12190_v3 = vld [vmem:[#allocation11 + $0x654] ss:$40 sps:$4 sm:$0xff]  }
 0x783   :  { %8984 = vmatprep.subr.bf16.mxu1 %v12115_v51  ;;  %v12193_v51 = vld [vmem:[#allocation11 + $0x65c] ss:$40 sps:$4 sm:$0xff]  }
 0x785   :  { %8862 = vmatpush1.bf16.msra.mxu0 %v12110_v55  ;;  %v12188_v55 = vld [vmem:[#allocation11 + $0x650] ss:$40 sps:$4 sm:$0xff]  }
 0x786   :  { %8985 = vmatpush1.bf16.msra.mxu1 %v12113_v4  ;;  %8863 = vmatprep.subr.bf16.mxu0 %v12118_v5  ;;  %v12191_v4 = vld [vmem:[#allocation11 + $0x658] ss:$40 sps:$4 sm:$0xff]   ;;  %v12196_v5 = vld [vmem:[#allocation11 + $0x6a4] ss:$40 sps:$4 sm:$0xff]  }
 0x787   :  { %8986 = vmatprep.subr.bf16.mxu1 %v12121_v8  ;;  %v12199_v8 = vld [vmem:[#allocation11 + $0x6ac] ss:$40 sps:$4 sm:$0xff]  }
 0x789   :  { %8864 = vmatpush1.bf16.msra.mxu0 %v12116_v9  ;;  %v12194_v9 = vld [vmem:[#allocation11 + $0x6a0] ss:$40 sps:$4 sm:$0xff]  }
 0x78a   :  { %8987 = vmatpush1.bf16.msra.mxu1 %v12119_v11  ;;  %8865 = vmatprep.subr.bf16.mxu0 %v12124_v12  ;;  %v12197_v11 = vld [vmem:[#allocation11 + $0x6a8] ss:$40 sps:$4 sm:$0xff]   ;;  %v12202_v12 = vld [vmem:[#allocation11 + $0x6f4] ss:$40 sps:$4 sm:$0xff]  }
 0x78b   :  { %8988 = vmatprep.subr.bf16.mxu1 %v12127_v13  ;;  %v12205_v13 = vld [vmem:[#allocation11 + $0x6fc] ss:$40 sps:$4 sm:$0xff]  }
 0x78d   :  { %8866 = vmatpush1.bf16.msra.mxu0 %v12122_v17  ;;  %v12200_v17 = vld [vmem:[#allocation11 + $0x6f0] ss:$40 sps:$4 sm:$0xff]  }
 0x78e   :  { %8989 = vmatpush1.bf16.msra.mxu1 %v12125_v21  ;;  %8867 = vmatprep.subr.bf16.mxu0 %v12130_v7  ;;  %v12203_v21 = vld [vmem:[#allocation11 + $0x6f8] ss:$40 sps:$4 sm:$0xff]   ;;  %v12208_v7 = vld [vmem:[#allocation11 + $0x744] ss:$40 sps:$4 sm:$0xff]  }
 0x78f   :  { %8990 = vmatprep.subr.bf16.mxu1 %v12133_v22  ;;  %v12211_v22 = vld [vmem:[#allocation11 + $0x74c] ss:$40 sps:$4 sm:$0xff]  }
 0x791   :  { %8868 = vmatpush1.bf16.msra.mxu0 %v12128_v23  ;;  %v12206_v23 = vld [vmem:[#allocation11 + $0x740] ss:$40 sps:$4 sm:$0xff]  }
 0x792   :  { %8991 = vmatpush1.bf16.msra.mxu1 %v12131_v24  ;;  %8869 = vmatprep.subr.bf16.mxu0 %v12136_v27  ;;  %v12209_v24 = vld [vmem:[#allocation11 + $0x748] ss:$40 sps:$4 sm:$0xff]   ;;  %v12214_v27 = vld [vmem:[#allocation11 + $0x794] ss:$40 sps:$4 sm:$0xff]  }
 0x793   :  { %8992 = vmatprep.subr.bf16.mxu1 %v12139_v18  ;;  %v12217_v18 = vld [vmem:[#allocation11 + $0x79c] ss:$40 sps:$4 sm:$0xff]  }
 0x795   :  { %8870 = vmatpush1.bf16.msra.mxu0 %v12134_v10  ;;  %v12212_v10 = vld [vmem:[#allocation11 + $0x790] ss:$40 sps:$4 sm:$0xff]  }
 0x796   :  { %8993 = vmatpush1.bf16.msra.mxu1 %v12137_v28  ;;  %8871 = vmatprep.subr.bf16.mxu0 %v12142_v31  ;;  %v12215_v28 = vld [vmem:[#allocation11 + $0x798] ss:$40 sps:$4 sm:$0xff]   ;;  %v12220_v31 = vld [vmem:[#allocation11 + $0x7e4] ss:$40 sps:$4 sm:$0xff]  }
 0x797   :  { %8994 = vmatprep.subr.bf16.mxu1 %v12145_v6  ;;  %v12223_v6 = vld [vmem:[#allocation11 + $0x7ec] ss:$40 sps:$4 sm:$0xff]  }
 0x799   :  { %8872 = vmatpush1.bf16.msra.mxu0 %v12140_v32  ;;  %v12218_v32 = vld [vmem:[#allocation11 + $0x7e0] ss:$40 sps:$4 sm:$0xff]  }
 0x79a   :  { %8995 = vmatpush1.bf16.msra.mxu1 %v12143_v33  ;;  %8873 = vmatprep.subr.bf16.mxu0 %v12148_v34  ;;  %v12221_v33 = vld [vmem:[#allocation11 + $0x7e8] ss:$40 sps:$4 sm:$0xff]   ;;  %v12226_v34 = vld [vmem:[#allocation11 + $0x834] ss:$40 sps:$4 sm:$0xff]  }
 0x79b   :  { %8996 = vmatprep.subr.bf16.mxu1 %v12151_v36  ;;  %v12229_v36 = vld [vmem:[#allocation11 + $0x83c] ss:$40 sps:$4 sm:$0xff]  }
 0x79d   :  { %8874 = vmatpush1.bf16.msra.mxu0 %v12146_v37  ;;  %v12224_v37 = vld [vmem:[#allocation11 + $0x830] ss:$40 sps:$4 sm:$0xff]  }
 0x79e   :  { %8997 = vmatpush1.bf16.msra.mxu1 %v12149_v40  ;;  %8875 = vmatprep.subr.bf16.mxu0 %v12154_v44  ;;  %v12227_v40 = vld [vmem:[#allocation11 + $0x838] ss:$40 sps:$4 sm:$0xff]   ;;  %v12232_v44 = vld [vmem:[#allocation11 + $0x884] ss:$40 sps:$4 sm:$0xff]  }
 0x79f   :  { %8998 = vmatprep.subr.bf16.mxu1 %v12157_v26  ;;  %v12235_v26 = vld [vmem:[#allocation11 + $0x88c] ss:$40 sps:$4 sm:$0xff]  }
 0x7a1   :  { %8876 = vmatpush1.bf16.msra.mxu0 %v12152_v46  ;;  %v12230_v46 = vld [vmem:[#allocation11 + $0x880] ss:$40 sps:$4 sm:$0xff]  }
 0x7a2   :  { %8999 = vmatpush1.bf16.msra.mxu1 %v12155_v48  ;;  %8877 = vmatprep.subr.bf16.mxu0 %v12160_v49  ;;  %v12233_v48 = vld [vmem:[#allocation11 + $0x888] ss:$40 sps:$4 sm:$0xff]   ;;  %v12238_v49 = vld [vmem:[#allocation11 + $0x8d4] ss:$40 sps:$4 sm:$0xff]  }
 0x7a3   :  { %9000 = vmatprep.subr.bf16.mxu1 %v12163_v43  ;;  %v12241_v43 = vld [vmem:[#allocation11 + $0x8dc] ss:$40 sps:$4 sm:$0xff]  }
 0x7a5   :  { %8878 = vmatpush1.bf16.msra.mxu0 %v12158_v50  ;;  %v12236_v50 = vld [vmem:[#allocation11 + $0x8d0] ss:$40 sps:$4 sm:$0xff]  }
 0x7a6   :  { %9001 = vmatpush1.bf16.msra.mxu1 %v12161_v52  ;;  %8888 = vmatprep.subr.bf16.mxu0 %v12166_v53  ;;  %v12239_v52 = vld [vmem:[#allocation11 + $0x8d8] ss:$40 sps:$4 sm:$0xff]   ;;  %v12244_v53 = vld [vmem:[#allocation11 + $0x924] ss:$40 sps:$4 sm:$0xff]  }
 0x7a7   :  { %9011 = vmatprep.subr.bf16.mxu1 %v12169_v59  ;;  %v12247_v59 = vld [vmem:[#allocation11 + $0x92c] ss:$40 sps:$4 sm:$0xff]  }
 0x7a8   :  { %8880 = vmatmul.mubr.bf16.vlgmr.msra.gmra.mrb[44].mxu0 %v13039_v30 }
 0x7a9   :  { %9003 = vmatmul.mubr.bf16.vlgmr.msra.gmra.mrb[40].mxu1 %v13039_v30  ;;  %8889 = vmatpush1.bf16.msra.mxu0 %v12164_v54  ;;  %v12242_v54 = vld [vmem:[#allocation11 + $0x920] ss:$40 sps:$4 sm:$0xff]  }
 0x7aa   :  { %8920 = vmatprep.mubr.bf16.mxu0 %v13045_v19  ;;  %9012 = vmatpush1.bf16.msra.mxu1 %v12167_v56  ;;  %v12245_v56 = vld [vmem:[#allocation11 + $0x928] ss:$40 sps:$4 sm:$0xff]  }
 0x7ab   :  { %9043 = vmatprep.mubr.bf16.mxu1 %v13045_v19  ;;  %8890 = vmatprep.subr.bf16.mxu0 %v12172_v57  ;;  %v12250_v57 = vld [vmem:[#allocation11 + $0x974] ss:$40 sps:$4 sm:$0xff]  }
 0x7ac   :  { %9013 = vmatprep.subr.bf16.mxu1 %v12175_v47  ;;  %v12253_v47 = vld [vmem:[#allocation11 + $0x97c] ss:$40 sps:$4 sm:$0xff]  }
 0x7ad   :  { %8891 = vmatpush1.bf16.msra.mxu0 %v12170_v58  ;;  %v12248_v58 = vld [vmem:[#allocation11 + $0x970] ss:$40 sps:$4 sm:$0xff]  }
 0x7ae   :  { %9014 = vmatpush1.bf16.msra.mxu1 %v12173_v63  ;;  %8892 = vmatprep.subr.bf16.mxu0 %v12178_v0  ;;  %v12251_v63 = vld [vmem:[#allocation11 + $0x978] ss:$40 sps:$4 sm:$0xff]   ;;  %v12256_v0 = vld [vmem:[#allocation11 + $0x9c4] ss:$40 sps:$4 sm:$0xff]  }
 0x7af   :  { %9015 = vmatprep.subr.bf16.mxu1 %v12181_v60  ;;  %v12259_v60 = vld [vmem:[#allocation11 + $0x9cc] ss:$40 sps:$4 sm:$0xff]  }
 0x7b1   :  { %8893 = vmatpush1.bf16.msra.mxu0 %v12176_v61  ;;  %v12254_v61 = vld [vmem:[#allocation11 + $0x9c0] ss:$40 sps:$4 sm:$0xff]  }
 0x7b2   :  { %9016 = vmatpush1.bf16.msra.mxu1 %v12179_v62  ;;  %8894 = vmatprep.subr.bf16.mxu0 %v12184_v1  ;;  %v12257_v62 = vld [vmem:[#allocation11 + $0x9c8] ss:$40 sps:$4 sm:$0xff]   ;;  %v12262_v1 = vld [vmem:[#allocation11 + $0xa14] ss:$40 sps:$4 sm:$0xff]  }
 0x7b3   :  { %9017 = vmatprep.subr.bf16.mxu1 %v12187_v14  ;;  %v12265_v14 = vld [vmem:[#allocation11 + $0xa1c] ss:$40 sps:$4 sm:$0xff]  }
 0x7b5   :  { %8895 = vmatpush1.bf16.msra.mxu0 %v12182_v20  ;;  %v12260_v20 = vld [vmem:[#allocation11 + $0xa10] ss:$40 sps:$4 sm:$0xff]  }
 0x7b6   :  { %9018 = vmatpush1.bf16.msra.mxu1 %v12185_v38  ;;  %8896 = vmatprep.subr.bf16.mxu0 %v12190_v3  ;;  %v12263_v38 = vld [vmem:[#allocation11 + $0xa18] ss:$40 sps:$4 sm:$0xff]   ;;  %v12268_v3 = vld [vmem:[#allocation11 + $0xa64] ss:$40 sps:$4 sm:$0xff]  }
 0x7b7   :  { %9019 = vmatprep.subr.bf16.mxu1 %v12193_v51  ;;  %v12271_v51 = vld [vmem:[#allocation11 + $0xa6c] ss:$40 sps:$4 sm:$0xff]  }
 0x7b9   :  { %8897 = vmatpush1.bf16.msra.mxu0 %v12188_v55  ;;  %v12266_v55 = vld [vmem:[#allocation11 + $0xa60] ss:$40 sps:$4 sm:$0xff]  }
 0x7ba   :  { %9020 = vmatpush1.bf16.msra.mxu1 %v12191_v4  ;;  %8898 = vmatprep.subr.bf16.mxu0 %v12196_v5  ;;  %v12269_v4 = vld [vmem:[#allocation11 + $0xa68] ss:$40 sps:$4 sm:$0xff]   ;;  %v12274_v5 = vld [vmem:[#allocation11 + $0xab4] ss:$40 sps:$4 sm:$0xff]  }
 0x7bb   :  { %9021 = vmatprep.subr.bf16.mxu1 %v12199_v8  ;;  %v12277_v8 = vld [vmem:[#allocation11 + $0xabc] ss:$40 sps:$4 sm:$0xff]  }
 0x7bd   :  { %8899 = vmatpush1.bf16.msra.mxu0 %v12194_v9  ;;  %v12272_v9 = vld [vmem:[#allocation11 + $0xab0] ss:$40 sps:$4 sm:$0xff]  }
 0x7be   :  { %9022 = vmatpush1.bf16.msra.mxu1 %v12197_v11  ;;  %8900 = vmatprep.subr.bf16.mxu0 %v12202_v12  ;;  %v12275_v11 = vld [vmem:[#allocation11 + $0xab8] ss:$40 sps:$4 sm:$0xff]   ;;  %v12280_v12 = vld [vmem:[#allocation11 + $0xb04] ss:$40 sps:$4 sm:$0xff]  }
 0x7bf   :  { %9023 = vmatprep.subr.bf16.mxu1 %v12205_v13  ;;  %v12283_v13 = vld [vmem:[#allocation11 + $0xb0c] ss:$40 sps:$4 sm:$0xff]  }
 0x7c1   :  { %8901 = vmatpush1.bf16.msra.mxu0 %v12200_v17  ;;  %v12278_v17 = vld [vmem:[#allocation11 + $0xb00] ss:$40 sps:$4 sm:$0xff]  }
 0x7c2   :  { %9024 = vmatpush1.bf16.msra.mxu1 %v12203_v21  ;;  %8902 = vmatprep.subr.bf16.mxu0 %v12208_v7  ;;  %v12281_v21 = vld [vmem:[#allocation11 + $0xb08] ss:$40 sps:$4 sm:$0xff]   ;;  %v12286_v7 = vld [vmem:[#allocation11 + $0xb54] ss:$40 sps:$4 sm:$0xff]  }
 0x7c3   :  { %9025 = vmatprep.subr.bf16.mxu1 %v12211_v22  ;;  %v12289_v22 = vld [vmem:[#allocation11 + $0xb5c] ss:$40 sps:$4 sm:$0xff]  }
 0x7c5   :  { %8903 = vmatpush1.bf16.msra.mxu0 %v12206_v23  ;;  %v12284_v23 = vld [vmem:[#allocation11 + $0xb50] ss:$40 sps:$4 sm:$0xff]  }
 0x7c6   :  { %9026 = vmatpush1.bf16.msra.mxu1 %v12209_v24  ;;  %8904 = vmatprep.subr.bf16.mxu0 %v12214_v27  ;;  %v12287_v24 = vld [vmem:[#allocation11 + $0xb58] ss:$40 sps:$4 sm:$0xff]   ;;  %v12292_v27 = vld [vmem:[#allocation11 + $0xba4] ss:$40 sps:$4 sm:$0xff]  }
 0x7c7   :  { %9027 = vmatprep.subr.bf16.mxu1 %v12217_v18  ;;  %v12295_v18 = vld [vmem:[#allocation11 + $0xbac] ss:$40 sps:$4 sm:$0xff]  }
 0x7c9   :  { %8905 = vmatpush1.bf16.msra.mxu0 %v12212_v10  ;;  %v12290_v10 = vld [vmem:[#allocation11 + $0xba0] ss:$40 sps:$4 sm:$0xff]  }
 0x7ca   :  { %9028 = vmatpush1.bf16.msra.mxu1 %v12215_v28  ;;  %8906 = vmatprep.subr.bf16.mxu0 %v12220_v31  ;;  %v12293_v28 = vld [vmem:[#allocation11 + $0xba8] ss:$40 sps:$4 sm:$0xff]   ;;  %v12298_v31 = vld [vmem:[#allocation11 + $0xbf4] ss:$40 sps:$4 sm:$0xff]  }
 0x7cb   :  { %9029 = vmatprep.subr.bf16.mxu1 %v12223_v6  ;;  %v12301_v6 = vld [vmem:[#allocation11 + $0xbfc] ss:$40 sps:$4 sm:$0xff]  }
 0x7cd   :  { %8907 = vmatpush1.bf16.msra.mxu0 %v12218_v32  ;;  %v12296_v32 = vld [vmem:[#allocation11 + $0xbf0] ss:$40 sps:$4 sm:$0xff]  }
 0x7ce   :  { %9030 = vmatpush1.bf16.msra.mxu1 %v12221_v33  ;;  %8908 = vmatprep.subr.bf16.mxu0 %v12226_v34  ;;  %v12299_v33 = vld [vmem:[#allocation11 + $0xbf8] ss:$40 sps:$4 sm:$0xff]   ;;  %v12304_v34 = vld [vmem:[#allocation11 + $0xc44] ss:$40 sps:$4 sm:$0xff]  }
 0x7cf   :  { %9031 = vmatprep.subr.bf16.mxu1 %v12229_v36  ;;  %v12307_v36 = vld [vmem:[#allocation11 + $0xc4c] ss:$40 sps:$4 sm:$0xff]  }
 0x7d1   :  { %8909 = vmatpush1.bf16.msra.mxu0 %v12224_v37  ;;  %v12302_v37 = vld [vmem:[#allocation11 + $0xc40] ss:$40 sps:$4 sm:$0xff]  }
 0x7d2   :  { %9032 = vmatpush1.bf16.msra.mxu1 %v12227_v40  ;;  %8910 = vmatprep.subr.bf16.mxu0 %v12232_v44  ;;  %v12305_v40 = vld [vmem:[#allocation11 + $0xc48] ss:$40 sps:$4 sm:$0xff]   ;;  %v12310_v44 = vld [vmem:[#allocation11 + $0x24] ss:$40 sps:$4 sm:$0xff]  }
 0x7d3   :  { %9033 = vmatprep.subr.bf16.mxu1 %v12235_v26  ;;  %v12308_v26 = vld [vmem:[#allocation11 + $0x20] ss:$40 sps:$4 sm:$0xff]  }
 0x7d5   :  { %8911 = vmatpush1.bf16.msra.mxu0 %v12230_v46  ;;  %v12313_v46 = vld [vmem:[#allocation11 + $0x74] ss:$40 sps:$4 sm:$0xff]  }
 0x7d6   :  { %9034 = vmatpush1.bf16.msra.mxu1 %v12233_v48  ;;  %8912 = vmatprep.subr.bf16.mxu0 %v12238_v49  ;;  %v12311_v48 = vld [vmem:[#allocation11 + $0x70] ss:$40 sps:$4 sm:$0xff]   ;;  %v12316_v49 = vld [vmem:[#allocation11 + $0xc4] ss:$40 sps:$4 sm:$0xff]  }
 0x7d7   :  { %9035 = vmatprep.subr.bf16.mxu1 %v12241_v43  ;;  %v12314_v43 = vld [vmem:[#allocation11 + $0xc0] ss:$40 sps:$4 sm:$0xff]  }
 0x7d9   :  { %8913 = vmatpush1.bf16.msra.mxu0 %v12236_v50  ;;  %v12319_v50 = vld [vmem:[#allocation11 + $0x114] ss:$40 sps:$4 sm:$0xff]  }
 0x7da   :  { %9036 = vmatpush1.bf16.msra.mxu1 %v12239_v52  ;;  %8914 = vmatprep.subr.bf16.mxu0 %v12244_v53  ;;  %v12317_v52 = vld [vmem:[#allocation11 + $0x110] ss:$40 sps:$4 sm:$0xff]   ;;  %v12322_v53 = vld [vmem:[#allocation11 + $0x164] ss:$40 sps:$4 sm:$0xff]  }
 0x7db   :  { %9037 = vmatprep.subr.bf16.mxu1 %v12247_v59  ;;  %v12320_v59 = vld [vmem:[#allocation11 + $0x160] ss:$40 sps:$4 sm:$0xff]  }
 0x7dd   :  { %8915 = vmatpush1.bf16.msra.mxu0 %v12242_v54  ;;  %v12325_v54 = vld [vmem:[#allocation11 + $0x1b4] ss:$40 sps:$4 sm:$0xff]  }
 0x7de   :  { %9038 = vmatpush1.bf16.msra.mxu1 %v12245_v56  ;;  %8916 = vmatprep.subr.bf16.mxu0 %v12250_v57  ;;  %v12323_v56 = vld [vmem:[#allocation11 + $0x1b0] ss:$40 sps:$4 sm:$0xff]   ;;  %v12328_v57 = vld [vmem:[#allocation11 + $0x204] ss:$40 sps:$4 sm:$0xff]  }
 0x7df   :  { %9039 = vmatprep.subr.bf16.mxu1 %v12253_v47  ;;  %v12331_v47 = vld [vmem:[#allocation11 + $0x254] ss:$40 sps:$4 sm:$0xff]  }
 0x7e1   :  { %8917 = vmatpush1.bf16.msra.mxu0 %v12248_v58  ;;  %v12329_v58 = vld [vmem:[#allocation11 + $0x250] ss:$40 sps:$4 sm:$0xff]  }
 0x7e2   :  { %9040 = vmatpush1.bf16.msra.mxu1 %v12251_v63  ;;  %8918 = vmatprep.subr.bf16.mxu0 %v12256_v0  ;;  %v12334_v63 = vld [vmem:[#allocation11 + $0x2a4] ss:$40 sps:$4 sm:$0xff]   ;;  %v12332_v0 = vld [vmem:[#allocation11 + $0x2a0] ss:$40 sps:$4 sm:$0xff]  }
 0x7e3   :  { %9041 = vmatprep.subr.bf16.mxu1 %v12259_v60  ;;  %v12337_v60 = vld [vmem:[#allocation11 + $0x2f4] ss:$40 sps:$4 sm:$0xff]  }
 0x7e5   :  { %8919 = vmatpush1.bf16.msra.mxu0 %v12254_v61  ;;  %v12335_v61 = vld [vmem:[#allocation11 + $0x2f0] ss:$40 sps:$4 sm:$0xff]  }
 0x7e6   :  { %9042 = vmatpush1.bf16.msra.mxu1 %v12257_v62  ;;  %8929 = vmatprep.subr.bf16.mxu0 %v12262_v1  ;;  %v12340_v62 = vld [vmem:[#allocation11 + $0x344] ss:$40 sps:$4 sm:$0xff]   ;;  %v12338_v1 = vld [vmem:[#allocation11 + $0x340] ss:$40 sps:$4 sm:$0xff]  }
 0x7e7   :  { %9052 = vmatprep.subr.bf16.mxu1 %v12265_v14  ;;  %v12343_v14 = vld [vmem:[#allocation11 + $0x394] ss:$40 sps:$4 sm:$0xff]  }
 0x7e8   :  { %8921 = vmatmul.mubr.bf16.vlgmr.msra.gmra.mrb[44].mxu0 %v13056_v2 }
 0x7e9   :  { %9044 = vmatmul.mubr.bf16.vlgmr.msra.gmra.mrb[40].mxu1 %v13056_v2  ;;  %8930 = vmatpush1.bf16.msra.mxu0 %v12260_v20  ;;  %v12341_v20 = vld [vmem:[#allocation11 + $0x390] ss:$40 sps:$4 sm:$0xff]  }
 0x7ea   :  { %9053 = vmatpush1.bf16.msra.mxu1 %v12263_v38  ;;  %8931 = vmatprep.subr.bf16.mxu0 %v12268_v3  ;;  %v12346_v38 = vld [vmem:[#allocation11 + $0x3e4] ss:$40 sps:$4 sm:$0xff]   ;;  %v12344_v3 = vld [vmem:[#allocation11 + $0x3e0] ss:$40 sps:$4 sm:$0xff]  }
 0x7eb   :  { %9054 = vmatprep.subr.bf16.mxu1 %v12271_v51  ;;  %8961 = vmatprep.mubr.bf16.mxu0 %v12689_v41  ;;  %v13081_v51 = vld [vmem:[#allocation13 + $0x12] sm:$0xff] }
 0x7ec   :  { %9084 = vmatprep.mubr.bf16.mxu1 %v12689_v41 }
 0x7ed   :  { %8932 = vmatpush1.bf16.msra.mxu0 %v12266_v55  ;;  %v12349_v55 = vld [vmem:[#allocation11 + $0x434] ss:$40 sps:$4 sm:$0xff]  }
 0x7ee   :  { %9055 = vmatpush1.bf16.msra.mxu1 %v12269_v4  ;;  %8933 = vmatprep.subr.bf16.mxu0 %v12274_v5  ;;  %v6554_v4 = vrot.slane %v13081_v51, %v12933_v39  ;;  %v6562_v5 = vrot.slane %v13081_v51, %v12950_v15 }
 0x7ef   :  { %9056 = vmatprep.subr.bf16.mxu1 %v12277_v8  ;;  %v6558_v8 = vrot.slane %v13081_v51, %v12936_v25 }
 0x7f1   :  { %8934 = vmatpush1.bf16.msra.mxu0 %v12272_v9  ;;  %v6566_v9 = vrot.slane %v13081_v51, %v12953_v16 }
 0x7f2   :  { %9057 = vmatpush1.bf16.msra.mxu1 %v12275_v11  ;;  %8935 = vmatprep.subr.bf16.mxu0 %v12280_v12  ;;  %v12347_v11 = vld [vmem:[#allocation11 + $0x430] ss:$40 sps:$4 sm:$0xff]   ;;  %v12352_v12 = vld [vmem:[#allocation11 + $0x484] ss:$40 sps:$4 sm:$0xff]  }
 0x7f3   :  { %9058 = vmatprep.subr.bf16.mxu1 %v12283_v13 }
 0x7f5   :  { %8936 = vmatpush1.bf16.msra.mxu0 %v12278_v17 }
 0x7f6   :  { %9059 = vmatpush1.bf16.msra.mxu1 %v12281_v21  ;;  %8937 = vmatprep.subr.bf16.mxu0 %v12286_v7 }
 0x7f7   :  { %9060 = vmatprep.subr.bf16.mxu1 %v12289_v22 }
 0x7f9   :  { %8938 = vmatpush1.bf16.msra.mxu0 %v12284_v23 }
 0x7fa   :  { %9061 = vmatpush1.bf16.msra.mxu1 %v12287_v24  ;;  %8939 = vmatprep.subr.bf16.mxu0 %v12292_v27 }
 0x7fb   :  { %9062 = vmatprep.subr.bf16.mxu1 %v12295_v18 }
 0x7fd   :  { %8940 = vmatpush1.bf16.msra.mxu0 %v12290_v10  ;;  %v12350_v10 = vld [vmem:[#allocation11 + $0x480] ss:$40 sps:$4 sm:$0xff]  }
 0x7fe   :  { %9063 = vmatpush1.bf16.msra.mxu1 %v12293_v28  ;;  %8941 = vmatprep.subr.bf16.mxu0 %v12298_v31 }
 0x7ff   :  { %9064 = vmatprep.subr.bf16.mxu1 %v12301_v6  ;;  %v12355_v6 = vld [vmem:[#allocation11 + $0x4d4] ss:$40 sps:$4 sm:$0xff]  }
 0x801   :  { %8942 = vmatpush1.bf16.msra.mxu0 %v12296_v32 }
 0x802   :  { %9065 = vmatpush1.bf16.msra.mxu1 %v12299_v33  ;;  %8943 = vmatprep.subr.bf16.mxu0 %v12304_v34  ;;  %v12353_v33 = vld [vmem:[#allocation11 + $0x4d0] ss:$40 sps:$4 sm:$0xff]   ;;  %v12358_v34 = vld [vmem:[#allocation11 + $0x524] ss:$40 sps:$4 sm:$0xff]  }
 0x803   :  { %9066 = vmatprep.subr.bf16.mxu1 %v12307_v36  ;;  %v12356_v36 = vld [vmem:[#allocation11 + $0x520] ss:$40 sps:$4 sm:$0xff]  }
 0x805   :  { %8944 = vmatpush1.bf16.msra.mxu0 %v12302_v37  ;;  %v12361_v37 = vld [vmem:[#allocation11 + $0x574] ss:$40 sps:$4 sm:$0xff]  }
 0x806   :  { %9067 = vmatpush1.bf16.msra.mxu1 %v12305_v40  ;;  %9093 = vmatprep.subr.bf16.mxu0 %v12310_v44  ;;  %v12359_v40 = vld [vmem:[#allocation11 + $0x570] ss:$40 sps:$4 sm:$0xff]   ;;  %v12364_v44 = vld [vmem:[#allocation11 + $0x5c4] ss:$40 sps:$4 sm:$0xff]  }
 0x808   :  { %8962 = vmatmul.mubr.bf16.vlgmr.msra.gmra.mrb[44].mxu0 %v13064_v42 }
 0x809   :  { %9085 = vmatmul.mubr.bf16.vlgmr.msra.gmra.mrb[40].mxu1 %v13064_v42  ;;  %9094 = vmatpush1.bf16.msra.mxu0 %v12308_v26  ;;  %v12362_v26 = vld [vmem:[#allocation11 + $0x5c0] ss:$40 sps:$4 sm:$0xff]  }
 0x80a   :  { %9125 = vmatprep.mubr.bf16.mxu0 %v13037_v29  ;;  %9095 = vmatprep.subr.bf16.mxu0 %v12313_v46  ;;  %v12326_v29 = vld [vmem:[#allocation11 + $0x200] ss:$40 sps:$4 sm:$0xff]   ;;  %v12367_v46 = vld [vmem:[#allocation11 + $0x614] ss:$40 sps:$4 sm:$0xff]  }
 0x80d   :  { %9096 = vmatpush1.bf16.msra.mxu0 %v12311_v48  ;;  %v12365_v48 = vld [vmem:[#allocation11 + $0x610] ss:$40 sps:$4 sm:$0xff]  }
 0x80e   :  { %9097 = vmatprep.subr.bf16.mxu0 %v12316_v49  ;;  %v12370_v49 = vld [vmem:[#allocation11 + $0x664] ss:$40 sps:$4 sm:$0xff]  }
 0x811   :  { %9098 = vmatpush1.bf16.msra.mxu0 %v12314_v43  ;;  %v12368_v43 = vld [vmem:[#allocation11 + $0x660] ss:$40 sps:$4 sm:$0xff]  }
 0x812   :  { %9099 = vmatprep.subr.bf16.mxu0 %v12319_v50  ;;  %v12373_v50 = vld [vmem:[#allocation11 + $0x6b4] ss:$40 sps:$4 sm:$0xff]  }
 0x815   :  { %9100 = vmatpush1.bf16.msra.mxu0 %v12317_v52  ;;  %v12376_v52 = vld [vmem:[#allocation11 + $0x704] ss:$40 sps:$4 sm:$0xff]  }
 0x816   :  { %9101 = vmatprep.subr.bf16.mxu0 %v12322_v53  ;;  %v12379_v53 = vld [vmem:[#allocation11 + $0x754] ss:$40 sps:$4 sm:$0xff]  }
 0x819   :  { %9102 = vmatpush1.bf16.msra.mxu0 %v12320_v59  ;;  %v12377_v59 = vld [vmem:[#allocation11 + $0x750] ss:$40 sps:$4 sm:$0xff]  }
 0x81a   :  { %9103 = vmatprep.subr.bf16.mxu0 %v12325_v54  ;;  %v12382_v54 = vld [vmem:[#allocation11 + $0x7a4] ss:$40 sps:$4 sm:$0xff]  }
 0x81d   :  { %9104 = vmatpush1.bf16.msra.mxu0 %v12323_v56  ;;  %v12380_v56 = vld [vmem:[#allocation11 + $0x7a0] ss:$40 sps:$4 sm:$0xff]  }
 0x81e   :  { %9105 = vmatprep.subr.bf16.mxu0 %v12328_v57  ;;  %v12385_v57 = vld [vmem:[#allocation11 + $0x7f4] ss:$40 sps:$4 sm:$0xff]  }
 0x821   :  { %9106 = vmatpush1.bf16.msra.mxu0 %v12326_v29  ;;  %v12383_v29 = vld [vmem:[#allocation11 + $0x7f0] ss:$40 sps:$4 sm:$0xff]  }
 0x822   :  { %9107 = vmatprep.subr.bf16.mxu0 %v12331_v47  ;;  %v12388_v47 = vld [vmem:[#allocation11 + $0x844] ss:$40 sps:$4 sm:$0xff]  }
 0x825   :  { %9108 = vmatpush1.bf16.msra.mxu0 %v12329_v58  ;;  %v12386_v58 = vld [vmem:[#allocation11 + $0x840] ss:$40 sps:$4 sm:$0xff]  }
 0x826   :  { %9109 = vmatprep.subr.bf16.mxu0 %v12334_v63  ;;  %v12391_v63 = vld [vmem:[#allocation11 + $0x894] ss:$40 sps:$4 sm:$0xff]  }
 0x829   :  { %9110 = vmatpush1.bf16.msra.mxu0 %v12332_v0  ;;  %v12389_v0 = vld [vmem:[#allocation11 + $0x890] ss:$40 sps:$4 sm:$0xff]  }
 0x82a   :  { %9111 = vmatprep.subr.bf16.mxu0 %v12337_v60  ;;  %v12394_v60 = vld [vmem:[#allocation11 + $0x8e4] ss:$40 sps:$4 sm:$0xff]  }
 0x82d   :  { %9112 = vmatpush1.bf16.msra.mxu0 %v12335_v61  ;;  %v12392_v61 = vld [vmem:[#allocation11 + $0x8e0] ss:$40 sps:$4 sm:$0xff]  }
 0x82e   :  { %9113 = vmatprep.subr.bf16.mxu0 %v12340_v62  ;;  %v12397_v62 = vld [vmem:[#allocation11 + $0x934] ss:$40 sps:$4 sm:$0xff]  }
 0x831   :  { %9114 = vmatpush1.bf16.msra.mxu0 %v12338_v1  ;;  %v12395_v1 = vld [vmem:[#allocation11 + $0x930] ss:$40 sps:$4 sm:$0xff]  }
 0x832   :  { %9115 = vmatprep.subr.bf16.mxu0 %v12343_v14  ;;  %v12400_v14 = vld [vmem:[#allocation11 + $0x984] ss:$40 sps:$4 sm:$0xff]  }
 0x835   :  { %9116 = vmatpush1.bf16.msra.mxu0 %v12341_v20  ;;  %v12398_v20 = vld [vmem:[#allocation11 + $0x980] ss:$40 sps:$4 sm:$0xff]  }
 0x836   :  { %9117 = vmatprep.subr.bf16.mxu0 %v12346_v38  ;;  %v12403_v38 = vld [vmem:[#allocation11 + $0x9d4] ss:$40 sps:$4 sm:$0xff]  }
 0x839   :  { %9118 = vmatpush1.bf16.msra.mxu0 %v12344_v3  ;;  %v12401_v3 = vld [vmem:[#allocation11 + $0x9d0] ss:$40 sps:$4 sm:$0xff]  }
 0x83a   :  { %9119 = vmatprep.subr.bf16.mxu0 %v12349_v55  ;;  %v12406_v55 = vld [vmem:[#allocation11 + $0xa24] ss:$40 sps:$4 sm:$0xff]  }
 0x83b   :  { %v8717_v13 = vpop.f32.mrb[40].mxu0  ;;  %v8840_v17 = vpop.f32.mrb[36].mxu1 }
 0x83c   :  { %v10708_v21 = vadd.f32 %v8717_v13, %v6554_v4  ;;  %v10710_v7 = vadd.f32 %v8840_v17, %v6562_v5  ;;  %v8719_v22 = vpop.f32.mrb[41].mxu0  ;;  %v8842_v23 = vpop.f32.mrb[37].mxu1  ;;  %v12404_v4 = vld [vmem:[#allocation11 + $0xa20] ss:$40 sps:$4 sm:$0xff]   ;;  %v12409_v5 = vld [vmem:[#allocation11 + $0xa74] ss:$40 sps:$4 sm:$0xff]  }
 0x83d   :  { %v10709_v24 = vadd.f32 %v8719_v22, %v6558_v8  ;;  %v10711_v27 = vadd.f32 %v8842_v23, %v6566_v9  ;;  %v8721_v18 = vpop.f32.mrb[42].mxu0  ;;  %v8844_v15 = vpop.f32.mrb[38].mxu1  ;;  %9120 = vmatpush1.bf16.msra.mxu0 %v12347_v11  ;;  %v12407_v8 = vld [vmem:[#allocation11 + $0xa70] ss:$40 sps:$4 sm:$0xff]   ;;  %v12412_v9 = vld [vmem:[#allocation11 + $0xac4] ss:$40 sps:$4 sm:$0xff]  }
 0x83e   :  { %v8722_v28 = vpop.f32.mrb[43].mxu0  ;;  %v8845_v31 = vpop.f32.mrb[39].mxu1  ;;  %9121 = vmatprep.subr.bf16.mxu0 %v12352_v12  ;;  %v12410_v11 = vld [vmem:[#allocation11 + $0xac0] ss:$40 sps:$4 sm:$0xff]   ;;  %v12415_v12 = vld [vmem:[#allocation11 + $0xb14] ss:$40 sps:$4 sm:$0xff]  }
 0x83f   :  { %v10426_v16 = vpack.c.bf16 %v10709_v24, %v10708_v21  ;;  %v10427_v32 = vpack.c.bf16 %v10711_v27, %v10710_v7  ;;  %v12413_v13 = vld [vmem:[#allocation11 + $0xb10] ss:$40 sps:$4 sm:$0xff]   ;;  %v12418_v17 = vld [vmem:[#allocation11 + $0xb64] ss:$40 sps:$4 sm:$0xff]   ;;  %v12416_v21 = vld [vmem:[#allocation11 + $0xb60] ss:$40 sps:$4 sm:$0xff]  }
 0x840   :  { %v12421_v7 = vld [vmem:[#allocation11 + $0xbb4] ss:$40 sps:$4 sm:$0xff]   ;;  %v12424_v22 = vld [vmem:[#allocation11 + $0xc04] ss:$40 sps:$4 sm:$0xff]   ;;  %v12425_v24 = vld [vmem:[#allocation11 + $0xc50] ss:$40 sps:$4 sm:$0xff]  }
 0x841   :  { %9256 = vst [vmem:[%s13154_s9] sm:$0xff] %v10426_v16  ;;  %9257 = vst [vmem:[%s13154_s9 + $0x8] sm:$0xff] %v10427_v32  ;;  %9122 = vmatpush1.bf16.msra.mxu0 %v12350_v10  ;;  %v12427_v23 = vld [vmem:[#allocation11 + $0xc54] ss:$40 sps:$4 sm:$0xff]   ;;  %v6577_v27 = vsub.s32 6, %v12930_v35  ;;  %v6573_v18 = vsub.s32 5, %v12930_v35  ;;  %v6581_v15 = vsub.s32 7, %v12930_v35  ;;  %v6570_v10 = vrot.slane %v13081_v51, %v12963_v45 }
 0x842   :  { %9123 = vmatprep.subr.bf16.mxu0 %v12355_v6 }
 0x843   :  { %v6578_v28 = vrot.slane %v13081_v51, %v6577_v27  ;;  %v6574_v31 = vrot.slane %v13081_v51, %v6573_v18  ;;  %v6582_v6 = vrot.slane %v13081_v51, %v6581_v15 }
 0x845   :  { %9124 = vmatpush1.bf16.msra.mxu0 %v12353_v33 }
 0x846   :  { %9134 = vmatprep.subr.bf16.mxu0 %v12358_v34 }
 0x848   :  { %9126 = vmatmul.mubr.bf16.vlgmr.msra.gmra.mrb[48].mxu0 %v13039_v30  ;;  %v12371_v30 = vld [vmem:[#allocation11 + $0x6b0] ss:$40 sps:$4 sm:$0xff]  }
 0x849   :  { %9135 = vmatpush1.bf16.msra.mxu0 %v12356_v36  ;;  %9166 = vmatprep.mubr.bf16.mxu0 %v13045_v19  ;;  %v12374_v19 = vld [vmem:[#allocation11 + $0x700] ss:$40 sps:$4 sm:$0xff]  }
 0x84a   :  { %9136 = vmatprep.subr.bf16.mxu0 %v12361_v37 }
 0x84d   :  { %9137 = vmatpush1.bf16.msra.mxu0 %v12359_v40 }
 0x84e   :  { %9138 = vmatprep.subr.bf16.mxu0 %v12364_v44 }
 0x851   :  { %9139 = vmatpush1.bf16.msra.mxu0 %v12362_v26 }
 0x852   :  { %9140 = vmatprep.subr.bf16.mxu0 %v12367_v46 }
 0x855   :  { %9141 = vmatpush1.bf16.msra.mxu0 %v12365_v48 }
 0x856   :  { %9142 = vmatprep.subr.bf16.mxu0 %v12370_v49 }
 0x859   :  { %9143 = vmatpush1.bf16.msra.mxu0 %v12368_v43 }
 0x85a   :  { %9144 = vmatprep.subr.bf16.mxu0 %v12373_v50 }
 0x85d   :  { %9145 = vmatpush1.bf16.msra.mxu0 %v12371_v30 }
 0x85e   :  { %9146 = vmatprep.subr.bf16.mxu0 %v12376_v52 }
 0x861   :  { %9147 = vmatpush1.bf16.msra.mxu0 %v12374_v19 }
 0x862   :  { %9148 = vmatprep.subr.bf16.mxu0 %v12379_v53 }
 0x865   :  { %9149 = vmatpush1.bf16.msra.mxu0 %v12377_v59 }
 0x866   :  { %9150 = vmatprep.subr.bf16.mxu0 %v12382_v54 }
 0x869   :  { %9151 = vmatpush1.bf16.msra.mxu0 %v12380_v56 }
 0x86a   :  { %9152 = vmatprep.subr.bf16.mxu0 %v12385_v57 }
 0x86d   :  { %9153 = vmatpush1.bf16.msra.mxu0 %v12383_v29 }
 0x86e   :  { %9154 = vmatprep.subr.bf16.mxu0 %v12388_v47 }
 0x871   :  { %9155 = vmatpush1.bf16.msra.mxu0 %v12386_v58 }
 0x872   :  { %9156 = vmatprep.subr.bf16.mxu0 %v12391_v63 }
 0x875   :  { %9157 = vmatpush1.bf16.msra.mxu0 %v12389_v0 }
 0x876   :  { %9158 = vmatprep.subr.bf16.mxu0 %v12394_v60 }
 0x879   :  { %9159 = vmatpush1.bf16.msra.mxu0 %v12392_v61 }
 0x87a   :  { %9160 = vmatprep.subr.bf16.mxu0 %v12397_v62 }
 0x87d   :  { %9161 = vmatpush1.bf16.msra.mxu0 %v12395_v1 }
 0x87e   :  { %9162 = vmatprep.subr.bf16.mxu0 %v12400_v14 }
 0x881   :  { %9163 = vmatpush1.bf16.msra.mxu0 %v12398_v20 }
 0x882   :  { %9164 = vmatprep.subr.bf16.mxu0 %v12403_v38 }
 0x885   :  { %9165 = vmatpush1.bf16.msra.mxu0 %v12401_v3 }
 0x886   :  { %9175 = vmatprep.subr.bf16.mxu0 %v12406_v55 }
 0x888   :  { %9167 = vmatmul.mubr.bf16.vlgmr.msra.gmra.mrb[48].mxu0 %v13056_v2  ;;  %v12419_v2 = vld [vmem:[#allocation11 + $0xbb0] ss:$40 sps:$4 sm:$0xff]  }
 0x889   :  { %9176 = vmatpush1.bf16.msra.mxu0 %v12404_v4  ;;  %9207 = vmatprep.mubr.bf16.mxu0 %v12689_v41  ;;  %v12422_v41 = vld [vmem:[#allocation11 + $0xc00] ss:$40 sps:$4 sm:$0xff]  }
 0x88a   :  { %9177 = vmatprep.subr.bf16.mxu0 %v12409_v5 }
 0x88d   :  { %9178 = vmatpush1.bf16.msra.mxu0 %v12407_v8 }
 0x88e   :  { %9179 = vmatprep.subr.bf16.mxu0 %v12412_v9 }
 0x891   :  { %9180 = vmatpush1.bf16.msra.mxu0 %v12410_v11 }
 0x892   :  { %9181 = vmatprep.subr.bf16.mxu0 %v12415_v12 }
 0x895   :  { %9182 = vmatpush1.bf16.msra.mxu0 %v12413_v13 }
 0x896   :  { %9183 = vmatprep.subr.bf16.mxu0 %v12418_v17 }
 0x899   :  { %9184 = vmatpush1.bf16.msra.mxu0 %v12416_v21 }
 0x89a   :  { %9185 = vmatprep.subr.bf16.mxu0 %v12421_v7 }
 0x89d   :  { %9186 = vmatpush1.bf16.msra.mxu0 %v12419_v2 }
 0x89e   :  { %9187 = vmatprep.subr.bf16.mxu0 %v12424_v22 }
 0x8a1   :  { %9188 = vmatpush1.bf16.msra.mxu0 %v12422_v41 }
 0x8a2   :  { %9189 = vmatprep.subr.bf16.mxu0 %v12427_v23 }
 0x8a5   :  { %9190 = vmatpush1.bf16.msra.mxu0 %v12425_v24 }
 0x8a8   :  { %9208 = vmatmul.mubr.bf16.vlgmr.msra.gmra.mrb[48].mxu0 %v13064_v42 }
 0x8db   :  { %v8963_v16 = vpop.f32.mrb[44].mxu0 }
 0x8dc   :  { %v10712_v32 = vadd.f32 %v8963_v16, %v6570_v10  ;;  %v9086_v33 = vpop.f32.mrb[40].mxu1  ;;  %v8965_v34 = vpop.f32.mrb[45].mxu0 }
 0x8dd   :  { %v10714_v42 = vadd.f32 %v9086_v33, %v6578_v28  ;;  %v10713_v36 = vadd.f32 %v8965_v34, %v6574_v31  ;;  %v9088_v37 = vpop.f32.mrb[41].mxu1  ;;  %v8967_v40 = vpop.f32.mrb[46].mxu0 }
 0x8de   :  { %v10715_v44 = vadd.f32 %v9088_v37, %v6582_v6  ;;  %v9090_v26 = vpop.f32.mrb[42].mxu1  ;;  %v8968_v35 = vpop.f32.mrb[47].mxu0 }
 0x8df   :  { %v10428_v46 = vpack.c.bf16 %v10713_v36, %v10712_v32  ;;  %v9091_v48 = vpop.f32.mrb[43].mxu1 }
 0x8e0   :  { %v10429_v45 = vpack.c.bf16 %v10715_v44, %v10714_v42 }
 0x8e1   :  { %9258 = vst [vmem:[%s13154_s9 + $0x10] sm:$0xff] %v10428_v46 }
 0x8e2   :  { %9259 = vst [vmem:[%s13154_s9 + $0x18] sm:$0xff] %v10429_v45 }
 0x8e3   :  { %12628 = shalt.err (!%p12625_p4)
}
 0x8e4   :  { %s12629_s7 = scalar_lea.hbm %s13155_s10, 128 }
 0x8e5   :  { %p12630_p5 = scmp.ne.s32.totalorder %s13155_s10, %s12629_s7  ;;  %p12633_p6 = scmp.lt.u32.totalorder %s12629_s7, %s13155_s10 }
 0x8e7   :  { %p12635_p7 = pnand %p12633_p6, %p12630_p5 }
 0x8e9   :  { %12638 = shalt.err (!%p12635_p7)
}
 0x8ea   :  { %9274 = dma.vmem_to_hbm [thread:$0]  %s9272_s21, 128, %s13155_s10, [#allocation4]  }
 0x8eb   :  { %s12639_s26 = scalar_lea.vmem %s9282_s20, 128  ;;  %p12644_p9 = scmp.lt.s32.totalorder %s9282_s20, %s9282_s20 }
 0x8ec   :  { %p12640_p8 = scmp.ne.s32.totalorder %s9282_s20, %s12639_s26  ;;  %p12645_p10 = scmp.lt.s32.totalorder %s12639_s26, %s12639_s26 }
 0x8ee   :  { %p12646_p11 = por %p12645_p10, %p12644_p9 }
 0x8f0   :  { %p12647_p12 = pnand %p12646_p11, %p12640_p8 }
 0x8f2   :  { %12650 = shalt.err (!%p12647_p12)
}
 0x8f3   :  { %s12651_s12 = scalar_lea.hbm %s13156_s11, 128 }
 0x8f4   :  { %p12652_p13 = scmp.ne.s32.totalorder %s13156_s11, %s12651_s12  ;;  %p12655_p0 = scmp.lt.u32.totalorder %s12651_s12, %s13156_s11 }
 0x8f6   :  { %p12657_p1 = pnand %p12655_p0, %p12652_p13 }
 0x8f8   :  { %12660 = shalt.err (!%p12657_p1)
}
 0x8f9   :  { %9284 = dma.vmem_to_hbm [thread:$0]  %s9282_s20, 128, %s13156_s11, [#allocation16]   ;;  %v6548_v51 = vld [vmem:[#allocation13 + $0x1a] sm:$0x3] }
 0x8fa   :  { %v6586_v49 = vrot.slane %v6548_v51, %v12933_v39  ;;  %v6590_v43 = vrot.slane %v6548_v51, %v12936_v25 }
 0x97b   :  { %v9209_v50 = vpop.f32.mrb[48].mxu0 }
 0x97c   :  { %v10716_v30 = vadd.f32 %v9209_v50, %v6586_v49  ;;  %v9211_v52 = vpop.f32.mrb[49].mxu0 }
 0x97d   :  { %v10717_v19 = vadd.f32 %v9211_v52, %v6590_v43  ;;  %v9213_v53 = vpop.f32.mrb[50].mxu0 }
 0x97e   :  { %v9214_v59 = vpop.f32.mrb[51].mxu0 }
 0x97f   :  { %v10430_v54 = vpack.c.bf16 %v10717_v19, %v10716_v30 }
 0x981   :  { %9260 = vst [vmem:[%s13154_s9 + $0x20] sm:$0xff] %v10430_v54 }
 0x982   :  { %12669 = dma.done.wait [#allocation4], 128  }
 0x983   :  { %12670 = vsyncadd [#allocation4], 4294967168 }
 0x984   :  { %12671 = dma.done.wait [#allocation16], 128  }
 0x985   :  { %12672 = vsyncadd [#allocation16], 4294967168 }
 0x986   :  { %9293 = vsyncpa [#allocation3], 1 }
 0x987   :  { %9294 = vsyncpa [#allocation6], 1 }
 0x988   :  { %9295 = vsyncpa [#allocation9], 1 }
 0x989   :  { %9296 = vsyncpa [#allocation12], 1 }
 0x98a   :  { %9297 = vsyncpa [#allocation4], 1 }
 0x98b   :  { %9298 = vsyncpa [#allocation16], 1 }

</bundles_post_ra>
